<compile_context>
chip_gen: v7x
topology: tpu7x:2x2x1
jax: 0.10.0
libtpu: 0.0.40
codegen_flags: <defaults>
</compile_context>

<pallas_src>
import functools

import jax
import jax.numpy as jnp
from jax.experimental import pallas as pl
from jax.experimental.pallas import tpu as pltpu

N_EMBD = 384
N_HEAD = 6
BLOCK_SIZE = 256          # max sequence length supported by the causal mask
DROPOUT_P = 0.2
LN_EPS = 1e-5


# ----------------------------------------------------------------------------
# Small in-kernel helpers (pure jnp/lax -> portable to Mosaic and interpret).
# ----------------------------------------------------------------------------
def _i32(v):
    """Hex constant as a (possibly negative) int32."""
    return jnp.int32(v - (1 << 32) if v >= (1 << 31) else v)


def _lsr(x, k):
    """Logical right shift for int32 (arithmetic shift + mask of sign bits)."""
    return (x >> k) & jnp.int32((1 << (32 - k)) - 1)


def _salt(seed, tile_id, site):
    """Distinct int32 salt per (seed, grid position, dropout site)."""
    return (seed * _i32(0x9E3779B1)
            + tile_id * _i32(0x85EBCA6B)
            + jnp.int32(site) * _i32(0xC2B2AE35))


def _dropout_scale(shape, salt, p):
    """Inverted-dropout multiplier (1/(1-p) or 0) from a counter-based hash.

    Plain 32-bit integer VPU ops (murmur-style finalizer); int32 multiplies wrap
    mod 2**32 which is exactly what the hash wants.  Threshold is clamped so a
    configurable p -> 1.0 cannot overflow.
    """
    r = jax.lax.broadcasted_iota(jnp.int32, shape, 0)
    c = jax.lax.broadcasted_iota(jnp.int32, shape, 1)
    x = r * jnp.int32(shape[-1]) + c + salt
    x = (x ^ _lsr(x, 16)) * _i32(0x85EBCA6B)
    x = (x ^ _lsr(x, 13)) * _i32(0xC2B2AE35)
    x = x ^ _lsr(x, 16)
    bits = x & jnp.int32(0x7FFFFFFF)                      # uniform in [0, 2**31)
    threshold = jnp.int32(min(int(p * (1 << 31)), (1 << 31) - 1))
    keep = bits >= threshold
    return jnp.where(keep, jnp.float32(1.0 / (1.0 - p)), jnp.float32(0.0))


def _layer_norm(x, gamma, beta):
    mu = jnp.mean(x, axis=-1, keepdims=True)
    var = jnp.mean(jnp.square(x - mu), axis=-1, keepdims=True)
    return (x - mu) * jax.lax.rsqrt(var + LN_EPS) * gamma + beta


def _vmem_budget_bytes():
    # v7x has only 64 MiB physical VMEM per TensorCore (v5e/v6e: 128 MiB);
    # keep the scoped request well under the physical capacity.
    cap = 64 * 1024 * 1024
    try:
        cap = int(getattr(pltpu.get_tpu_info(), "vmem_capacity_bytes", cap))
    except Exception:
        pass
    return int(cap * 0.75)


# ----------------------------------------------------------------------------
# Kernel 1: x + Dropout(Proj(MultiHeadCausalAttention(LN1(x))))
# ----------------------------------------------------------------------------
def _attn_block_kernel(seed_ref, x_ref, g1_ref, be1_ref, wq_ref, wk_ref,
                       wv_ref, wo_ref, bo_ref, o_ref, *, n_head, dropout_p,
                       training):
    xb = x_ref[...]                                   # (T, C) f32, pre-LN residual
    T, C = xb.shape
    hs = C // n_head
    scale = jnp.float32(C) ** -0.5                    # torch code scales by n_embd**-0.5

    xn = _layer_norm(xb, g1_ref[...], be1_ref[...])
    xn_bf = xn.astype(jnp.bfloat16)

    # All-head projections as three lane-dense (C x C) bf16 MXU matmuls.
    q_all = jnp.dot(xn_bf, wq_ref[...], preferred_element_type=jnp.float32)
    k_all = jnp.dot(xn_bf, wk_ref[...], preferred_element_type=jnp.float32)
    v_all = jnp.dot(xn_bf, wv_ref[...], preferred_element_type=jnp.float32)

    row = jax.lax.broadcasted_iota(jnp.int32, (T, T), 0)
    col = jax.lax.broadcasted_iota(jnp.int32, (T, T), 1)
    causal = col <= row

    b = pl.program_id(0)
    seed = seed_ref[0]

    heads = []
    for h in range(n_head):                           # static unroll over 6 heads
        q = q_all[:, h * hs:(h + 1) * hs].astype(jnp.bfloat16)
        k = k_all[:, h * hs:(h + 1) * hs].astype(jnp.bfloat16)
        v = v_all[:, h * hs:(h + 1) * hs].astype(jnp.bfloat16)
        # wei = q @ k^T * C**-0.5 ; causal mask ; softmax (all f32).
        wei = jax.lax.dot_general(q, k, (((1,), (1,)), ((), ())),
                                  preferred_element_type=jnp.float32) * scale
        wei = jnp.where(causal, wei, jnp.float32(-1e30))
        wei = wei - jnp.max(wei, axis=-1, keepdims=True)
        e = jnp.exp(wei)
        p = e / jnp.sum(e, axis=-1, keepdims=True)
        if training and dropout_p > 0.0:
            p = p * _dropout_scale(p.shape, _salt(seed, b, 101 + h), dropout_p)
        heads.append(jnp.dot(p.astype(jnp.bfloat16), v,
                             preferred_element_type=jnp.float32))

    cat = jnp.concatenate(heads, axis=-1).astype(jnp.bfloat16)   # (T, C)
    att = jnp.dot(cat, wo_ref[...], preferred_element_type=jnp.float32)
    att = att + bo_ref[...]
    if training and dropout_p > 0.0:
        att = att * _dropout_scale(att.shape, _salt(seed, b, 201), dropout_p)

    o_ref[...] = (xb + att).astype(o_ref.dtype)       # residual add (lane-dense)


def attention_block(x, params, *, seed, dropout_p, training):
    B, T, C = x.shape
    assert T <= BLOCK_SIZE, "sequence longer than the module's block_size"
    n_head = params["n_head"]
    budget = _vmem_budget_bytes()

    # Resident-byte estimate: x/out blocks (double-buffered f32), 4 bf16 (C,C)
    # weights single-buffered, plus f32 intermediates.
    est = (2 * 2 * T * C * 4
           + 4 * C * C * 2
           + 6 * C * 4
           + (6 * T * C + n_head * T * T) * 4)

    seed_arr = jnp.array([seed], dtype=jnp.int32)
    kernel = functools.partial(_attn_block_kernel, n_head=n_head,
                               dropout_p=dropout_p, training=training)
    const = lambda b, s: (0, 0)
    wspec = lambda shape: pl.BlockSpec(shape, const, pipeline_mode=pl.Buffered(1))

    return pl.pallas_call(
        kernel,
        out_shape=jax.ShapeDtypeStruct((B, T, C), x.dtype),
        grid_spec=pltpu.PrefetchScalarGridSpec(
            num_scalar_prefetch=1,                    # dropout seed in SMEM
            grid=(B,),
            in_specs=[
                pl.BlockSpec((None, T, C), lambda b, s: (b, 0, 0)),   # x[b]
                wspec((1, C)), wspec((1, C)),                         # ln1 gamma/beta
                wspec((C, C)), wspec((C, C)), wspec((C, C)),          # Wq, Wk, Wv (bf16)
                wspec((C, C)),                                        # Wproj (bf16)
                wspec((1, C)),                                        # proj bias
            ],
            out_specs=pl.BlockSpec((None, T, C), lambda b, s: (b, 0, 0)),
        ),
        compiler_params=pltpu.CompilerParams(
            dimension_semantics=("parallel",),        # batches independent (2 TCs on v7x)
            vmem_limit_bytes=min(budget, max(32 << 20, 2 * est + (8 << 20))),
        ),
    )(seed_arr, x,
      params["g1"].reshape(1, C), params["be1"].reshape(1, C),
      params["wq"], params["wk"], params["wv"],
      params["wo"], params["bo"].reshape(1, C))


# ----------------------------------------------------------------------------
# Kernel 2: x + Dropout(Linear(ReLU(Linear(LN2(x)))))
# ----------------------------------------------------------------------------
def _ffn_block_kernel(seed_ref, x_ref, g2_ref, be2_ref, w1_ref, b1_ref,
                      w2_ref, b2_ref, o_ref, *, dropout_p, training):
    xt = x_ref[...]                                   # (tm, C) f32, pre-LN residual
    xn = _layer_norm(xt, g2_ref[...], be2_ref[...])
    h = jnp.dot(xn.astype(jnp.bfloat16), w1_ref[...],
                preferred_element_type=jnp.float32) + b1_ref[...]
    h = jnp.maximum(h, 0.0)
    y = jnp.dot(h.astype(jnp.bfloat16), w2_ref[...],
                preferred_element_type=jnp.float32) + b2_ref[...]
    if training and dropout_p > 0.0:                  # VPU filler under the MXU
        y = y * _dropout_scale(y.shape,
                               _salt(seed_ref[0], pl.program_id(0), 301),
                               dropout_p)
    o_ref[...] = (xt + y).astype(o_ref.dtype)         # residual add (lane-dense)


def ffn_block(x, params, *, seed, dropout_p, training):
    orig_shape = x.shape
    d_in = orig_shape[-1]
    d_hidden = params["w1"].shape[1]
    x2d = x.reshape(-1, d_in)
    m = x2d.shape[0]
    budget = _vmem_budget_bytes()

    def est_bytes(tm):
        io = 2 * 2 * tm * d_in * 4                    # x/out tiles, double-buffered f32
        wts = 2 * d_in * d_hidden * 2                 # W1+W2 bf16, single-buffered
        small = (4 * d_in + 2 * d_hidden) * 4
        inter = tm * d_hidden * 4 + 2 * tm * d_in * 4 # f32 intermediates
        return io + wts + small + inter

    # Big row tiles amortize the ~0.35us/step overhead and keep DMA+MXU fed;
    # cap by the per-generation VMEM budget (v7x is the tight one).
    tm = None
    for cand in (1024, 512, 256, 128):
        if m >= cand and est_bytes(cand) <= budget:
            tm = cand
            break
    if tm is None:
        tm = max(8, -(-m // 8) * 8)                   # tiny input: one padded tile

    m_pad = -(-m // tm) * tm
    if m_pad != m:                                    # general shapes: pad rows
        x2d = jnp.pad(x2d, ((0, m_pad - m), (0, 0)))

    seed_arr = jnp.array([seed], dtype=jnp.int32)
    kernel = functools.partial(_ffn_block_kernel, dropout_p=dropout_p,
                               training=training)
    const = lambda i, s: (0, 0)
    wspec = lambda shape: pl.BlockSpec(shape, const, pipeline_mode=pl.Buffered(1))

    out2d = pl.pallas_call(
        kernel,
        out_shape=jax.ShapeDtypeStruct((m_pad, d_in), x.dtype),
        grid_spec=pltpu.PrefetchScalarGridSpec(
            num_scalar_prefetch=1,                    # dropout seed in SMEM
            grid=(m_pad // tm,),
            in_specs=[
                pl.BlockSpec((tm, d_in), lambda i, s: (i, 0)),   # x rows
                wspec((1, d_in)), wspec((1, d_in)),              # ln2 gamma/beta
                wspec((d_in, d_hidden)),                         # W1 (bf16)
                wspec((1, d_hidden)),                            # b1
                wspec((d_hidden, d_in)),                         # W2 (bf16)
                wspec((1, d_in)),                                # b2
            ],
            out_specs=pl.BlockSpec((tm, d_in), lambda i, s: (i, 0)),
        ),
        compiler_params=pltpu.CompilerParams(
            dimension_semantics=("parallel",),        # independent row tiles
            vmem_limit_bytes=min(budget, max(32 << 20, 2 * est_bytes(tm) + (8 << 20))),
        ),
    )(seed_arr, x2d,
      params["g2"].reshape(1, d_in), params["be2"].reshape(1, d_in),
      params["w1"], params["b1"].reshape(1, d_hidden),
      params["w2"], params["b2"].reshape(1, d_in))

    if m_pad != m:
        out2d = out2d[:m]
    return out2d.reshape(orig_shape)


def block_forward(x, params, *, seed=0, dropout_p=DROPOUT_P, training=True):
    """Forward of the torch Block: x = x + sa(ln1(x)); x = x + ffwd(ln2(x))."""
    x = attention_block(x, params, seed=seed, dropout_p=dropout_p,
                        training=training)
    x = ffn_block(x, params, seed=seed + 1, dropout_p=dropout_p,
                  training=training)
    return x


# ----------------------------------------------------------------------------
# Parameters and a pure-JAX reference (mirrors the kernels' bf16 casts).
# ----------------------------------------------------------------------------
def init_params(key, n_embd=N_EMBD, n_head=N_HEAD):
    """Weights stored (in, out) so kernels compute y = x @ W + b (== torch
    x @ weight.T + bias).  nn.Linear default init; LayerNorm gamma=1, beta=0."""
    d_hidden = 4 * n_embd
    ks = jax.random.split(key, 10)

    def lin(k, fan_in, shape):
        lim = 1.0 / (fan_in ** 0.5)
        return jax.random.uniform(k, shape, jnp.float32, -lim, lim)

    bf16 = jnp.bfloat16
    return {
        "n_head": n_head,
        "g1": jnp.ones((n_embd,), jnp.float32),
        "be1": jnp.zeros((n_embd,), jnp.float32),
        "g2": jnp.ones((n_embd,), jnp.float32),
        "be2": jnp.zeros((n_embd,), jnp.float32),
        # Per-head K/Q/V (bias=False), heads stacked along the output (lane) axis.
        "wq": lin(ks[0], n_embd, (n_embd, n_embd)).astype(bf16),
        "wk": lin(ks[1], n_embd, (n_embd, n_embd)).astype(bf16),
        "wv": lin(ks[2], n_embd, (n_embd, n_embd)).astype(bf16),
        "wo": lin(ks[3], n_embd, (n_embd, n_embd)).astype(bf16),
        "bo": lin(ks[4], n_embd, (n_embd,)),
        "w1": lin(ks[5], n_embd, (n_embd, d_hidden)).astype(bf16),
        "b1": lin(ks[6], n_embd, (d_hidden,)),
        "w2": lin(ks[7], d_hidden, (d_hidden, n_embd)).astype(bf16),
        "b2": lin(ks[8], d_hidden, (n_embd,)),
    }


def block_reference(x, params):
    """Eval-mode pure-JAX mirror of the kernels (same bf16 casts) for checking."""
    f32 = jnp.float32
    bf = lambda a: a.astype(jnp.bfloat16)

    def ln(v, g, b):
        mu = v.mean(-1, keepdims=True)
        var = jnp.square(v - mu).mean(-1, keepdims=True)
        return (v - mu) * jax.lax.rsqrt(var + LN_EPS) * g + b

    B, T, C = x.shape
    n_head = params["n_head"]
    hs = C // n_head

    xn = ln(x, params["g1"], params["be1"])
    q = jnp.einsum("btc,cd->btd", bf(xn), params["wq"], preferred_element_type=f32)
    k = jnp.einsum("btc,cd->btd", bf(xn), params["wk"], preferred_element_type=f32)
    v = jnp.einsum("btc,cd->btd", bf(xn), params["wv"], preferred_element_type=f32)
    q = q.reshape(B, T, n_head, hs)
    k = k.reshape(B, T, n_head, hs)
    v = v.reshape(B, T, n_head, hs)
    wei = jnp.einsum("bqhd,bkhd->bhqk", bf(q), bf(k),
                     preferred_element_type=f32) * (C ** -0.5)
    mask = jnp.tril(jnp.ones((T, T), bool))
    wei = jnp.where(mask, wei, -1e30)
    p = jax.nn.softmax(wei, axis=-1)
    ho = jnp.einsum("bhqk,bkhd->bqhd", bf(p), bf(v), preferred_element_type=f32)
    cat = ho.reshape(B, T, C)
    att = jnp.einsum("btc,cd->btd", bf(cat), params["wo"],
                     preferred_element_type=f32) + params["bo"]
    x1 = x + att

    xn2 = ln(x1, params["g2"], params["be2"])
    h = jnp.maximum(jnp.einsum("btc,ch->bth", bf(xn2), params["w1"],
                               preferred_element_type=f32) + params["b1"], 0.0)
    y = jnp.einsum("bth,hc->btc", bf(h), params["w2"],
                   preferred_element_type=f32) + params["b2"]
    return x1 + y


if __name__ == "__main__":
    batch, seq = 2, 64        # small demo shapes; n_embd / n_head from the module
    key = jax.random.PRNGKey(0)
    kx, kp = jax.random.split(key)
    x = jax.random.normal(kx, (batch, seq, N_EMBD), dtype=jnp.float32)
    params = init_params(kp)

    # Eval-mode check against the pure-JAX mirror (dropout disabled).
    y_eval = block_forward(x, params, training=False)
    y_ref = block_reference(x, params)
    assert jnp.allclose(y_eval, y_ref, atol=3e-2, rtol=3e-2), \
        float(jnp.max(jnp.abs(y_eval - y_ref)))

    # Training-mode forward (inverted dropout, p=0.2), as in the torch module.
    y = block_forward(x, params, seed=0, training=True)
    jax.block_until_ready(y)
    print("KERNEL_OK")
</pallas_src>

<mosaic_0001>
module attributes {stable_mosaic.version = 11 : i64} {
  func.func @_attn_block_kernel(%arg0: i32, %arg1: memref<1xi32, #tpu.memory_space<smem>>, %arg2: memref<1x64x384xf32, #tpu.memory_space<vmem>>, %arg3: memref<1x384xf32, #tpu.memory_space<vmem>>, %arg4: memref<1x384xf32, #tpu.memory_space<vmem>>, %arg5: memref<384x384xbf16, #tpu.memory_space<vmem>>, %arg6: memref<384x384xbf16, #tpu.memory_space<vmem>>, %arg7: memref<384x384xbf16, #tpu.memory_space<vmem>>, %arg8: memref<384x384xbf16, #tpu.memory_space<vmem>>, %arg9: memref<1x384xf32, #tpu.memory_space<vmem>>, %arg10: memref<1x64x384xf32, #tpu.memory_space<vmem>>) attributes {dimension_semantics = [#tpu.dimension_semantics<parallel>], iteration_bounds = array<i64: 2>, scalar_prefetch = 1 : i64, scratch_operands = 0 : i64, tpu.core_type = #tpu.core_type<tc>, window_params = [{transform_indices = @transform_0, window_bounds = array<i64: 1, 64, 384>}, {pipeline_mode = #tpu.pipeline_mode<synchronous>, transform_indices = @transform_1, window_bounds = array<i64: 1, 384>}, {pipeline_mode = #tpu.pipeline_mode<synchronous>, transform_indices = @transform_2, window_bounds = array<i64: 1, 384>}, {pipeline_mode = #tpu.pipeline_mode<synchronous>, transform_indices = @transform_3, window_bounds = array<i64: 384, 384>}, {pipeline_mode = #tpu.pipeline_mode<synchronous>, transform_indices = @transform_4, window_bounds = array<i64: 384, 384>}, {pipeline_mode = #tpu.pipeline_mode<synchronous>, transform_indices = @transform_5, window_bounds = array<i64: 384, 384>}, {pipeline_mode = #tpu.pipeline_mode<synchronous>, transform_indices = @transform_6, window_bounds = array<i64: 384, 384>}, {pipeline_mode = #tpu.pipeline_mode<synchronous>, transform_indices = @transform_7, window_bounds = array<i64: 1, 384>}, {transform_indices = @transform_8, window_bounds = array<i64: 1, 64, 384>}]} {
    %c0 = arith.constant 0 : index
    %c0_0 = arith.constant 0 : index
    %c0_1 = arith.constant 0 : index
    %0 = vector.load %arg2[%c0, %c0_0, %c0_1] : memref<1x64x384xf32, #tpu.memory_space<vmem>>, vector<1x64x384xf32>
    %1 = vector.shape_cast %0 : vector<1x64x384xf32> to vector<64x384xf32>
    %cst = arith.constant 3.840000e+02 : f32
    %cst_2 = arith.constant -5.000000e-01 : f32
    %2 = math.powf %cst, %cst_2 : f32
    %c0_3 = arith.constant 0 : index
    %c0_4 = arith.constant 0 : index
    %3 = vector.load %arg3[%c0_3, %c0_4] : memref<1x384xf32, #tpu.memory_space<vmem>>, vector<1x384xf32>
    %c0_5 = arith.constant 0 : index
    %c0_6 = arith.constant 0 : index
    %4 = vector.load %arg4[%c0_5, %c0_6] : memref<1x384xf32, #tpu.memory_space<vmem>>, vector<1x384xf32>
    %cst_7 = arith.constant dense<0.000000e+00> : vector<64xf32>
    %5 = vector.multi_reduction <add>, %1, %cst_7 [1] : vector<64x384xf32> to vector<64xf32>
    %6 = vector.shape_cast %5 : vector<64xf32> to vector<64x1xf32>
    %cst_8 = arith.constant 3.840000e+02 : f32
    %7 = vector.broadcast %cst_8 : f32 to vector<64x1xf32>
    %8 = arith.divf %6, %7 : vector<64x1xf32>
    %9 = vector.broadcast %8 : vector<64x1xf32> to vector<64x384xf32>
    %10 = arith.subf %1, %9 : vector<64x384xf32>
    %11 = arith.mulf %10, %10 : vector<64x384xf32>
    %cst_9 = arith.constant dense<0.000000e+00> : vector<64xf32>
    %12 = vector.multi_reduction <add>, %11, %cst_9 [1] : vector<64x384xf32> to vector<64xf32>
    %13 = vector.shape_cast %12 : vector<64xf32> to vector<64x1xf32>
    %cst_10 = arith.constant 3.840000e+02 : f32
    %14 = vector.broadcast %cst_10 : f32 to vector<64x1xf32>
    %15 = arith.divf %13, %14 : vector<64x1xf32>
    %16 = vector.broadcast %8 : vector<64x1xf32> to vector<64x384xf32>
    %17 = arith.subf %1, %16 : vector<64x384xf32>
    %cst_11 = arith.constant 9.99999974E-6 : f32
    %18 = vector.broadcast %cst_11 : f32 to vector<64x1xf32>
    %19 = arith.addf %15, %18 : vector<64x1xf32>
    %20 = math.rsqrt %19 : vector<64x1xf32>
    %21 = vector.broadcast %20 : vector<64x1xf32> to vector<64x384xf32>
    %22 = arith.mulf %17, %21 : vector<64x384xf32>
    %23 = vector.broadcast %3 : vector<1x384xf32> to vector<64x384xf32>
    %24 = arith.mulf %22, %23 : vector<64x384xf32>
    %25 = vector.broadcast %4 : vector<1x384xf32> to vector<64x384xf32>
    %26 = arith.addf %24, %25 : vector<64x384xf32>
    %27 = arith.truncf %26 : vector<64x384xf32> to vector<64x384xbf16>
    %c0_12 = arith.constant 0 : index
    %c0_13 = arith.constant 0 : index
    %28 = vector.load %arg5[%c0_12, %c0_13] : memref<384x384xbf16, #tpu.memory_space<vmem>>, vector<384x384xbf16>
    %cst_14 = arith.constant dense<0.000000e+00> : vector<64x384xf32>
    %29 = tpu.matmul %27, %28, %cst_14 {dimension_numbers = #tpu.dot_dimension_numbers<[1], [0], [0], [1], [0, 0, 1, 1], [], []>} : vector<64x384xbf16>, vector<384x384xbf16>, vector<64x384xf32> -> vector<64x384xf32>
    %c0_15 = arith.constant 0 : index
    %c0_16 = arith.constant 0 : index
    %30 = vector.load %arg6[%c0_15, %c0_16] : memref<384x384xbf16, #tpu.memory_space<vmem>>, vector<384x384xbf16>
    %cst_17 = arith.constant dense<0.000000e+00> : vector<64x384xf32>
    %31 = tpu.matmul %27, %30, %cst_17 {dimension_numbers = #tpu.dot_dimension_numbers<[1], [0], [0], [1], [0, 0, 1, 1], [], []>} : vector<64x384xbf16>, vector<384x384xbf16>, vector<64x384xf32> -> vector<64x384xf32>
    %c0_18 = arith.constant 0 : index
    %c0_19 = arith.constant 0 : index
    %32 = vector.load %arg7[%c0_18, %c0_19] : memref<384x384xbf16, #tpu.memory_space<vmem>>, vector<384x384xbf16>
    %cst_20 = arith.constant dense<0.000000e+00> : vector<64x384xf32>
    %33 = tpu.matmul %27, %32, %cst_20 {dimension_numbers = #tpu.dot_dimension_numbers<[1], [0], [0], [1], [0, 0, 1, 1], [], []>} : vector<64x384xbf16>, vector<384x384xbf16>, vector<64x384xf32> -> vector<64x384xf32>
    %34 = tpu.iota {dimensions = array<i32: 0>} : vector<64x64xi32>
    %35 = tpu.iota {dimensions = array<i32: 1>} : vector<64x64xi32>
    %36 = arith.cmpi sle, %35, %34 : vector<64x64xi32>
    %37 = vector.extract_strided_slice %29 {offsets = [0, 0], sizes = [64, 64], strides = [1, 1]} : vector<64x384xf32> to vector<64x64xf32>
    %38 = arith.truncf %37 : vector<64x64xf32> to vector<64x64xbf16>
    %39 = vector.extract_strided_slice %31 {offsets = [0, 0], sizes = [64, 64], strides = [1, 1]} : vector<64x384xf32> to vector<64x64xf32>
    %40 = arith.truncf %39 : vector<64x64xf32> to vector<64x64xbf16>
    %41 = vector.extract_strided_slice %33 {offsets = [0, 0], sizes = [64, 64], strides = [1, 1]} : vector<64x384xf32> to vector<64x64xf32>
    %42 = arith.truncf %41 : vector<64x64xf32> to vector<64x64xbf16>
    %cst_21 = arith.constant dense<0.000000e+00> : vector<64x64xf32>
    %43 = tpu.matmul %38, %40, %cst_21 {dimension_numbers = #tpu.dot_dimension_numbers<[1], [1], [0], [0], [0, 0, 1, 0], [], []>} : vector<64x64xbf16>, vector<64x64xbf16>, vector<64x64xf32> -> vector<64x64xf32>
    %44 = vector.broadcast %2 : f32 to vector<64x64xf32>
    %45 = arith.mulf %43, %44 : vector<64x64xf32>
    %cst_22 = arith.constant -1.000000e+30 : f32
    %46 = vector.broadcast %cst_22 : f32 to vector<64x64xf32>
    %47 = arith.select %36, %45, %46 : vector<64x64xi1>, vector<64x64xf32>
    %cst_23 = arith.constant dense<0xFF800000> : vector<64xf32>
    %48 = vector.multi_reduction <maximumf>, %47, %cst_23 [1] : vector<64x64xf32> to vector<64xf32>
    %49 = vector.shape_cast %48 : vector<64xf32> to vector<64x1xf32>
    %50 = vector.broadcast %49 : vector<64x1xf32> to vector<64x64xf32>
    %51 = arith.subf %47, %50 : vector<64x64xf32>
    %52 = math.exp %51 : vector<64x64xf32>
    %cst_24 = arith.constant dense<0.000000e+00> : vector<64xf32>
    %53 = vector.multi_reduction <add>, %52, %cst_24 [1] : vector<64x64xf32> to vector<64xf32>
    %54 = vector.shape_cast %53 : vector<64xf32> to vector<64x1xf32>
    %55 = vector.broadcast %54 : vector<64x1xf32> to vector<64x64xf32>
    %56 = arith.divf %52, %55 : vector<64x64xf32>
    %57 = arith.truncf %56 : vector<64x64xf32> to vector<64x64xbf16>
    %cst_25 = arith.constant dense<0.000000e+00> : vector<64x64xf32>
    %58 = tpu.matmul %57, %42, %cst_25 {dimension_numbers = #tpu.dot_dimension_numbers<[1], [0], [0], [1], [0, 0, 1, 1], [], []>} : vector<64x64xbf16>, vector<64x64xbf16>, vector<64x64xf32> -> vector<64x64xf32>
    %59 = vector.extract_strided_slice %29 {offsets = [0, 64], sizes = [64, 64], strides = [1, 1]} : vector<64x384xf32> to vector<64x64xf32>
    %60 = arith.truncf %59 : vector<64x64xf32> to vector<64x64xbf16>
    %61 = vector.extract_strided_slice %31 {offsets = [0, 64], sizes = [64, 64], strides = [1, 1]} : vector<64x384xf32> to vector<64x64xf32>
    %62 = arith.truncf %61 : vector<64x64xf32> to vector<64x64xbf16>
    %63 = vector.extract_strided_slice %33 {offsets = [0, 64], sizes = [64, 64], strides = [1, 1]} : vector<64x384xf32> to vector<64x64xf32>
    %64 = arith.truncf %63 : vector<64x64xf32> to vector<64x64xbf16>
    %cst_26 = arith.constant dense<0.000000e+00> : vector<64x64xf32>
    %65 = tpu.matmul %60, %62, %cst_26 {dimension_numbers = #tpu.dot_dimension_numbers<[1], [1], [0], [0], [0, 0, 1, 0], [], []>} : vector<64x64xbf16>, vector<64x64xbf16>, vector<64x64xf32> -> vector<64x64xf32>
    %66 = vector.broadcast %2 : f32 to vector<64x64xf32>
    %67 = arith.mulf %65, %66 : vector<64x64xf32>
    %cst_27 = arith.constant -1.000000e+30 : f32
    %68 = vector.broadcast %cst_27 : f32 to vector<64x64xf32>
    %69 = arith.select %36, %67, %68 : vector<64x64xi1>, vector<64x64xf32>
    %cst_28 = arith.constant dense<0xFF800000> : vector<64xf32>
    %70 = vector.multi_reduction <maximumf>, %69, %cst_28 [1] : vector<64x64xf32> to vector<64xf32>
    %71 = vector.shape_cast %70 : vector<64xf32> to vector<64x1xf32>
    %72 = vector.broadcast %71 : vector<64x1xf32> to vector<64x64xf32>
    %73 = arith.subf %69, %72 : vector<64x64xf32>
    %74 = math.exp %73 : vector<64x64xf32>
    %cst_29 = arith.constant dense<0.000000e+00> : vector<64xf32>
    %75 = vector.multi_reduction <add>, %74, %cst_29 [1] : vector<64x64xf32> to vector<64xf32>
    %76 = vector.shape_cast %75 : vector<64xf32> to vector<64x1xf32>
    %77 = vector.broadcast %76 : vector<64x1xf32> to vector<64x64xf32>
    %78 = arith.divf %74, %77 : vector<64x64xf32>
    %79 = arith.truncf %78 : vector<64x64xf32> to vector<64x64xbf16>
    %cst_30 = arith.constant dense<0.000000e+00> : vector<64x64xf32>
    %80 = tpu.matmul %79, %64, %cst_30 {dimension_numbers = #tpu.dot_dimension_numbers<[1], [0], [0], [1], [0, 0, 1, 1], [], []>} : vector<64x64xbf16>, vector<64x64xbf16>, vector<64x64xf32> -> vector<64x64xf32>
    %81 = vector.extract_strided_slice %29 {offsets = [0, 128], sizes = [64, 64], strides = [1, 1]} : vector<64x384xf32> to vector<64x64xf32>
    %82 = arith.truncf %81 : vector<64x64xf32> to vector<64x64xbf16>
    %83 = vector.extract_strided_slice %31 {offsets = [0, 128], sizes = [64, 64], strides = [1, 1]} : vector<64x384xf32> to vector<64x64xf32>
    %84 = arith.truncf %83 : vector<64x64xf32> to vector<64x64xbf16>
    %85 = vector.extract_strided_slice %33 {offsets = [0, 128], sizes = [64, 64], strides = [1, 1]} : vector<64x384xf32> to vector<64x64xf32>
    %86 = arith.truncf %85 : vector<64x64xf32> to vector<64x64xbf16>
    %cst_31 = arith.constant dense<0.000000e+00> : vector<64x64xf32>
    %87 = tpu.matmul %82, %84, %cst_31 {dimension_numbers = #tpu.dot_dimension_numbers<[1], [1], [0], [0], [0, 0, 1, 0], [], []>} : vector<64x64xbf16>, vector<64x64xbf16>, vector<64x64xf32> -> vector<64x64xf32>
    %88 = vector.broadcast %2 : f32 to vector<64x64xf32>
    %89 = arith.mulf %87, %88 : vector<64x64xf32>
    %cst_32 = arith.constant -1.000000e+30 : f32
    %90 = vector.broadcast %cst_32 : f32 to vector<64x64xf32>
    %91 = arith.select %36, %89, %90 : vector<64x64xi1>, vector<64x64xf32>
    %cst_33 = arith.constant dense<0xFF800000> : vector<64xf32>
    %92 = vector.multi_reduction <maximumf>, %91, %cst_33 [1] : vector<64x64xf32> to vector<64xf32>
    %93 = vector.shape_cast %92 : vector<64xf32> to vector<64x1xf32>
    %94 = vector.broadcast %93 : vector<64x1xf32> to vector<64x64xf32>
    %95 = arith.subf %91, %94 : vector<64x64xf32>
    %96 = math.exp %95 : vector<64x64xf32>
    %cst_34 = arith.constant dense<0.000000e+00> : vector<64xf32>
    %97 = vector.multi_reduction <add>, %96, %cst_34 [1] : vector<64x64xf32> to vector<64xf32>
    %98 = vector.shape_cast %97 : vector<64xf32> to vector<64x1xf32>
    %99 = vector.broadcast %98 : vector<64x1xf32> to vector<64x64xf32>
    %100 = arith.divf %96, %99 : vector<64x64xf32>
    %101 = arith.truncf %100 : vector<64x64xf32> to vector<64x64xbf16>
    %cst_35 = arith.constant dense<0.000000e+00> : vector<64x64xf32>
    %102 = tpu.matmul %101, %86, %cst_35 {dimension_numbers = #tpu.dot_dimension_numbers<[1], [0], [0], [1], [0, 0, 1, 1], [], []>} : vector<64x64xbf16>, vector<64x64xbf16>, vector<64x64xf32> -> vector<64x64xf32>
    %103 = vector.extract_strided_slice %29 {offsets = [0, 192], sizes = [64, 64], strides = [1, 1]} : vector<64x384xf32> to vector<64x64xf32>
    %104 = arith.truncf %103 : vector<64x64xf32> to vector<64x64xbf16>
    %105 = vector.extract_strided_slice %31 {offsets = [0, 192], sizes = [64, 64], strides = [1, 1]} : vector<64x384xf32> to vector<64x64xf32>
    %106 = arith.truncf %105 : vector<64x64xf32> to vector<64x64xbf16>
    %107 = vector.extract_strided_slice %33 {offsets = [0, 192], sizes = [64, 64], strides = [1, 1]} : vector<64x384xf32> to vector<64x64xf32>
    %108 = arith.truncf %107 : vector<64x64xf32> to vector<64x64xbf16>
    %cst_36 = arith.constant dense<0.000000e+00> : vector<64x64xf32>
    %109 = tpu.matmul %104, %106, %cst_36 {dimension_numbers = #tpu.dot_dimension_numbers<[1], [1], [0], [0], [0, 0, 1, 0], [], []>} : vector<64x64xbf16>, vector<64x64xbf16>, vector<64x64xf32> -> vector<64x64xf32>
    %110 = vector.broadcast %2 : f32 to vector<64x64xf32>
    %111 = arith.mulf %109, %110 : vector<64x64xf32>
    %cst_37 = arith.constant -1.000000e+30 : f32
    %112 = vector.broadcast %cst_37 : f32 to vector<64x64xf32>
    %113 = arith.select %36, %111, %112 : vector<64x64xi1>, vector<64x64xf32>
    %cst_38 = arith.constant dense<0xFF800000> : vector<64xf32>
    %114 = vector.multi_reduction <maximumf>, %113, %cst_38 [1] : vector<64x64xf32> to vector<64xf32>
    %115 = vector.shape_cast %114 : vector<64xf32> to vector<64x1xf32>
    %116 = vector.broadcast %115 : vector<64x1xf32> to vector<64x64xf32>
    %117 = arith.subf %113, %116 : vector<64x64xf32>
    %118 = math.exp %117 : vector<64x64xf32>
    %cst_39 = arith.constant dense<0.000000e+00> : vector<64xf32>
    %119 = vector.multi_reduction <add>, %118, %cst_39 [1] : vector<64x64xf32> to vector<64xf32>
    %120 = vector.shape_cast %119 : vector<64xf32> to vector<64x1xf32>
    %121 = vector.broadcast %120 : vector<64x1xf32> to vector<64x64xf32>
    %122 = arith.divf %118, %121 : vector<64x64xf32>
    %123 = arith.truncf %122 : vector<64x64xf32> to vector<64x64xbf16>
    %cst_40 = arith.constant dense<0.000000e+00> : vector<64x64xf32>
    %124 = tpu.matmul %123, %108, %cst_40 {dimension_numbers = #tpu.dot_dimension_numbers<[1], [0], [0], [1], [0, 0, 1, 1], [], []>} : vector<64x64xbf16>, vector<64x64xbf16>, vector<64x64xf32> -> vector<64x64xf32>
    %125 = vector.extract_strided_slice %29 {offsets = [0, 256], sizes = [64, 64], strides = [1, 1]} : vector<64x384xf32> to vector<64x64xf32>
    %126 = arith.truncf %125 : vector<64x64xf32> to vector<64x64xbf16>
    %127 = vector.extract_strided_slice %31 {offsets = [0, 256], sizes = [64, 64], strides = [1, 1]} : vector<64x384xf32> to vector<64x64xf32>
    %128 = arith.truncf %127 : vector<64x64xf32> to vector<64x64xbf16>
    %129 = vector.extract_strided_slice %33 {offsets = [0, 256], sizes = [64, 64], strides = [1, 1]} : vector<64x384xf32> to vector<64x64xf32>
    %130 = arith.truncf %129 : vector<64x64xf32> to vector<64x64xbf16>
    %cst_41 = arith.constant dense<0.000000e+00> : vector<64x64xf32>
    %131 = tpu.matmul %126, %128, %cst_41 {dimension_numbers = #tpu.dot_dimension_numbers<[1], [1], [0], [0], [0, 0, 1, 0], [], []>} : vector<64x64xbf16>, vector<64x64xbf16>, vector<64x64xf32> -> vector<64x64xf32>
    %132 = vector.broadcast %2 : f32 to vector<64x64xf32>
    %133 = arith.mulf %131, %132 : vector<64x64xf32>
    %cst_42 = arith.constant -1.000000e+30 : f32
    %134 = vector.broadcast %cst_42 : f32 to vector<64x64xf32>
    %135 = arith.select %36, %133, %134 : vector<64x64xi1>, vector<64x64xf32>
    %cst_43 = arith.constant dense<0xFF800000> : vector<64xf32>
    %136 = vector.multi_reduction <maximumf>, %135, %cst_43 [1] : vector<64x64xf32> to vector<64xf32>
    %137 = vector.shape_cast %136 : vector<64xf32> to vector<64x1xf32>
    %138 = vector.broadcast %137 : vector<64x1xf32> to vector<64x64xf32>
    %139 = arith.subf %135, %138 : vector<64x64xf32>
    %140 = math.exp %139 : vector<64x64xf32>
    %cst_44 = arith.constant dense<0.000000e+00> : vector<64xf32>
    %141 = vector.multi_reduction <add>, %140, %cst_44 [1] : vector<64x64xf32> to vector<64xf32>
    %142 = vector.shape_cast %141 : vector<64xf32> to vector<64x1xf32>
    %143 = vector.broadcast %142 : vector<64x1xf32> to vector<64x64xf32>
    %144 = arith.divf %140, %143 : vector<64x64xf32>
    %145 = arith.truncf %144 : vector<64x64xf32> to vector<64x64xbf16>
    %cst_45 = arith.constant dense<0.000000e+00> : vector<64x64xf32>
    %146 = tpu.matmul %145, %130, %cst_45 {dimension_numbers = #tpu.dot_dimension_numbers<[1], [0], [0], [1], [0, 0, 1, 1], [], []>} : vector<64x64xbf16>, vector<64x64xbf16>, vector<64x64xf32> -> vector<64x64xf32>
    %147 = vector.extract_strided_slice %29 {offsets = [0, 320], sizes = [64, 64], strides = [1, 1]} : vector<64x384xf32> to vector<64x64xf32>
    %148 = arith.truncf %147 : vector<64x64xf32> to vector<64x64xbf16>
    %149 = vector.extract_strided_slice %31 {offsets = [0, 320], sizes = [64, 64], strides = [1, 1]} : vector<64x384xf32> to vector<64x64xf32>
    %150 = arith.truncf %149 : vector<64x64xf32> to vector<64x64xbf16>
    %151 = vector.extract_strided_slice %33 {offsets = [0, 320], sizes = [64, 64], strides = [1, 1]} : vector<64x384xf32> to vector<64x64xf32>
    %152 = arith.truncf %151 : vector<64x64xf32> to vector<64x64xbf16>
    %cst_46 = arith.constant dense<0.000000e+00> : vector<64x64xf32>
    %153 = tpu.matmul %148, %150, %cst_46 {dimension_numbers = #tpu.dot_dimension_numbers<[1], [1], [0], [0], [0, 0, 1, 0], [], []>} : vector<64x64xbf16>, vector<64x64xbf16>, vector<64x64xf32> -> vector<64x64xf32>
    %154 = vector.broadcast %2 : f32 to vector<64x64xf32>
    %155 = arith.mulf %153, %154 : vector<64x64xf32>
    %cst_47 = arith.constant -1.000000e+30 : f32
    %156 = vector.broadcast %cst_47 : f32 to vector<64x64xf32>
    %157 = arith.select %36, %155, %156 : vector<64x64xi1>, vector<64x64xf32>
    %cst_48 = arith.constant dense<0xFF800000> : vector<64xf32>
    %158 = vector.multi_reduction <maximumf>, %157, %cst_48 [1] : vector<64x64xf32> to vector<64xf32>
    %159 = vector.shape_cast %158 : vector<64xf32> to vector<64x1xf32>
    %160 = vector.broadcast %159 : vector<64x1xf32> to vector<64x64xf32>
    %161 = arith.subf %157, %160 : vector<64x64xf32>
    %162 = math.exp %161 : vector<64x64xf32>
    %cst_49 = arith.constant dense<0.000000e+00> : vector<64xf32>
    %163 = vector.multi_reduction <add>, %162, %cst_49 [1] : vector<64x64xf32> to vector<64xf32>
    %164 = vector.shape_cast %163 : vector<64xf32> to vector<64x1xf32>
    %165 = vector.broadcast %164 : vector<64x1xf32> to vector<64x64xf32>
    %166 = arith.divf %162, %165 : vector<64x64xf32>
    %167 = arith.truncf %166 : vector<64x64xf32> to vector<64x64xbf16>
    %cst_50 = arith.constant dense<0.000000e+00> : vector<64x64xf32>
    %168 = tpu.matmul %167, %152, %cst_50 {dimension_numbers = #tpu.dot_dimension_numbers<[1], [0], [0], [1], [0, 0, 1, 1], [], []>} : vector<64x64xbf16>, vector<64x64xbf16>, vector<64x64xf32> -> vector<64x64xf32>
    %169 = tpu.concatenate %58, %80, %102, %124, %146, %168 in 1 : vector<64x64xf32>, vector<64x64xf32>, vector<64x64xf32>, vector<64x64xf32>, vector<64x64xf32>, vector<64x64xf32> -> vector<64x384xf32>
    %170 = arith.truncf %169 : vector<64x384xf32> to vector<64x384xbf16>
    %c0_51 = arith.constant 0 : index
    %c0_52 = arith.constant 0 : index
    %171 = vector.load %arg8[%c0_51, %c0_52] : memref<384x384xbf16, #tpu.memory_space<vmem>>, vector<384x384xbf16>
    %cst_53 = arith.constant dense<0.000000e+00> : vector<64x384xf32>
    %172 = tpu.matmul %170, %171, %cst_53 {dimension_numbers = #tpu.dot_dimension_numbers<[1], [0], [0], [1], [0, 0, 1, 1], [], []>} : vector<64x384xbf16>, vector<384x384xbf16>, vector<64x384xf32> -> vector<64x384xf32>
    %c0_54 = arith.constant 0 : index
    %c0_55 = arith.constant 0 : index
    %173 = vector.load %arg9[%c0_54, %c0_55] : memref<1x384xf32, #tpu.memory_space<vmem>>, vector<1x384xf32>
    %174 = vector.broadcast %173 : vector<1x384xf32> to vector<64x384xf32>
    %175 = arith.addf %172, %174 : vector<64x384xf32>
    %176 = arith.addf %1, %175 : vector<64x384xf32>
    %c0_56 = arith.constant 0 : index
    %c0_57 = arith.constant 0 : index
    %c0_58 = arith.constant 0 : index
    %177 = vector.load %arg10[%c0_56, %c0_57, %c0_58] : memref<1x64x384xf32, #tpu.memory_space<vmem>>, vector<1x64x384xf32>
    %178 = vector.shape_cast %177 : vector<1x64x384xf32> to vector<64x384xf32>
    %179 = vector.shape_cast %176 : vector<64x384xf32> to vector<1x64x384xf32>
    tpu.vector_store %arg10[%c0_56, %c0_57, %c0_58], %179 {strides = array<i32>} : memref<1x64x384xf32, #tpu.memory_space<vmem>>, vector<1x64x384xf32>,
    return
  }
  func.func @transform_0(%arg0: i32, %arg1: memref<1xi32, #tpu.memory_space<smem>>) -> (i32, i32, i32) {
    %c0_i32 = arith.constant 0 : i32
    %c0_i32_0 = arith.constant 0 : i32
    %c0_i32_1 = arith.constant 0 : i32
    return %arg0, %c0_i32, %c0_i32_0 : i32, i32, i32
  }
  func.func @transform_1(%arg0: i32, %arg1: memref<1xi32, #tpu.memory_space<smem>>) -> (i32, i32) {
    %c0_i32 = arith.constant 0 : i32
    %c0_i32_0 = arith.constant 0 : i32
    %c0_i32_1 = arith.constant 0 : i32
    return %c0_i32, %c0_i32_0 : i32, i32
  }
  func.func @transform_2(%arg0: i32, %arg1: memref<1xi32, #tpu.memory_space<smem>>) -> (i32, i32) {
    %c0_i32 = arith.constant 0 : i32
    %c0_i32_0 = arith.constant 0 : i32
    %c0_i32_1 = arith.constant 0 : i32
    return %c0_i32, %c0_i32_0 : i32, i32
  }
  func.func @transform_3(%arg0: i32, %arg1: memref<1xi32, #tpu.memory_space<smem>>) -> (i32, i32) {
    %c0_i32 = arith.constant 0 : i32
    %c0_i32_0 = arith.constant 0 : i32
    %c0_i32_1 = arith.constant 0 : i32
    return %c0_i32, %c0_i32_0 : i32, i32
  }
  func.func @transform_4(%arg0: i32, %arg1: memref<1xi32, #tpu.memory_space<smem>>) -> (i32, i32) {
    %c0_i32 = arith.constant 0 : i32
    %c0_i32_0 = arith.constant 0 : i32
    %c0_i32_1 = arith.constant 0 : i32
    return %c0_i32, %c0_i32_0 : i32, i32
  }
  func.func @transform_5(%arg0: i32, %arg1: memref<1xi32, #tpu.memory_space<smem>>) -> (i32, i32) {
    %c0_i32 = arith.constant 0 : i32
    %c0_i32_0 = arith.constant 0 : i32
    %c0_i32_1 = arith.constant 0 : i32
    return %c0_i32, %c0_i32_0 : i32, i32
  }
  func.func @transform_6(%arg0: i32, %arg1: memref<1xi32, #tpu.memory_space<smem>>) -> (i32, i32) {
    %c0_i32 = arith.constant 0 : i32
    %c0_i32_0 = arith.constant 0 : i32
    %c0_i32_1 = arith.constant 0 : i32
    return %c0_i32, %c0_i32_0 : i32, i32
  }
  func.func @transform_7(%arg0: i32, %arg1: memref<1xi32, #tpu.memory_space<smem>>) -> (i32, i32) {
    %c0_i32 = arith.constant 0 : i32
    %c0_i32_0 = arith.constant 0 : i32
    %c0_i32_1 = arith.constant 0 : i32
    return %c0_i32, %c0_i32_0 : i32, i32
  }
  func.func @transform_8(%arg0: i32, %arg1: memref<1xi32, #tpu.memory_space<smem>>) -> (i32, i32, i32) {
    %c0_i32 = arith.constant 0 : i32
    %c0_i32_0 = arith.constant 0 : i32
    %c0_i32_1 = arith.constant 0 : i32
    return %arg0, %c0_i32, %c0_i32_0 : i32, i32, i32
  }
}

</mosaic_0001>

<bundles_post_ra>
// kernel: tpu_custom_call.1
= control target key start
LH: loop header
LB: loop body
LE: loop exit
PB: predicated region body
PF: predicated region fallthrough
CT: control target
= control target key end

     0   :  { %15 = vsyncpa [#allocation5], 0  ;;  %s9840_s0 = inlined_call_operand.<no memory space> [shape: s32[1], index: 0, kind: input, shape index: {}]   ;;  %s9841_s1 = inlined_call_operand.hbm [shape: f32[2,64,384], index: 1, kind: input, shape index: {}]   ;;  %s9842_s2 = inlined_call_operand.vmem [shape: f32[1,384], index: 2, kind: input, shape index: {}]   ;;  %s9843_s3 = inlined_call_operand.vmem [shape: f32[1,384], index: 3, kind: input, shape index: {}]   ;;  %s9844_s4 = inlined_call_operand.hbm [shape: bf16[384,384], index: 4, kind: input, shape index: {}]   ;;  %s9845_s5 = inlined_call_operand.hbm [shape: bf16[384,384], index: 5, kind: input, shape index: {}]   ;;  %s9846_s6 = inlined_call_operand.hbm [shape: bf16[384,384], index: 6, kind: input, shape index: {}]   ;;  %s9847_s7 = inlined_call_operand.hbm [shape: bf16[384,384], index: 7, kind: input, shape index: {}]   ;;  %s9848_s8 = inlined_call_operand.vmem [shape: f32[1,384], index: 8, kind: input, shape index: {}]   ;;  %s9849_s9 = inlined_call_operand.hbm [shape: f32[2,64,384], index: 9, kind: output, shape index: {}]  }
   0x1   :  { %17 = vsyncpa [#allocation5 + $0x1], 0 }
   0x2   :  { %18 = vsyncpa [#allocation8], 0 }
   0x3   :  { %19 = vsyncpa [#allocation11], 0 }
   0x4   :  { %20 = vsyncpa [#allocation6], 0 }
   0x5   :  { %22 = vsyncpa [#allocation6 + $0x1], 0  ;;  %s7960_s29 = smov 0   ;;  %s7962_s30 = smov 0  }
   0x6   :  { %s7964_s10 = smov 0   ;;  %s7966_s11 = smov 0  }
   0x7 LB: > { %9872 = sst [smem:[#allocation18_spill]] %s7882_s29  ;;  %s7981_s12 = sadd.s32 4294967295, %s7894_s11   ;;  %s7894_s11 = sphi %s7966_s11, %s9972_s11   ;;  %s7890_s10 = sphi %s7964_s10, %s9971_s10   ;;  %s7886_s30 = sphi %s7962_s30, %s9970_s30   ;;  %s7882_s29 = sphi %s7960_s29, %s9969_s29  }
   0x8   : > { %s5838_s13 = sadd.s32 4294967294, %s7894_s11   ;;  %p48_p0 = scmp.ne.s32.totalorder %s7886_s30, %s7882_s29 }
   0x9   : > { %p9850_p1 = scmp.eq.s32.totalorder %s7981_s12, 0  ;;  %p225_p3 = scmp.eq.s32.totalorder %s5838_s13, 1 }
   0xa   : > { %p5839_p5 = scmp.ge.s32.totalorder %s7894_s11, 1  ;;  %p232_p7 = scmp.lt.s32.totalorder %s7894_s11, 3 }
   0xb   : > { %p7990_p4 = por %p9850_p1, %p48_p0  ;;  %p7995_p6 = por %p225_p3, %p48_p0 }
   0xc   : > { %p8000_p8 = pnand %p5839_p5, %p232_p7  ;;  %s7896_s17 = smov [#allocation7]  }
   0xd   : > { %s9873_s14 = scalar_select %p7990_p4, 1, 0 }
   0xe   : > { %s9874_s15 = scalar_select %p7995_p6, 1, 0 }
   0xf   : > { %s9876_s16 = scalar_select %p8000_p8, 1, 0 }
  0x10   : > { %9875 = sst [smem:[#allocation19_spill]] %s9874_s15  ;;  %s250_s18 = sshll.u32 %s7896_s17, 4  ;;  %s8004_s18 = int_to_ptr.vmem [resolvable:$true] %s250_s18 }
  0x11   : > { %p6926_p9 = pneg %p8000_p8  ;;  %s7897_s20 = smov [#allocation10]  }
  0x12   : > { %s276_s21 = sshll.u32 %s7897_s20, 4  ;;  %s7898_s22 = smov [#allocation9]   ;;  %s8015_s21 = int_to_ptr.vmem [resolvable:$true] %s276_s21 }
  0x13   : > { %p8011_p11 = pnand %p6926_p9, %p9850_p1  ;;  %s8017_s23 = sshll.u32 %s7898_s22, 4  ;;  %s264_s23 = int_to_ptr.vmem [resolvable:$true] %s8017_s23 }
  0x14   : > { %s7678_s25 = scalar_lea.hbm %s9844_s4, 9216 }
  0x15   : > { %p7679_p12 = scmp.ne.s32.totalorder %s9844_s4, %s7678_s25  ;;  %p8027_p13 = pneg %p8011_p11 }
  0x16   : > { %p7685_p5 = scmp.lt.u32.totalorder %s7678_s25, %s9844_s4 }
  0x17   : > { %p7681_p0 = pnand %p8027_p13, %p7679_p12 }
  0x19   : > { %p7682_p3 = pneg %p7681_p0 }
  0x1b   : > { %p7687_p7 = pnand %p7685_p5, %p7682_p3 }
  0x1d   : > { %7690 = shalt.err (!%p7687_p7)
}
  0x1e   : > { %s7691_s20 = scalar_lea.vmem %s8004_s18, 9216  ;;  %p7699_p2 = scmp.lt.s32.totalorder %s8004_s18, %s8004_s18 }
  0x1f   : > { %p7692_p9 = scmp.ne.s32.totalorder %s8004_s18, %s7691_s20  ;;  %p7700_p6 = scmp.lt.s32.totalorder %s7691_s20, %s7691_s20 }
  0x21   : > { %p7694_p10 = pnand %p7692_p9, %p8027_p13  ;;  %p7701_p12 = por %p7700_p6, %p7699_p2 }
  0x23   : > { %p7695_p1 = pneg %p7694_p10 }
  0x25   : > { %p7702_p0 = pnand %p7701_p12, %p7695_p1 }
  0x27   : > { %7705 = shalt.err (!%p7702_p0)
}
  0x28   : > { %s7899_s22 = smov 192   ;;  %s7900_s24 = smov 12  }
  0x29   : > { %6929 = dma.hbm_to_vmem [thread:$0]  (!%p8011_p11), %s9844_s4, 9216, %s8004_s18, [#allocation8], %s7899_s22, %s7899_s22, %s7900_s24  }
  0x2a   : > { %s7706_s13 = scalar_lea.hbm %s9846_s6, 9216 }
  0x2b   : > { %p7707_p1 = scmp.ne.s32.totalorder %s9846_s6, %s7706_s13  ;;  %p7713_p10 = scmp.lt.u32.totalorder %s7706_s13, %s9846_s6 }
  0x2d   : > { %p7709_p2 = pnand %p7707_p1, %p8027_p13 }
  0x2f   : > { %p7710_p6 = pneg %p7709_p2 }
  0x31   : > { %p7715_p3 = pnand %p7713_p10, %p7710_p6 }
  0x33   : > { %7718 = shalt.err (!%p7715_p3)
}
  0x34   : > { %s7719_s18 = scalar_lea.vmem %s8015_s21, 9216  ;;  %p7727_p12 = scmp.lt.s32.totalorder %s8015_s21, %s8015_s21 }
  0x35   : > { %p7720_p5 = scmp.ne.s32.totalorder %s8015_s21, %s7719_s18  ;;  %p7728_p0 = scmp.lt.s32.totalorder %s7719_s18, %s7719_s18 }
  0x37   : > { %p7722_p7 = pnand %p7720_p5, %p8027_p13  ;;  %p7729_p1 = por %p7728_p0, %p7727_p12 }
  0x39   : > { %p7723_p9 = pneg %p7722_p7 }
  0x3b   : > { %p7730_p2 = pnand %p7729_p1, %p7723_p9 }
  0x3d   : > { %7733 = shalt.err (!%p7730_p2)
}
  0x3e   : > { %6935 = dma.hbm_to_vmem [thread:$0]  (!%p8011_p11), %s9846_s6, 9216, %s8015_s21, [#allocation11], %s7899_s22, %s7899_s22, %s7900_s24  }
  0x3f   : > { %s7734_s26 = scalar_lea.hbm %s9845_s5, 9216 }
  0x40   : > { %p7735_p6 = scmp.ne.s32.totalorder %s9845_s5, %s7734_s26  ;;  %p7741_p5 = scmp.lt.u32.totalorder %s7734_s26, %s9845_s5 }
  0x42   : > { %p7737_p10 = pnand %p7735_p6, %p8027_p13 }
  0x44   : > { %p7738_p3 = pneg %p7737_p10 }
  0x46   : > { %p7743_p7 = pnand %p7741_p5, %p7738_p3 }
  0x48   : > { %7746 = shalt.err (!%p7743_p7)
}
  0x49   : > { %s7747_s18 = scalar_lea.vmem %s264_s23, 9216  ;;  %p7755_p1 = scmp.lt.s32.totalorder %s264_s23, %s264_s23 }
  0x4a   : > { %p7748_p9 = scmp.ne.s32.totalorder %s264_s23, %s7747_s18  ;;  %p7756_p2 = scmp.lt.s32.totalorder %s7747_s18, %s7747_s18 }
  0x4c   : > { %p7750_p12 = pnand %p7748_p9, %p8027_p13  ;;  %p7757_p4 = por %p7756_p2, %p7755_p1 }
  0x4e   : > { %p7751_p0 = pneg %p7750_p12 }
  0x50   : > { %p7758_p8 = pnand %p7757_p4, %p7751_p0 }
  0x52   : > { %7761 = shalt.err (!%p7758_p8)
}
  0x53   : > { %6932 = dma.hbm_to_vmem [thread:$0]  (!%p8011_p11), %s9845_s5, 9216, %s264_s23, [#allocation8], %s7899_s22, %s7899_s22, %s7900_s24  }
  0x54   : > { %s7901_s15 = smov [#allocation12]   ;;  %s7762_s27 = scalar_lea.hbm %s9847_s7, 9216 }
  0x55   : > { %s289_s0 = sshll.u32 %s7901_s15, 4  ;;  %p7763_p4 = scmp.ne.s32.totalorder %s9847_s7, %s7762_s27  ;;  %s290_s0 = int_to_ptr.vmem [resolvable:$true] %s289_s0 }
  0x56   : > { %p7769_p10 = scmp.lt.u32.totalorder %s7762_s27, %s9847_s7 }
  0x57   : > { %p7765_p8 = pnand %p7763_p4, %p8027_p13 }
  0x59   : > { %p7766_p6 = pneg %p7765_p8 }
  0x5b   : > { %p7771_p3 = pnand %p7769_p10, %p7766_p6 }
  0x5d   : > { %7774 = shalt.err (!%p7771_p3)
}
  0x5e   : > { %s7775_s23 = scalar_lea.vmem %s290_s0, 9216  ;;  %p7783_p12 = scmp.lt.s32.totalorder %s290_s0, %s290_s0 }
  0x5f   : > { %p7776_p5 = scmp.ne.s32.totalorder %s290_s0, %s7775_s23  ;;  %p7784_p0 = scmp.lt.s32.totalorder %s7775_s23, %s7775_s23 }
  0x61   : > { %p7778_p7 = pnand %p7776_p5, %p8027_p13  ;;  %p7785_p1 = por %p7784_p0, %p7783_p12 }
  0x63   : > { %p7779_p9 = pneg %p7778_p7 }
  0x65   : > { %p7786_p2 = pnand %p7785_p1, %p7779_p9 }
  0x67   : > { %7789 = shalt.err (!%p7786_p2)
}
  0x68   : > { %6938 = dma.hbm_to_vmem [thread:$0]  (!%p8011_p11), %s9847_s7, 9216, %s290_s0, [#allocation11], %s7899_s22, %s7899_s22, %s7900_s24  }
  0x69   : > { %s8121_s28 = sadd.s32 1, %s7894_s11   ;;  %s35_s19 = sadd.s32 1, %s7890_s10 }
  0x6a   : > { %s32_s15 = ssub.s32 %s7894_s11, %s8121_s28  ;;  %p42_p13 = scmp.ne.s32.totalorder %s7890_s10, %s7886_s30 }
  0x6b   : > { %p33_p4 = scmp.eq.s32.totalorder %s32_s15, 0  ;;  %p43_p8 = scmp.eq.s32.totalorder %s7894_s11, 0 }
  0x6c   : > { %p9879_p6 = scmp.eq.s32.totalorder %s7981_s12, 1  ;;  %p6951_p3 = scmp.lt.s32.totalorder %s7894_s11, 2 }
  0x6d   : > { %s8137_s26 = scalar_select %p33_p4, %s7890_s10, %s35_s19  }
  0x6e   : > { %p8131_p10 = por %p9879_p6, %p42_p13  ;;  %p44_p5 = por %p43_p8, %p42_p13 }
  0x6f   : > { %s306_s27 = sand.u32 1, %s7890_s10   ;;  %s6903_s22 = smul.u32 3072, %s7894_s11 }
  0x70   : > { %s6902_s13 = smul.u32 192, %s306_s27  ;;  %p8141_p11 = pnand %p6951_p3, %p44_p5 }
  0x71   : > { %s8148_s20 = scalar_lea.hbm %s9841_s1, %s6903_s22  ;;  %s8152_s21 = scalar_lea.sflag [#allocation5], %s306_s27 }
  0x72   : > { %s310_s18 = scalar_lea.vmem [#allocation4], %s6902_s13  ;;  %s7790_s29 = scalar_lea.hbm %s8148_s20, 3072 }
  0x73   : > { %s317_s23 = sshll.u32 %s310_s18, 4  ;;  %p7791_p7 = scmp.ne.s32.totalorder %s8148_s20, %s7790_s29  ;;  %s8150_s23 = int_to_ptr.vmem [resolvable:$true] %s317_s23 }
  0x74   : > { %p7792_p9 = pneg %p8141_p11  ;;  %s7795_s22 = scalar_lea.hbm %s9841_s1, 6144 }
  0x75   : > { %p7796_p1 = scmp.lt.u32.totalorder %s8148_s20, %s9841_s1  ;;  %p7797_p2 = scmp.lt.u32.totalorder %s7795_s22, %s7790_s29 }
  0x76   : > { %p7793_p12 = pnand %p7792_p9, %p7791_p7  ;;  %p7799_p4 = scmp.lt.u32.totalorder %s7790_s29, %s8148_s20 }
  0x77   : > { %p7798_p13 = por %p7797_p2, %p7796_p1 }
  0x78   : > { %p7794_p0 = pneg %p7793_p12 }
  0x79   : > { %p7800_p8 = por %p7799_p4, %p7798_p13 }
  0x7b   : > { %p7801_p6 = pnand %p7800_p8, %p7794_p0 }
  0x7d   : > { %7804 = shalt.err (!%p7801_p6)
}
  0x7e   : > { %s7805_s27 = scalar_lea.vmem %s8150_s23, 3072  ;;  %s7902_s13 = smov [#allocation4]  }
  0x7f   : > { %p7806_p3 = scmp.ne.s32.totalorder %s8150_s23, %s7805_s27  ;;  %s7810_s18 = sshll.u32 %s7902_s13, 4  ;;  %s7811_s18 = int_to_ptr.vmem [resolvable:$false] %s7810_s18 }
  0x80   : > { %s7812_s19 = scalar_lea.vmem %s7811_s18, 6144  ;;  %p7813_p12 = scmp.lt.s32.totalorder %s8150_s23, %s7811_s18 }
  0x81   : > { %p7808_p5 = pnand %p7806_p3, %p7792_p9  ;;  %p7814_p1 = scmp.lt.s32.totalorder %s7812_s19, %s7805_s27 }
  0x83   : > { %p7809_p7 = pneg %p7808_p5  ;;  %p7815_p2 = por %p7814_p1, %p7813_p12 }
  0x85   : > { %p7816_p13 = pnand %p7815_p2, %p7809_p7 }
  0x87   : > { %7819 = shalt.err (!%p7816_p13)
}
  0x88   : > { %s7903_s29 = smov 384   ;;  %s7904_s15 = smov 24  }
  0x89   : > { %6942 = dma.hbm_to_vmem [thread:$0]  (!%p8141_p11), %s8148_s20, 3072, %s8150_s23, %s8152_s21, %s7903_s29, %s7903_s29, %s7904_s15  }
  0x8a   : > { %p9882_p9 = scmp.ne.s32.totalorder %s9876_s16, 0 }
  0x8c   : > { %329 = sbr.rel (%p9882_p9) target bundleno = 3995 (0xf9b), region = 52 }
  0x93   : > { %s8183_s22 = sand.u32 1, %s7886_s30   ;;  %p9883_p0 = scmp.ne.s32.totalorder %s9873_s14, 0 }
  0x94   : > { %s6904_s0 = smul.u32 192, %s8183_s22  ;;  %s332_s17 = scalar_lea.sflag [#allocation5], %s8183_s22 }
  0x96   : > { %s8189_s27 = scalar_lea.vmem [#allocation4], %s6904_s0 }
  0x97   : > { %7865 = dma.done.wait (%p9883_p0), %s332_s17, 3072  }
  0x98   : > { %7867 = vsyncadd (%p9883_p0), %s332_s17, 4294964224  ;;  %p9884_p11 = scmp.eq.s32.totalorder %s7981_s12, 0 }
  0x9a   : > { %7869 = dma.done.wait (%p9884_p11), [#allocation8], 18432   ;;  %p9885_p4 = pmov %p9884_p11 }
  0x9c   : > { %7871 = vsyncadd (%p9885_p4), [#allocation8], 4294948864  ;;  %p9886_p8 = pmov %p9885_p4 }
  0x9d   : > { %p9887_p6 = pmov %p9885_p4 }
  0x9e   : > { %7873 = dma.done.wait (%p9886_p8), [#allocation11], 18432  }
  0x9f   : > { %7875 = vsyncadd (%p9887_p6), [#allocation11], 4294948864  ;;  %v8204_v0 = vld [vmem:[%s8189_s27] sm:$0xff]  ;;  %v8207_v1 = vld [vmem:[%s8189_s27 + $0x8] sm:$0xff]  ;;  %vm2971_vm0 = vcmask 523264   ;;  %s7906_s23 = smov 64  }
  0xa0   : > { %v8210_v2 = vld [vmem:[%s8189_s27 + $0x10] sm:$0xff]  ;;  %v411_v3 = vadd.f32 %v8207_v1, %v8204_v0  ;;  %v8218_v5 = vld [vmem:[%s8189_s27 + $0x38] sm:$0xff]  ;;  %v8221_v6 = vld [vmem:[%s8189_s27 + $0x40] sm:$0xff]  ;;  %s9710_s18 = scalar_lea.vmem [#allocation13], %s6904_s0  ;;  %s6905_s19 = smul.u32 3072, %s7981_s12 }
  0xa1   : > { %v8215_v4 = vld [vmem:[%s8189_s27 + $0x30] sm:$0xff]  ;;  %v8226_v8 = vld [vmem:[%s8189_s27 + $0x18] sm:$0xff]  ;;  %v8229_v9 = vld [vmem:[%s8189_s27 + $0x20] sm:$0xff]  ;;  %s5727_s29 = sshll.u32 %s9710_s18, 4  ;;  %s5714_s17 = scalar_lea.sflag [#allocation6], %s8183_s22  ;;  %s9794_s29 = int_to_ptr.vmem [resolvable:$true] %s5727_s29 }
  0xa2   : > { %v419_v7 = vadd.f32 %v8218_v5, %v8215_v4  ;;  %v8232_v10 = vld [vmem:[%s8189_s27 + $0x28] sm:$0xff]  ;;  %v412_v11 = vadd.f32 %v411_v3, %v8210_v2  ;;  %v415_v12 = vadd.f32 %v8229_v9, %v8226_v8  ;;  %v8241_v14 = vld [vmem:[%s8189_s27 + $0x50] sm:$0xff]  ;;  %v8244_v15 = vld [vmem:[%s8189_s27 + $0x58] sm:$0xff]  ;;  %s9790_s0 = scalar_lea.hbm %s9849_s9, %s6905_s19  ;;  %s7820_s14 = scalar_lea.vmem %s9794_s29, 3072 }
  0xa3   : > { %v8238_v13 = vld [vmem:[%s8189_s27 + $0x48] sm:$0xff]  ;;  %v8250_v18 = vld [vmem:[%s8189_s27 + $0x60] sm:$0xff]  ;;  %v8259_v22 = vld [vmem:[%s8189_s27 + $0x78] sm:$0xff]  ;;  %p7821_p3 = scmp.ne.s32.totalorder %s9794_s29, %s7820_s14  ;;  %s7907_s16 = smov [#allocation13]  }
  0xa4   : > { %v420_v16 = vadd.f32 %v419_v7, %v8221_v6  ;;  %v423_v17 = vadd.f32 %v8241_v14, %v8238_v13  ;;  %v8253_v19 = vld [vmem:[%s8189_s27 + $0x68] sm:$0xff]  ;;  %413 = vadd.xlane.f32.xlu0 %v412_v11  ;;  %v416_v20 = vadd.f32 %v415_v12, %v8232_v10  ;;  %v8262_v23 = vld [vmem:[%s8189_s27 + $0x80] sm:$0xff]  ;;  %v8266_v25 = vld [vmem:[%s8189_s27 + $0x70] sm:$0xff]  ;;  %s7824_s24 = sshll.u32 %s7907_s16, 4  ;;  %s7825_s24 = int_to_ptr.vmem [resolvable:$false] %s7824_s24 }
  0xa5   : > { %v427_v21 = vadd.f32 %v8253_v19, %v8250_v18  ;;  %v431_v26 = vadd.f32 %v8262_v23, %v8259_v22  ;;  %v8271_v27 = vld [vmem:[%s8189_s27 + $0x90] sm:$0xff]  ;;  %v8274_v28 = vld [vmem:[%s8189_s27 + $0x98] sm:$0xff]  ;;  %v8277_v29 = vld [vmem:[%s8189_s27 + $0x88] sm:$0xff]  ;;  %p7822_p5 = pnand %p7821_p3, %p8131_p10  ;;  %s7826_s20 = scalar_lea.vmem %s7825_s24, 6144 }
  0xa6   : > { %421 = vadd.xlane.f32.xlu1 %v420_v16  ;;  %v424_v24 = vadd.f32 %v423_v17, %v8244_v15  ;;  %v8280_v30 = vld [vmem:[%s8189_s27 + $0xa8] sm:$0xff]  ;;  %v8283_v31 = vld [vmem:[%s8189_s27 + $0xb0] sm:$0xff]  ;;  %v405_v32 = vld [vmem:[%s8189_s27 + $0xa0] sm:$0xff]  ;;  %v435_v34 = vadd.f32 %v8274_v28, %v8271_v27  ;;  %p7827_p12 = scmp.lt.s32.totalorder %s9794_s29, %s7825_s24  ;;  %p7828_p1 = scmp.lt.s32.totalorder %s7826_s20, %s7820_s14 }
  0xa7   : > { %v428_v33 = vadd.f32 %v427_v21, %v8266_v25  ;;  %v8290_v35 = vld [vmem:[%s8189_s27 + $0xb8] sm:$0xff]  ;;  %v432_v36 = vadd.f32 %v431_v26, %v8277_v29  ;;  %v439_v37 = vadd.f32 %v8283_v31, %v8280_v30  ;;  %v7061_v40 = vld [vmem:[#allocation7 + $0x4] ss:$12 sps:$4 sm:$0xff]   ;;  %v7063_v41 = vld [vmem:[#allocation7] ss:$12 sps:$4 sm:$0xff]   ;;  %p7823_p7 = pneg %p7822_p5 }
  0xa8   : > { %417 = vadd.xlane.f32.xlu0 %v416_v20  ;;  %v436_v38 = vadd.f32 %v435_v34, %v405_v32  ;;  %v7064_v42 = vld [vmem:[#allocation7 + $0x1c] ss:$12 sps:$4 sm:$0xff]   ;;  %1152 = vmatprep.subr.bf16.mxu0 %v7061_v40  ;;  %v7066_v43 = vld [vmem:[#allocation7 + $0x18] ss:$12 sps:$4 sm:$0xff]   ;;  %v7067_v44 = vld [vmem:[#allocation7 + $0x34] ss:$12 sps:$4 sm:$0xff]   ;;  %p7829_p2 = por %p7828_p1, %p7827_p12 }
  0xa9   : > { %v440_v39 = vadd.f32 %v439_v37, %v8290_v35  ;;  %1153 = vmatpush1.bf16.msra.mxu0 %v7063_v41  ;;  %v7085_v45 = vld [vmem:[#allocation7 + $0x184] ss:$12 sps:$4 sm:$0xff]   ;;  %v7089_v47 = vld [vmem:[#allocation7 + $0x180] ss:$12 sps:$4 sm:$0xff]   ;;  %v7091_v48 = vld [vmem:[#allocation7 + $0x19c] ss:$12 sps:$4 sm:$0xff]  }
  0xaa   : > { %425 = vadd.xlane.f32.xlu1 %v424_v24  ;;  %1154 = vmatprep.subr.bf16.mxu0 %v7064_v42  ;;  %v7069_v46 = vld [vmem:[#allocation7 + $0x30] ss:$12 sps:$4 sm:$0xff]   ;;  %v7070_v49 = vld [vmem:[#allocation7 + $0x4c] ss:$12 sps:$4 sm:$0xff]   ;;  %v7072_v51 = vld [vmem:[#allocation7 + $0x48] ss:$12 sps:$4 sm:$0xff]   ;;  %p7830_p13 = pnand %p7829_p2, %p7823_p7 }
  0xab   : > { %1225 = vmatprep.subr.bf16.mxu1 %v7085_v45  ;;  %v7095_v50 = vld [vmem:[#allocation7 + $0x198] ss:$12 sps:$4 sm:$0xff]   ;;  %v7075_v53 = vld [vmem:[#allocation7 + $0x60] ss:$12 sps:$4 sm:$0xff]   ;;  %v7076_v54 = vld [vmem:[#allocation7 + $0x7c] ss:$12 sps:$4 sm:$0xff]  }
  0xac   : > { %429 = vadd.xlane.f32.xlu0 %v428_v33  ;;  %1226 = vmatpush1.bf16.msra.mxu1 %v7089_v47  ;;  %v7073_v52 = vld [vmem:[#allocation7 + $0x64] ss:$12 sps:$4 sm:$0xff]   ;;  %v7079_v56 = vld [vmem:[#allocation7 + $0x94] ss:$12 sps:$4 sm:$0xff]   ;;  %v7082_v58 = vld [vmem:[#allocation7 + $0xac] ss:$12 sps:$4 sm:$0xff]  }
  0xad   : > { %1155 = vmatpush1.bf16.msra.mxu0 %v7066_v43  ;;  %1227 = vmatprep.subr.bf16.mxu1 %v7091_v48  ;;  %v7078_v55 = vld [vmem:[#allocation7 + $0x78] ss:$12 sps:$4 sm:$0xff]   ;;  %v7081_v57 = vld [vmem:[#allocation7 + $0x90] ss:$12 sps:$4 sm:$0xff]   ;;  %v7084_v59 = vld [vmem:[#allocation7 + $0xa8] ss:$12 sps:$4 sm:$0xff]  }
  0xae   : > { %433 = vadd.xlane.f32.xlu1 %v432_v36  ;;  %1156 = vmatprep.subr.bf16.mxu0 %v7067_v44  ;;  %v7087_v60 = vld [vmem:[#allocation7 + $0xc4] ss:$12 sps:$4 sm:$0xff]   ;;  %v7090_v61 = vld [vmem:[#allocation7 + $0xc0] ss:$12 sps:$4 sm:$0xff]   ;;  %v7093_v62 = vld [vmem:[#allocation7 + $0xdc] ss:$12 sps:$4 sm:$0xff]  }
  0xb0   : > { %437 = vadd.xlane.f32.xlu0 %v436_v38  ;;  %1228 = vmatpush1.bf16.msra.mxu1 %v7095_v50 }
  0xb1   : > { %1157 = vmatpush1.bf16.msra.mxu0 %v7069_v46 }
  0xb2   : > { %441 = vadd.xlane.f32.xlu1 %v440_v39  ;;  %1158 = vmatprep.subr.bf16.mxu0 %v7070_v49 }
  0xb5   : > { %1159 = vmatpush1.bf16.msra.mxu0 %v7072_v51 }
  0xb6   : > { %1160 = vmatprep.subr.bf16.mxu0 %v7073_v52 }
  0xb9   : > { %1161 = vmatpush1.bf16.msra.mxu0 %v7075_v53 }
  0xba   : > { %1162 = vmatprep.subr.bf16.mxu0 %v7076_v54 }
  0xbd   : > { %1163 = vmatpush1.bf16.msra.mxu0 %v7078_v55 }
  0xbe   : > { %1164 = vmatprep.subr.bf16.mxu0 %v7079_v56 }
  0xc1   : > { %1165 = vmatpush1.bf16.msra.mxu0 %v7081_v57 }
  0xc2   : > { %1166 = vmatprep.subr.bf16.mxu0 %v7082_v58 }
  0xc5   : > { %1167 = vmatpush1.bf16.msra.mxu0 %v7084_v59 }
  0xc6   : > { %1168 = vmatprep.subr.bf16.mxu0 %v7087_v60 }
  0xc9   : > { %1169 = vmatpush1.bf16.msra.mxu0 %v7090_v61 }
  0xca   : > { %1170 = vmatprep.subr.bf16.mxu0 %v7093_v62 }
 0x131   : > { %v414_v63 = vpop.xlane.xlu0 %413 }
 0x132   : > { %v444_v3 = vmul.f32 0.0026041667, %v414_v63 }
 0x133   : > { %v422_v7 = vpop.xlane.xlu1 %421 }
 0x134   : > { %v446_v11 = vmul.f32 0.0026041667, %v422_v7  ;;  %v8297_v12 = vsub.f32 %v8204_v0, %v444_v3  ;;  %v8300_v16 = vsub.f32 %v8207_v1, %v444_v3  ;;  %v8303_v17 = vsub.f32 %v8210_v2, %v444_v3 }
 0x135   : > { %v418_v24 = vpop.xlane.xlu0 %417 }
 0x136   : > { %v8306_v20 = vsub.f32 %v8215_v4, %v446_v11  ;;  %v8309_v21 = vsub.f32 %v8218_v5, %v446_v11  ;;  %v8312_v26 = vsub.f32 %v8221_v6, %v446_v11  ;;  %v445_v32 = vmul.f32 0.0026041667, %v418_v24  ;;  %v7653_v24 = vld [vmem:[%s8189_s27 + $0xa0] sm:$0xff] }
 0x137   : > { %v426_v33 = vpop.xlane.xlu1 %425  ;;  %v476_v0 = vmul.f32 %v8297_v12, %v8297_v12  ;;  %v477_v1 = vmul.f32 %v8300_v16, %v8300_v16  ;;  %v478_v2 = vmul.f32 %v8303_v17, %v8303_v17 }
 0x138   : > { %v447_v4 = vmul.f32 0.0026041667, %v426_v33  ;;  %v482_v5 = vmul.f32 %v8306_v20, %v8306_v20  ;;  %v483_v34 = vmul.f32 %v8309_v21, %v8309_v21  ;;  %v484_v6 = vmul.f32 %v8312_v26, %v8312_v26 }
 0x139   : > { %v8327_v36 = vsub.f32 %v8226_v8, %v445_v32  ;;  %v8330_v37 = vsub.f32 %v8229_v9, %v445_v32  ;;  %v500_v38 = vadd.f32 %v477_v1, %v476_v0  ;;  %v8333_v39 = vsub.f32 %v8232_v10, %v445_v32  ;;  %v430_v42 = vpop.xlane.xlu0 %429 }
 0x13a   : > { %v8336_v40 = vsub.f32 %v8238_v13, %v447_v4  ;;  %v8339_v41 = vsub.f32 %v8241_v14, %v447_v4  ;;  %v508_v43 = vadd.f32 %v483_v34, %v482_v5  ;;  %v8342_v44 = vsub.f32 %v8244_v15, %v447_v4 }
 0x13b   : > { %v448_v8 = vmul.f32 0.0026041667, %v430_v42  ;;  %v501_v45 = vadd.f32 %v500_v38, %v478_v2  ;;  %v434_v46 = vpop.xlane.xlu1 %433  ;;  %v479_v9 = vmul.f32 %v8327_v36, %v8327_v36  ;;  %v480_v10 = vmul.f32 %v8330_v37, %v8330_v37 }
 0x13c   : > { %v449_v47 = vmul.f32 0.0026041667, %v434_v46  ;;  %v509_v13 = vadd.f32 %v508_v43, %v484_v6  ;;  %v481_v14 = vmul.f32 %v8333_v39, %v8333_v39  ;;  %v485_v48 = vmul.f32 %v8336_v40, %v8336_v40  ;;  %v7099_v46 = vld [vmem:[#allocation7 + $0xf4] ss:$12 sps:$4 sm:$0xff]  }
 0x13d   : > { %v8353_v15 = vsub.f32 %v8250_v18, %v448_v8  ;;  %v8356_v49 = vsub.f32 %v8253_v19, %v448_v8  ;;  %502 = vadd.xlane.f32.xlu0 %v501_v45  ;;  %v504_v50 = vadd.f32 %v480_v10, %v479_v9  ;;  %v486_v51 = vmul.f32 %v8339_v41, %v8339_v41  ;;  %v438_v54 = vpop.xlane.xlu0 %437  ;;  %v7097_v45 = vld [vmem:[#allocation7 + $0x1b4] ss:$12 sps:$4 sm:$0xff]   ;;  %v7101_v9 = vld [vmem:[#allocation7 + $0x1b0] ss:$12 sps:$4 sm:$0xff]  }
 0x13e   : > { %v8361_v52 = vsub.f32 %v8259_v22, %v449_v47  ;;  %v8364_v53 = vsub.f32 %v8262_v23, %v449_v47  ;;  %v487_v55 = vmul.f32 %v8342_v44, %v8342_v44  ;;  %v8369_v18 = vsub.f32 %v8266_v25, %v448_v8  ;;  %v7096_v8 = vld [vmem:[#allocation7 + $0xd8] ss:$12 sps:$4 sm:$0xff]   ;;  %1229 = vmatprep.subr.bf16.mxu1 %v7097_v45  ;;  %v7102_v10 = vld [vmem:[#allocation7 + $0xf0] ss:$12 sps:$4 sm:$0xff]  }
 0x13f   : > { %v450_v19 = vmul.f32 0.0026041667, %v438_v54  ;;  %v505_v56 = vadd.f32 %v504_v50, %v481_v14  ;;  %v442_v57 = vpop.xlane.xlu1 %441  ;;  %v512_v58 = vadd.f32 %v486_v51, %v485_v48  ;;  %v488_v59 = vmul.f32 %v8353_v15, %v8353_v15  ;;  %1171 = vmatpush1.bf16.msra.mxu0 %v7096_v8  ;;  %1230 = vmatpush1.bf16.msra.mxu1 %v7101_v9  ;;  %v7107_v14 = vld [vmem:[#allocation7 + $0x1c8] ss:$12 sps:$4 sm:$0xff]   ;;  %v7109_v50 = vld [vmem:[#allocation7 + $0x1e4] ss:$12 sps:$4 sm:$0xff]  }
 0x140   : > { %v451_v22 = vmul.f32 0.0026041667, %v442_v57  ;;  %v489_v23 = vmul.f32 %v8356_v49, %v8356_v49  ;;  %v490_v60 = vmul.f32 %v8369_v18, %v8369_v18  ;;  %v8378_v61 = vsub.f32 %v8277_v29, %v449_v47  ;;  %1172 = vmatprep.subr.bf16.mxu0 %v7099_v46  ;;  %v7103_v47 = vld [vmem:[#allocation7 + $0x1cc] ss:$12 sps:$4 sm:$0xff]   ;;  %v7108_v48 = vld [vmem:[#allocation7 + $0x108] ss:$12 sps:$4 sm:$0xff]  }
 0x141   : > { %v8381_v25 = vsub.f32 %v8271_v27, %v450_v19  ;;  %v8384_v62 = vsub.f32 %v8274_v28, %v450_v19  ;;  %510 = vadd.xlane.f32.xlu0 %v509_v13  ;;  %506 = vadd.xlane.f32.xlu1 %v505_v56  ;;  %v513_v63 = vadd.f32 %v512_v58, %v487_v55  ;;  %v7105_v13 = vld [vmem:[#allocation7 + $0x10c] ss:$12 sps:$4 sm:$0xff]   ;;  %v7111_v51 = vld [vmem:[#allocation7 + $0x124] ss:$12 sps:$4 sm:$0xff]   ;;  %v7117_v56 = vld [vmem:[#allocation7 + $0x13c] ss:$12 sps:$4 sm:$0xff]  }
 0x142   : > { %v8387_v3 = vsub.f32 %v8280_v30, %v451_v22  ;;  %v8390_v7 = vsub.f32 %v8283_v31, %v451_v22  ;;  %v516_v11 = vadd.f32 %v489_v23, %v488_v59  ;;  %v491_v29 = vmul.f32 %v8361_v52, %v8361_v52  ;;  %1231 = vmatprep.subr.bf16.mxu1 %v7103_v47  ;;  %v7113_v54 = vld [vmem:[#allocation7 + $0x1e0] ss:$12 sps:$4 sm:$0xff]   ;;  %v7119_v57 = vld [vmem:[#allocation7 + $0x1f8] ss:$12 sps:$4 sm:$0xff]   ;;  %v7125_v23 = vld [vmem:[#allocation7 + $0x210] ss:$12 sps:$4 sm:$0xff]  }
 0x143   : > { %v492_v27 = vmul.f32 %v8364_v53, %v8364_v53  ;;  %v493_v28 = vmul.f32 %v8378_v61, %v8378_v61  ;;  %v8399_v32 = vsub.f32 %v7653_v24, %v450_v19  ;;  %v494_v30 = vmul.f32 %v8381_v25, %v8381_v25  ;;  %1173 = vmatpush1.bf16.msra.mxu0 %v7102_v10  ;;  %v7114_v55 = vld [vmem:[#allocation7 + $0x120] ss:$12 sps:$4 sm:$0xff]   ;;  %v7115_v19 = vld [vmem:[#allocation7 + $0x1fc] ss:$12 sps:$4 sm:$0xff]   ;;  %v7120_v58 = vld [vmem:[#allocation7 + $0x138] ss:$12 sps:$4 sm:$0xff]  }
 0x144   : > { %v517_v33 = vadd.f32 %v516_v11, %v490_v60  ;;  %v495_v31 = vmul.f32 %v8384_v62, %v8384_v62  ;;  %v8406_v0 = vsub.f32 %v8290_v35, %v451_v22  ;;  %v497_v1 = vmul.f32 %v8387_v3, %v8387_v3  ;;  %1174 = vmatprep.subr.bf16.mxu0 %v7105_v13  ;;  %v7121_v59 = vld [vmem:[#allocation7 + $0x214] ss:$12 sps:$4 sm:$0xff]   ;;  %v7126_v60 = vld [vmem:[#allocation7 + $0x150] ss:$12 sps:$4 sm:$0xff]   ;;  %v7129_v11 = vld [vmem:[#allocation7 + $0x16c] ss:$12 sps:$4 sm:$0xff]  }
 0x145   : > { %514 = vadd.xlane.f32.xlu1 %v513_v63  ;;  %v520_v2 = vadd.f32 %v492_v27, %v491_v29  ;;  %v496_v4 = vmul.f32 %v8399_v32, %v8399_v32  ;;  %v498_v5 = vmul.f32 %v8390_v7, %v8390_v7  ;;  %1232 = vmatpush1.bf16.msra.mxu1 %v7107_v14  ;;  %v7123_v22 = vld [vmem:[#allocation7 + $0x154] ss:$12 sps:$4 sm:$0xff]   ;;  %v7127_v63 = vld [vmem:[#allocation7 + $0x22c] ss:$12 sps:$4 sm:$0xff]   ;;  %v9855_v24 = vmov 0  }
 0x146   : > { %518 = vadd.xlane.f32.xlu0 %v517_v33  ;;  %v524_v34 = vadd.f32 %v495_v31, %v494_v30  ;;  %v499_v6 = vmul.f32 %v8406_v0, %v8406_v0  ;;  %1233 = vmatprep.subr.bf16.mxu1 %v7109_v50  ;;  %v7131_v29 = vld [vmem:[#allocation7 + $0x228] ss:$12 sps:$4 sm:$0xff]   ;;  %v409_v13 = vld [vmem:[%s9842_s2] sm:$0x7] }
 0x147   : > { %v521_v38 = vadd.f32 %v520_v2, %v493_v28  ;;  %v528_v42 = vadd.f32 %v498_v5, %v497_v1  ;;  %1175 = vmatpush1.bf16.msra.mxu0 %v7108_v48  ;;  %v7132_v27 = vld [vmem:[#allocation7 + $0x168] ss:$12 sps:$4 sm:$0xff]   ;;  %1257 = vmatprep.mubr.bf16.mxu1 %v9855_v24  ;;  %v581_v1 = vlaneseq }
 0x148   : > { %v525_v35 = vadd.f32 %v524_v34, %v496_v4  ;;  %1176 = vmatprep.subr.bf16.mxu0 %v7111_v51  ;;  %v7133_v28 = vld [vmem:[#allocation7 + $0xc8] ss:$12 sps:$4 sm:$0xff]  }
 0x149   : > { %522 = vadd.xlane.f32.xlu1 %v521_v38  ;;  %v529_v43 = vadd.f32 %v528_v42, %v499_v6  ;;  %1234 = vmatpush1.bf16.msra.mxu1 %v7113_v54  ;;  %v7135_v30 = vld [vmem:[#allocation9 + $0xc8] ss:$12 sps:$4 sm:$0xff]   ;;  %v8418_v38 = vshrl.u32 %v581_v1, 7 }
 0x14a   : > { %526 = vadd.xlane.f32.xlu0 %v525_v35  ;;  %1235 = vmatprep.subr.bf16.mxu1 %v7115_v19 }
 0x14b   : > { %1177 = vmatpush1.bf16.msra.mxu0 %v7114_v55  ;;  %v8421_v9 = vsub.s32 1, %v8418_v38  ;;  %v8424_v10 = vsub.s32 2, %v8418_v38  ;;  %v8430_v54 = vsub.s32 0, %v8418_v38 }
 0x14c   : > { %1178 = vmatprep.subr.bf16.mxu0 %v7117_v56 }
 0x14d   : > { %530 = vadd.xlane.f32.xlu1 %v529_v43  ;;  %1236 = vmatpush1.bf16.msra.mxu1 %v7119_v57  ;;  %9888 = vst [vmem:[#allocation20_spill] sm:$0xff] %v8421_v9  ;;  %9889 = vst [vmem:[#allocation21_spill] sm:$0xff] %v8424_v10  ;;  %v8433_v19 = vrot.slane %v409_v13, %v8421_v9  ;;  %v8436_v56 = vrot.slane %v409_v13, %v8424_v10 }
 0x14e   : > { %1237 = vmatprep.subr.bf16.mxu1 %v7121_v59  ;;  %9890 = vst [vmem:[#allocation22_spill] sm:$0xff] %v8430_v54  ;;  %v410_v59 = vld [vmem:[%s9843_s3] sm:$0x7] }
 0x14f   : > { %1179 = vmatpush1.bf16.msra.mxu0 %v7120_v58 }
 0x150   : > { %1180 = vmatprep.subr.bf16.mxu0 %v7123_v22 }
 0x151   : > { %1238 = vmatpush1.bf16.msra.mxu1 %v7125_v23 }
 0x152   : > { %1239 = vmatprep.subr.bf16.mxu1 %v7127_v63 }
 0x153   : > { %1181 = vmatpush1.bf16.msra.mxu0 %v7126_v60 }
 0x154   : > { %1182 = vmatprep.subr.bf16.mxu0 %v7129_v11 }
 0x155   : > { %1240 = vmatpush1.bf16.msra.mxu1 %v7131_v29 }
 0x156   : > { %6190 = vmatprep.subr.bf16.mxu1 %v7133_v28 }
 0x157   : > { %1183 = vmatpush1.bf16.msra.mxu0 %v7132_v27  ;;  %v8445_v27 = vrot.slane %v409_v13, %v8430_v54 }
 0x158   : > { %6242 = vmatprep.subr.bf16.mxu0 %v7135_v30  ;;  %v8449_v30 = vrot.slane %v410_v59, %v8421_v9 }
 0x1ca   : > { %v503_v33 = vpop.xlane.xlu0 %502 }
 0x1cb   : > { %v532_v31 = vmul.f32 0.0026041667, %v503_v33 }
 0x1cd   : > { %v540_v2 = vadd.f32 1e-05, %v532_v31  ;;  %v8453_v31 = vrot.slane %v410_v59, %v8424_v10 }
 0x1ce   : > { %v507_v4 = vpop.xlane.xlu1 %506  ;;  %v511_v5 = vpop.xlane.xlu0 %510 }
 0x1cf   : > { %7445 = vrsqrt.f32 %v540_v2  ;;  %v533_v34 = vmul.f32 0.0026041667, %v507_v4  ;;  %v534_v6 = vmul.f32 0.0026041667, %v511_v5  ;;  %v8458_v5 = vrot.slane %v410_v59, %v8430_v54 }
 0x1d1   : > { %v541_v42 = vadd.f32 1e-05, %v533_v34  ;;  %v542_v35 = vadd.f32 1e-05, %v534_v6 }
 0x1d2   : > { %v515_v43 = vpop.xlane.xlu1 %514 }
 0x1d3   : > { %7447 = vrsqrt.f32 %v541_v42  ;;  %v535_v8 = vmul.f32 0.0026041667, %v515_v43  ;;  %v519_v45 = vpop.xlane.xlu0 %518 }
 0x1d4   : > { %7449 = vrsqrt.f32 %v542_v35  ;;  %v536_v46 = vmul.f32 0.0026041667, %v519_v45 }
 0x1d5   : > { %v543_v47 = vadd.f32 1e-05, %v535_v8 }
 0x1d6   : > { %v544_v14 = vadd.f32 1e-05, %v536_v46  ;;  %v523_v48 = vpop.xlane.xlu1 %522 }
 0x1d7   : > { %7451 = vrsqrt.f32 %v543_v47  ;;  %v537_v50 = vmul.f32 0.0026041667, %v523_v48  ;;  %v527_v51 = vpop.xlane.xlu0 %526 }
 0x1d8   : > { %v538_v55 = vmul.f32 0.0026041667, %v527_v51  ;;  %7453 = vrsqrt.f32 %v544_v14  ;;  %v7134_v51 = vld [vmem:[#allocation7 + $0x8] ss:$12 sps:$4 sm:$0xff]  }
 0x1d9   : > { %v7446_v57 = vpop.eup %7445  ;;  %v545_v58 = vadd.f32 1e-05, %v537_v50 }
 0x1da   : > { %v546_v22 = vadd.f32 1e-05, %v538_v55  ;;  %v531_v23 = vpop.xlane.xlu1 %530  ;;  %v557_v60 = vmul.f32 %v7446_v57, %v8300_v16  ;;  %v558_v63 = vmul.f32 %v7446_v57, %v8303_v17  ;;  %v556_v29 = vmul.f32 %v7446_v57, %v8297_v12 }
 0x1db   : > { %7455 = vrsqrt.f32 %v545_v58  ;;  %v539_v11 = vmul.f32 0.0026041667, %v531_v23 }
 0x1dc   : > { %v597_v28 = vmul.f32 %v8433_v19, %v557_v60  ;;  %v598_v33 = vmul.f32 %v8436_v56, %v558_v63  ;;  %7457 = vrsqrt.f32 %v546_v22  ;;  %v596_v6 = vmul.f32 %v8445_v27, %v556_v29  ;;  %v7137_v22 = vld [vmem:[#allocation7 + $0xe0] ss:$12 sps:$4 sm:$0xff]  }
 0x1dd   : > { %v7448_v16 = vpop.eup %7447  ;;  %v547_v2 = vadd.f32 1e-05, %v539_v11  ;;  %v7139_v11 = vld [vmem:[#allocation9 + $0xe0] ss:$12 sps:$4 sm:$0xff]  }
 0x1de   : > { %v7450_v17 = vpop.eup %7449  ;;  %v560_v4 = vmul.f32 %v7448_v16, %v8330_v37  ;;  %v561_v12 = vmul.f32 %v7448_v16, %v8333_v39  ;;  %v559_v34 = vmul.f32 %v7448_v16, %v8327_v36  ;;  %v637_v43 = vadd.f32 %v8449_v30, %v597_v28 }
 0x1df   : > { %7459 = vrsqrt.f32 %v547_v2  ;;  %v563_v42 = vmul.f32 %v7450_v17, %v8309_v21  ;;  %v638_v37 = vadd.f32 %v8453_v31, %v598_v33  ;;  %v564_v47 = vmul.f32 %v7450_v17, %v8312_v26  ;;  %v7138_v2 = vld [vmem:[#allocation7 + $0x20] ss:$12 sps:$4 sm:$0xff]  }
 0x1e0   : > { %v600_v35 = vmul.f32 %v8433_v19, %v560_v4  ;;  %v601_v8 = vmul.f32 %v8436_v56, %v561_v12  ;;  %v599_v39 = vmul.f32 %v8445_v27, %v559_v34  ;;  %v562_v36 = vmul.f32 %v7450_v17, %v8306_v20  ;;  %v7136_v20 = vld [vmem:[#allocation9 + $0x8] ss:$12 sps:$4 sm:$0xff]  }
 0x1e1   : > { %v7452_v45 = vpop.eup %7451  ;;  %v603_v46 = vmul.f32 %v8433_v19, %v563_v42  ;;  %v636_v55 = vadd.f32 %v8458_v5, %v596_v6  ;;  %v604_v29 = vmul.f32 %v8436_v56, %v564_v47  ;;  %v7140_v6 = vld [vmem:[#allocation9 + $0x20] ss:$12 sps:$4 sm:$0xff]   ;;  %v7141_v42 = vld [vmem:[#allocation7 + $0xf8] ss:$12 sps:$4 sm:$0xff]  }
 0x1e2   : > { %v640_v13 = vadd.f32 %v8449_v30, %v600_v35  ;;  %v641_v21 = vadd.f32 %v8453_v31, %v601_v8  ;;  %v566_v14 = vmul.f32 %v7452_v45, %v8339_v41  ;;  %v567_v48 = vmul.f32 %v7452_v45, %v8342_v44  ;;  %v7454_v50 = vpop.eup %7453  ;;  %v7143_v8 = vld [vmem:[#allocation9 + $0xf8] ss:$12 sps:$4 sm:$0xff]  }
 0x1e3   : > { %v639_v57 = vadd.f32 %v8458_v5, %v599_v39  ;;  %v565_v58 = vmul.f32 %v7452_v45, %v8336_v40  ;;  %v643_v63 = vadd.f32 %v8449_v30, %v603_v46  ;;  %v602_v33 = vmul.f32 %v8445_v27, %v562_v36 }
 0x1e4   : > { %v8478_v59 = vpack.c.bf16 %v640_v13, %v637_v43  ;;  %v8480_v26 = vpack.c.bf16 %v641_v21, %v638_v37  ;;  %v606_v23 = vmul.f32 %v8433_v19, %v566_v14  ;;  %v607_v41 = vmul.f32 %v8436_v56, %v567_v48  ;;  %v7142_v13 = vld [vmem:[#allocation7 + $0x38] ss:$12 sps:$4 sm:$0xff]  }
 0x1e5   : > { %v7456_v60 = vpop.eup %7455  ;;  %v8484_v44 = vpack.c.bf16 %v639_v57, %v636_v55  ;;  %v605_v40 = vmul.f32 %v8445_v27, %v565_v58  ;;  %v569_v16 = vmul.f32 %v7454_v50, %v8356_v49  ;;  %v644_v49 = vadd.f32 %v8453_v31, %v604_v29  ;;  %v7145_v57 = vld [vmem:[#allocation7 + $0x110] ss:$12 sps:$4 sm:$0xff]   ;;  %v7151_v29 = vld [vmem:[#allocation9 + $0x128] ss:$12 sps:$4 sm:$0xff]  }
 0x1e6   : > { %1184 = vmatprep.mubr.bf16.mxu0 %v8478_v59  ;;  %1258 = vmatmul.mubr.bf16.vlgmr.msra.gmra.mrb[0].mxu1 %v8480_v26  ;;  %v646_v28 = vadd.f32 %v8449_v30, %v606_v23  ;;  %v647_v17 = vadd.f32 %v8453_v31, %v607_v41  ;;  %v572_v4 = vmul.f32 %v7456_v60, %v8364_v53  ;;  %v8497_v12 = vpop.eup %7457  ;;  %v7147_v58 = vld [vmem:[#allocation9 + $0x110] ss:$12 sps:$4 sm:$0xff]   ;;  %v7149_v41 = vld [vmem:[#allocation7 + $0x128] ss:$12 sps:$4 sm:$0xff]  }
 0x1e7   : > { %6191 = vmatpush3.bf16.msra.mxu1 %v7134_v51  ;;  %1185 = vmatmul.mubr.bf16.vlgmr.msra.gmra.mrb[0].mxu0 %v8484_v44  ;;  %v609_v35 = vmul.f32 %v8433_v19, %v569_v16  ;;  %v645_v37 = vadd.f32 %v8458_v5, %v605_v40  ;;  %v642_v45 = vadd.f32 %v8458_v5, %v602_v33  ;;  %v7144_v51 = vld [vmem:[#allocation9 + $0x38] ss:$12 sps:$4 sm:$0xff]   ;;  %v7148_v23 = vld [vmem:[#allocation9 + $0x50] ss:$12 sps:$4 sm:$0xff]  }
 0x1e8   : > { %6243 = vmatpush3.bf16.msra.mxu0 %v7136_v20  ;;  %6192 = vmatprep.subr.bf16.mxu1 %v7137_v22  ;;  %v8499_v34 = vpack.c.bf16 %v646_v28, %v643_v63  ;;  %v612_v53 = vmul.f32 %v8433_v19, %v572_v4  ;;  %v570_v39 = vmul.f32 %v7454_v50, %v8369_v18  ;;  %v7146_v22 = vld [vmem:[#allocation7 + $0x50] ss:$12 sps:$4 sm:$0xff]  }
 0x1e9   : > { %v7460_v43 = vpop.eup %7459  ;;  %6244 = vmatprep.subr.bf16.mxu0 %v7139_v11  ;;  %1267 = vmatprep.mubr.bf16.mxu1 %v9855_v24  ;;  %v573_v46 = vmul.f32 %v7456_v60, %v8378_v61  ;;  %v571_v47 = vmul.f32 %v7456_v60, %v8361_v52  ;;  %v8511_v36 = vpack.c.bf16 %v647_v17, %v644_v49 }
 0x1ea   : > { %1194 = vmatprep.mubr.bf16.mxu0 %v8499_v34  ;;  %v652_v21 = vadd.f32 %v8449_v30, %v612_v53  ;;  %v568_v14 = vmul.f32 %v7454_v50, %v8353_v15  ;;  %v578_v48 = vmul.f32 %v7460_v43, %v8390_v7  ;;  %v649_v55 = vadd.f32 %v8449_v30, %v609_v35  ;;  %v7157_v53 = vld [vmem:[#allocation7 + $0x158] ss:$12 sps:$4 sm:$0xff]  }
 0x1eb   : > { %6193 = vmatpush3.bf16.msra.mxu1 %v7138_v2  ;;  %v613_v18 = vmul.f32 %v8436_v56, %v573_v46  ;;  %v575_v52 = vmul.f32 %v8497_v12, %v8384_v62  ;;  %v8520_v61 = vpack.c.bf16 %v645_v37, %v642_v45  ;;  %v611_v20 = vmul.f32 %v8445_v27, %v571_v47  ;;  %v7156_v37 = vld [vmem:[#allocation9 + $0x80] ss:$12 sps:$4 sm:$0xff]   ;;  %v7158_v47 = vld [vmem:[#allocation7 + $0x98] ss:$12 sps:$4 sm:$0xff]  }
 0x1ec   : > { %6245 = vmatpush3.bf16.msra.mxu0 %v7140_v6  ;;  %6194 = vmatprep.subr.bf16.mxu1 %v7141_v42  ;;  %v8524_v15 = vpack.c.bf16 %v652_v21, %v649_v55  ;;  %v610_v7 = vmul.f32 %v8436_v56, %v570_v39  ;;  %v618_v50 = vmul.f32 %v8433_v19, %v578_v48  ;;  %v7152_v6 = vld [vmem:[#allocation9 + $0x68] ss:$12 sps:$4 sm:$0xff]   ;;  %v7159_v39 = vld [vmem:[#allocation9 + $0x158] ss:$12 sps:$4 sm:$0xff]   ;;  %v7161_v48 = vld [vmem:[#allocation7 + $0x170] ss:$12 sps:$4 sm:$0xff]  }
 0x1ed   : > { %6246 = vmatprep.subr.bf16.mxu0 %v7143_v8  ;;  %v608_v62 = vmul.f32 %v8445_v27, %v568_v14  ;;  %v653_v60 = vadd.f32 %v8453_v31, %v613_v18  ;;  %v615_v63 = vmul.f32 %v8433_v19, %v575_v52  ;;  %v579_v11 = vmul.f32 %v7460_v43, %v8406_v0  ;;  %v7150_v19 = vld [vmem:[#allocation7 + $0x68] ss:$12 sps:$4 sm:$0xff]   ;;  %v7160_v21 = vld [vmem:[#allocation9 + $0x98] ss:$12 sps:$4 sm:$0xff]   ;;  %v7167_v52 = vld [vmem:[#allocation7 + $0x1a0] ss:$12 sps:$4 sm:$0xff]  }
 0x1ee   : > { %1268 = vmatmul.mubr.bf16.gmra.mrb[4].mxu1 %v8511_v36  ;;  %v651_v40 = vadd.f32 %v8458_v5, %v611_v20  ;;  %v650_v28 = vadd.f32 %v8453_v31, %v610_v7  ;;  %v658_v33 = vadd.f32 %v8449_v30, %v618_v50  ;;  %v576_v16 = vmul.f32 %v8497_v12, %v8399_v32  ;;  %v7165_v55 = vld [vmem:[#allocation7 + $0x188] ss:$12 sps:$4 sm:$0xff]   ;;  %v7170_v20 = vld [vmem:[#allocation9 + $0x1b8] ss:$12 sps:$4 sm:$0xff]   ;;  %v7171_v7 = vld [vmem:[#allocation7 + $0x1d0] ss:$12 sps:$4 sm:$0xff]  }
 0x1ef   : > { %6195 = vmatpush3.bf16.msra.mxu1 %v7142_v13  ;;  %1195 = vmatmul.mubr.bf16.gmra.mrb[4].mxu0 %v8520_v61  ;;  %v577_v2 = vmul.f32 %v7460_v43, %v8387_v3  ;;  %v648_v0 = vadd.f32 %v8458_v5, %v608_v62  ;;  %v574_v17 = vmul.f32 %v8497_v12, %v8381_v25  ;;  %v7153_v3 = vld [vmem:[#allocation7 + $0x140] ss:$12 sps:$4 sm:$0xff]   ;;  %v7166_v18 = vld [vmem:[#allocation9 + $0x188] ss:$12 sps:$4 sm:$0xff]   ;;  %v7172_v50 = vld [vmem:[#allocation9 + $0x1d0] ss:$12 sps:$4 sm:$0xff]  }
 0x1f0   : > { %6247 = vmatpush3.bf16.msra.mxu0 %v7144_v51  ;;  %1204 = vmatprep.mubr.bf16.mxu0 %v8524_v15  ;;  %v8544_v4 = vpack.c.bf16 %v653_v60, %v650_v28  ;;  %v655_v42 = vadd.f32 %v8449_v30, %v615_v63  ;;  %v619_v35 = vmul.f32 %v8436_v56, %v579_v11  ;;  %v7155_v43 = vld [vmem:[#allocation9 + $0x140] ss:$12 sps:$4 sm:$0xff]   ;;  %v7163_v51 = vld [vmem:[#allocation9 + $0x170] ss:$12 sps:$4 sm:$0xff]   ;;  %v7174_v62 = vld [vmem:[#allocation9 + $0x1e8] ss:$12 sps:$4 sm:$0xff]  }
 0x1f1   : > { %6196 = vmatprep.subr.bf16.mxu1 %v7145_v57  ;;  %6248 = vmatprep.subr.bf16.mxu0 %v7147_v58  ;;  %v8548_v32 = vpack.c.bf16 %v651_v40, %v648_v0  ;;  %v617_v49 = vmul.f32 %v8445_v27, %v577_v2  ;;  %v616_v25 = vmul.f32 %v8436_v56, %v576_v16  ;;  %v7154_v12 = vld [vmem:[#allocation7 + $0x80] ss:$12 sps:$4 sm:$0xff]   ;;  %v7169_v58 = vld [vmem:[#allocation7 + $0x1b8] ss:$12 sps:$4 sm:$0xff]   ;;  %v7179_v11 = vld [vmem:[#allocation7 + $0x230] ss:$12 sps:$4 sm:$0xff]  }
 0x1f2   : > { %1277 = vmatprep.mubr.bf16.mxu1 %v9855_v24  ;;  %v8552_v8 = vpack.c.bf16 %v658_v33, %v655_v42  ;;  %v614_v30 = vmul.f32 %v8445_v27, %v574_v17  ;;  %v659_v45 = vadd.f32 %v8453_v31, %v619_v35  ;;  %v7168_v57 = vld [vmem:[#allocation9 + $0x1a0] ss:$12 sps:$4 sm:$0xff]   ;;  %v7177_v60 = vld [vmem:[#allocation7 + $0x218] ss:$12 sps:$4 sm:$0xff]   ;;  %v7189_v16 = vld [vmem:[#allocation9 + $0x1c] ss:$12 sps:$4 sm:$0xff]  }
 0x1f3   : > { %6197 = vmatpush3.bf16.msra.mxu1 %v7146_v22  ;;  %v657_v46 = vadd.f32 %v8458_v5, %v617_v49  ;;  %v656_v56 = vadd.f32 %v8453_v31, %v616_v25  ;;  %v7162_v31 = vld [vmem:[#allocation7 + $0xb0] ss:$12 sps:$4 sm:$0xff]   ;;  %v7173_v22 = vld [vmem:[#allocation7 + $0x1e8] ss:$12 sps:$4 sm:$0xff]   ;;  %v7178_v63 = vld [vmem:[#allocation9 + $0x218] ss:$12 sps:$4 sm:$0xff]  }
 0x1f4   : > { %6249 = vmatpush3.bf16.msra.mxu0 %v7148_v23  ;;  %6198 = vmatprep.subr.bf16.mxu1 %v7149_v41  ;;  %v654_v27 = vadd.f32 %v8458_v5, %v614_v30  ;;  %v7164_v5 = vld [vmem:[#allocation9 + $0xb0] ss:$12 sps:$4 sm:$0xff]   ;;  %v7175_v23 = vld [vmem:[#allocation7 + $0x200] ss:$12 sps:$4 sm:$0xff]   ;;  %v7187_v0 = vld [vmem:[#allocation9 + $0x18] ss:$12 sps:$4 sm:$0xff]  }
 0x1f5   : > { %6250 = vmatprep.subr.bf16.mxu0 %v7151_v29  ;;  %v8563_v13 = vpack.c.bf16 %v659_v45, %v656_v56  ;;  %v7176_v41 = vld [vmem:[#allocation9 + $0x200] ss:$12 sps:$4 sm:$0xff]   ;;  %v7180_v29 = vld [vmem:[#allocation9 + $0x230] ss:$12 sps:$4 sm:$0xff]   ;;  %v7199_v25 = vld [vmem:[#allocation9 + $0x48] ss:$12 sps:$4 sm:$0xff]  }
 0x1f6   : > { %1278 = vmatmul.mubr.bf16.gmra.mrb[8].mxu1 %v8544_v4  ;;  %v8565_v14 = vpack.c.bf16 %v657_v46, %v654_v27  ;;  %v7183_v40 = vld [vmem:[#allocation9 + $0x4] ss:$12 sps:$4 sm:$0xff]   ;;  %v7181_v33 = vld [vmem:[#allocation9] ss:$12 sps:$4 sm:$0xff]   ;;  %v7202_v30 = vld [vmem:[#allocation10 + $0x48] ss:$12 sps:$4 sm:$0xff]  }
 0x1f7   : > { %6199 = vmatpush3.bf16.msra.mxu1 %v7150_v19  ;;  %1205 = vmatmul.mubr.bf16.gmra.mrb[8].mxu0 %v8548_v32  ;;  %v7186_v28 = vld [vmem:[#allocation10 + $0x4] ss:$12 sps:$4 sm:$0xff]   ;;  %v7184_v2 = vld [vmem:[#allocation10] ss:$12 sps:$4 sm:$0xff]   ;;  %v7192_v19 = vld [vmem:[#allocation10 + $0x1c] ss:$12 sps:$4 sm:$0xff]  }
 0x1f8   : > { %6251 = vmatpush3.bf16.msra.mxu0 %v7152_v6  ;;  %1214 = vmatprep.mubr.bf16.mxu0 %v8552_v8  ;;  %v7195_v17 = vld [vmem:[#allocation9 + $0x34] ss:$12 sps:$4 sm:$0xff]   ;;  %v7190_v6 = vld [vmem:[#allocation10 + $0x18] ss:$12 sps:$4 sm:$0xff]   ;;  %v7193_v35 = vld [vmem:[#allocation9 + $0x30] ss:$12 sps:$4 sm:$0xff]  }
 0x1f9   : > { %6200 = vmatprep.subr.bf16.mxu1 %v7153_v3  ;;  %6252 = vmatprep.subr.bf16.mxu0 %v7155_v43  ;;  %v7198_v42 = vld [vmem:[#allocation10 + $0x34] ss:$12 sps:$4 sm:$0xff]   ;;  %v7201_v3 = vld [vmem:[#allocation9 + $0x4c] ss:$12 sps:$4 sm:$0xff]   ;;  %v7196_v43 = vld [vmem:[#allocation10 + $0x30] ss:$12 sps:$4 sm:$0xff]  }
 0x1fa   : > { %1287 = vmatprep.mubr.bf16.mxu1 %v9855_v24  ;;  %v7204_v49 = vld [vmem:[#allocation10 + $0x4c] ss:$12 sps:$4 sm:$0xff]   ;;  %v7213_v45 = vld [vmem:[#allocation9 + $0x7c] ss:$12 sps:$4 sm:$0xff]  }
 0x1fb   : > { %6201 = vmatpush3.bf16.msra.mxu1 %v7154_v12  ;;  %v7207_v12 = vld [vmem:[#allocation9 + $0x64] ss:$12 sps:$4 sm:$0xff]   ;;  %v7216_v46 = vld [vmem:[#allocation10 + $0x7c] ss:$12 sps:$4 sm:$0xff]  }
 0x1fc   : > { %6253 = vmatpush3.bf16.msra.mxu0 %v7156_v37  ;;  %6202 = vmatprep.subr.bf16.mxu1 %v7157_v53  ;;  %v7210_v37 = vld [vmem:[#allocation10 + $0x64] ss:$12 sps:$4 sm:$0xff]   ;;  %v7205_v53 = vld [vmem:[#allocation9 + $0x60] ss:$12 sps:$4 sm:$0xff]  }
 0x1fd   : > { %6254 = vmatprep.subr.bf16.mxu0 %v7159_v39  ;;  %v7208_v39 = vld [vmem:[#allocation10 + $0x60] ss:$12 sps:$4 sm:$0xff]   ;;  %v7211_v56 = vld [vmem:[#allocation9 + $0x78] ss:$12 sps:$4 sm:$0xff]  }
 0x1fe   : > { %1288 = vmatmul.mubr.bf16.gmra.mrb[12].mxu1 %v8563_v13  ;;  %v7214_v27 = vld [vmem:[#allocation10 + $0x78] ss:$12 sps:$4 sm:$0xff]  }
 0x1ff   : > { %6203 = vmatpush3.bf16.msra.mxu1 %v7158_v47  ;;  %1215 = vmatmul.mubr.bf16.gmra.mrb[12].mxu0 %v8565_v14  ;;  %v7219_v47 = vld [vmem:[#allocation9 + $0x94] ss:$12 sps:$4 sm:$0xff]  }
 0x200   : > { %1330 = vmatprep.mubr.bf16.mxu1 %v8478_v59  ;;  %6255 = vmatpush3.bf16.msra.mxu0 %v7160_v21  ;;  %v7222_v21 = vld [vmem:[#allocation10 + $0x94] ss:$12 sps:$4 sm:$0xff]  }
 0x201   : > { %2086 = vmatprep.mubr.bf16.mxu0 %v8478_v59  ;;  %6204 = vmatprep.subr.bf16.mxu1 %v7161_v48  ;;  %v7217_v48 = vld [vmem:[#allocation9 + $0x90] ss:$12 sps:$4 sm:$0xff]  }
 0x202   : > { %6256 = vmatprep.subr.bf16.mxu0 %v7163_v51  ;;  %v7225_v51 = vld [vmem:[#allocation9 + $0xac] ss:$12 sps:$4 sm:$0xff]  }
 0x203   : > { %6205 = vmatpush3.bf16.msra.mxu1 %v7162_v31  ;;  %v7220_v31 = vld [vmem:[#allocation10 + $0x90] ss:$12 sps:$4 sm:$0xff]  }
 0x204   : > { %6257 = vmatpush3.bf16.msra.mxu0 %v7164_v5  ;;  %6494 = vmatprep.subr.bf16.mxu1 %v7165_v55  ;;  %v7228_v5 = vld [vmem:[#allocation10 + $0xac] ss:$12 sps:$4 sm:$0xff]  }
 0x205   : > { %6518 = vmatprep.subr.bf16.mxu0 %v7166_v18 }
 0x206   : > { %1331 = vmatmul.mubr.bf16.vlgmr.msra.gmra.mrb[16].mxu1 %v8484_v44 }
 0x207   : > { %6495 = vmatpush3.bf16.msra.mxu1 %v7165_v55  ;;  %1338 = vmatprep.mubr.bf16.mxu1 %v8499_v34  ;;  %v7223_v55 = vld [vmem:[#allocation9 + $0xa8] ss:$12 sps:$4 sm:$0xff]  }
 0x208   : > { %2087 = vmatmul.mubr.bf16.vlgmr.msra.gmra.mrb[16].mxu0 %v8484_v44  ;;  %6496 = vmatprep.subr.bf16.mxu1 %v7167_v52 }
 0x209   : > { %6519 = vmatpush3.bf16.msra.mxu0 %v7166_v18  ;;  %2094 = vmatprep.mubr.bf16.mxu0 %v8499_v34  ;;  %v7231_v18 = vld [vmem:[#allocation9 + $0xc4] ss:$12 sps:$4 sm:$0xff]  }
 0x20a   : > { %6520 = vmatprep.subr.bf16.mxu0 %v7168_v57 }
 0x20b   : > { %6497 = vmatpush3.bf16.msra.mxu1 %v7167_v52  ;;  %v7226_v52 = vld [vmem:[#allocation10 + $0xa8] ss:$12 sps:$4 sm:$0xff]  }
 0x20c   : > { %6498 = vmatprep.subr.bf16.mxu1 %v7169_v58 }
 0x20d   : > { %6521 = vmatpush3.bf16.msra.mxu0 %v7168_v57  ;;  %v7234_v57 = vld [vmem:[#allocation10 + $0xc4] ss:$12 sps:$4 sm:$0xff]  }
 0x20e   : > { %1339 = vmatmul.mubr.bf16.gmra.mrb[20].mxu1 %v8520_v61  ;;  %6522 = vmatprep.subr.bf16.mxu0 %v7170_v20 }
 0x20f   : > { %6499 = vmatpush3.bf16.msra.mxu1 %v7169_v58  ;;  %1346 = vmatprep.mubr.bf16.mxu1 %v8524_v15  ;;  %v7229_v58 = vld [vmem:[#allocation9 + $0xc0] ss:$12 sps:$4 sm:$0xff]  }
 0x210   : > { %2095 = vmatmul.mubr.bf16.gmra.mrb[20].mxu0 %v8520_v61  ;;  %6500 = vmatprep.subr.bf16.mxu1 %v7171_v7 }
 0x211   : > { %6523 = vmatpush3.bf16.msra.mxu0 %v7170_v20  ;;  %2102 = vmatprep.mubr.bf16.mxu0 %v8524_v15  ;;  %v7237_v20 = vld [vmem:[#allocation9 + $0xdc] ss:$12 sps:$4 sm:$0xff]  }
 0x212   : > { %6524 = vmatprep.subr.bf16.mxu0 %v7172_v50 }
 0x213   : > { %6501 = vmatpush3.bf16.msra.mxu1 %v7171_v7  ;;  %v7232_v7 = vld [vmem:[#allocation10 + $0xc0] ss:$12 sps:$4 sm:$0xff]  }
 0x214   : > { %6502 = vmatprep.subr.bf16.mxu1 %v7173_v22 }
 0x215   : > { %6525 = vmatpush3.bf16.msra.mxu0 %v7172_v50  ;;  %v7240_v50 = vld [vmem:[#allocation10 + $0xdc] ss:$12 sps:$4 sm:$0xff]  }
 0x216   : > { %1347 = vmatmul.mubr.bf16.gmra.mrb[24].mxu1 %v8548_v32  ;;  %6526 = vmatprep.subr.bf16.mxu0 %v7174_v62 }
 0x217   : > { %6503 = vmatpush3.bf16.msra.mxu1 %v7173_v22  ;;  %1354 = vmatprep.mubr.bf16.mxu1 %v8552_v8  ;;  %v7235_v22 = vld [vmem:[#allocation9 + $0xd8] ss:$12 sps:$4 sm:$0xff]  }
 0x218   : > { %2103 = vmatmul.mubr.bf16.gmra.mrb[24].mxu0 %v8548_v32  ;;  %6504 = vmatprep.subr.bf16.mxu1 %v7175_v23 }
 0x219   : > { %6527 = vmatpush3.bf16.msra.mxu0 %v7174_v62  ;;  %2110 = vmatprep.mubr.bf16.mxu0 %v8552_v8  ;;  %v7243_v62 = vld [vmem:[#allocation9 + $0xf4] ss:$12 sps:$4 sm:$0xff]  }
 0x21a   : > { %6528 = vmatprep.subr.bf16.mxu0 %v7176_v41 }
 0x21b   : > { %6505 = vmatpush3.bf16.msra.mxu1 %v7175_v23  ;;  %v7238_v23 = vld [vmem:[#allocation10 + $0xd8] ss:$12 sps:$4 sm:$0xff]  }
 0x21c   : > { %6506 = vmatprep.subr.bf16.mxu1 %v7177_v60 }
 0x21d   : > { %6529 = vmatpush3.bf16.msra.mxu0 %v7176_v41  ;;  %v7246_v41 = vld [vmem:[#allocation10 + $0xf4] ss:$12 sps:$4 sm:$0xff]  }
 0x21e   : > { %1355 = vmatmul.mubr.bf16.gmra.mrb[28].mxu1 %v8565_v14  ;;  %6530 = vmatprep.subr.bf16.mxu0 %v7178_v63 }
 0x21f   : > { %6507 = vmatpush3.bf16.msra.mxu1 %v7177_v60  ;;  %6510 = vmatprep.mubr.bf16.mxu1 %v8480_v26  ;;  %v7241_v60 = vld [vmem:[#allocation9 + $0xf0] ss:$12 sps:$4 sm:$0xff]  }
 0x220   : > { %2111 = vmatmul.mubr.bf16.gmra.mrb[28].mxu0 %v8565_v14  ;;  %6508 = vmatprep.subr.bf16.mxu1 %v7179_v11 }
 0x221   : > { %6531 = vmatpush3.bf16.msra.mxu0 %v7178_v63  ;;  %6534 = vmatprep.mubr.bf16.mxu0 %v8480_v26  ;;  %v7249_v63 = vld [vmem:[#allocation9 + $0x10c] ss:$12 sps:$4 sm:$0xff]  }
 0x222   : > { %6532 = vmatprep.subr.bf16.mxu0 %v7180_v29 }
 0x223   : > { %6509 = vmatpush3.bf16.msra.mxu1 %v7179_v11  ;;  %v7244_v11 = vld [vmem:[#allocation10 + $0xf0] ss:$12 sps:$4 sm:$0xff]  }
 0x224   : > { %1908 = vmatprep.subr.bf16.mxu1 %v7183_v40  ;;  %v7247_v40 = vld [vmem:[#allocation9 + $0x108] ss:$12 sps:$4 sm:$0xff]  }
 0x225   : > { %6533 = vmatpush3.bf16.msra.mxu0 %v7180_v29  ;;  %v7252_v29 = vld [vmem:[#allocation10 + $0x10c] ss:$12 sps:$4 sm:$0xff]  }
 0x226   : > { %6511 = vmatmul.mubr.bf16.vlgmr.msra.gmra.mrb[32].mxu1 %v8511_v36  ;;  %2664 = vmatprep.subr.bf16.mxu0 %v7186_v28  ;;  %v7255_v28 = vld [vmem:[#allocation9 + $0x124] ss:$12 sps:$4 sm:$0xff]  }
 0x227   : > { %1909 = vmatpush1.bf16.msra.mxu1 %v7181_v33  ;;  %6514 = vmatprep.mubr.bf16.mxu1 %v8544_v4  ;;  %v7250_v33 = vld [vmem:[#allocation10 + $0x108] ss:$12 sps:$4 sm:$0xff]  }
 0x228   : > { %6535 = vmatmul.mubr.bf16.vlgmr.msra.gmra.mrb[32].mxu0 %v8511_v36  ;;  %1910 = vmatprep.subr.bf16.mxu1 %v7189_v16  ;;  %v7258_v16 = vld [vmem:[#allocation10 + $0x124] ss:$12 sps:$4 sm:$0xff]  }
 0x229   : > { %2665 = vmatpush1.bf16.msra.mxu0 %v7184_v2  ;;  %6538 = vmatprep.mubr.bf16.mxu0 %v8544_v4  ;;  %v7253_v2 = vld [vmem:[#allocation9 + $0x120] ss:$12 sps:$4 sm:$0xff]  }
 0x22a   : > { %2666 = vmatprep.subr.bf16.mxu0 %v7192_v19  ;;  %v7261_v19 = vld [vmem:[#allocation9 + $0x13c] ss:$12 sps:$4 sm:$0xff]  }
 0x22b   : > { %1911 = vmatpush1.bf16.msra.mxu1 %v7187_v0  ;;  %v7256_v0 = vld [vmem:[#allocation10 + $0x120] ss:$12 sps:$4 sm:$0xff]  }
 0x22c   : > { %1912 = vmatprep.subr.bf16.mxu1 %v7195_v17  ;;  %v7264_v17 = vld [vmem:[#allocation10 + $0x13c] ss:$12 sps:$4 sm:$0xff]  }
 0x22d   : > { %2667 = vmatpush1.bf16.msra.mxu0 %v7190_v6  ;;  %v7259_v6 = vld [vmem:[#allocation9 + $0x138] ss:$12 sps:$4 sm:$0xff]  }
 0x22e   : > { %6515 = vmatmul.mubr.bf16.gmra.mrb[36].mxu1 %v8563_v13  ;;  %2668 = vmatprep.subr.bf16.mxu0 %v7198_v42  ;;  %v7267_v42 = vld [vmem:[#allocation9 + $0x154] ss:$12 sps:$4 sm:$0xff]  }
 0x22f   : > { %1913 = vmatpush1.bf16.msra.mxu1 %v7193_v35  ;;  %1940 = vmatprep.mubr.bf16.mxu1 %v8478_v59  ;;  %v7262_v35 = vld [vmem:[#allocation10 + $0x138] ss:$12 sps:$4 sm:$0xff]  }
 0x230   : > { %6539 = vmatmul.mubr.bf16.gmra.mrb[36].mxu0 %v8563_v13  ;;  %1914 = vmatprep.subr.bf16.mxu1 %v7201_v3  ;;  %v7270_v3 = vld [vmem:[#allocation10 + $0x154] ss:$12 sps:$4 sm:$0xff]  }
 0x231   : > { %2669 = vmatpush1.bf16.msra.mxu0 %v7196_v43  ;;  %2696 = vmatprep.mubr.bf16.mxu0 %v8478_v59  ;;  %v7265_v43 = vld [vmem:[#allocation9 + $0x150] ss:$12 sps:$4 sm:$0xff]  }
 0x232   : > { %2670 = vmatprep.subr.bf16.mxu0 %v7204_v49  ;;  %v7273_v49 = vld [vmem:[#allocation9 + $0x16c] ss:$12 sps:$4 sm:$0xff]  }
 0x233   : > { %1915 = vmatpush1.bf16.msra.mxu1 %v7199_v25  ;;  %v7268_v25 = vld [vmem:[#allocation10 + $0x150] ss:$12 sps:$4 sm:$0xff]  }
 0x234   : > { %1916 = vmatprep.subr.bf16.mxu1 %v7207_v12  ;;  %v7276_v12 = vld [vmem:[#allocation10 + $0x16c] ss:$12 sps:$4 sm:$0xff]  }
 0x235   : > { %2671 = vmatpush1.bf16.msra.mxu0 %v7202_v30  ;;  %v7271_v30 = vld [vmem:[#allocation9 + $0x168] ss:$12 sps:$4 sm:$0xff]  }
 0x236   : > { %2672 = vmatprep.subr.bf16.mxu0 %v7210_v37  ;;  %v7279_v37 = vld [vmem:[#allocation9 + $0x184] ss:$12 sps:$4 sm:$0xff]  }
 0x237   : > { %1917 = vmatpush1.bf16.msra.mxu1 %v7205_v53  ;;  %v7274_v53 = vld [vmem:[#allocation10 + $0x168] ss:$12 sps:$4 sm:$0xff]  }
 0x238   : > { %1918 = vmatprep.subr.bf16.mxu1 %v7213_v45  ;;  %v7282_v45 = vld [vmem:[#allocation10 + $0x184] ss:$12 sps:$4 sm:$0xff]  }
 0x239   : > { %2673 = vmatpush1.bf16.msra.mxu0 %v7208_v39  ;;  %v7277_v39 = vld [vmem:[#allocation9 + $0x180] ss:$12 sps:$4 sm:$0xff]  }
 0x23a   : > { %2674 = vmatprep.subr.bf16.mxu0 %v7216_v46  ;;  %v7285_v46 = vld [vmem:[#allocation9 + $0x19c] ss:$12 sps:$4 sm:$0xff]  }
 0x23b   : > { %1919 = vmatpush1.bf16.msra.mxu1 %v7211_v56  ;;  %v7280_v56 = vld [vmem:[#allocation10 + $0x180] ss:$12 sps:$4 sm:$0xff]  }
 0x23c   : > { %1920 = vmatprep.subr.bf16.mxu1 %v7219_v47  ;;  %v7288_v47 = vld [vmem:[#allocation10 + $0x19c] ss:$12 sps:$4 sm:$0xff]  }
 0x23d   : > { %2675 = vmatpush1.bf16.msra.mxu0 %v7214_v27  ;;  %v7283_v27 = vld [vmem:[#allocation9 + $0x198] ss:$12 sps:$4 sm:$0xff]  }
 0x23e   : > { %2676 = vmatprep.subr.bf16.mxu0 %v7222_v21  ;;  %v7291_v21 = vld [vmem:[#allocation9 + $0x1b4] ss:$12 sps:$4 sm:$0xff]  }
 0x23f   : > { %1921 = vmatpush1.bf16.msra.mxu1 %v7217_v48  ;;  %v7286_v48 = vld [vmem:[#allocation10 + $0x198] ss:$12 sps:$4 sm:$0xff]  }
 0x240   : > { %1922 = vmatprep.subr.bf16.mxu1 %v7225_v51  ;;  %v7294_v51 = vld [vmem:[#allocation10 + $0x1b4] ss:$12 sps:$4 sm:$0xff]  }
 0x241   : > { %2677 = vmatpush1.bf16.msra.mxu0 %v7220_v31  ;;  %v7289_v31 = vld [vmem:[#allocation9 + $0x1b0] ss:$12 sps:$4 sm:$0xff]  }
 0x242   : > { %2678 = vmatprep.subr.bf16.mxu0 %v7228_v5  ;;  %v7297_v5 = vld [vmem:[#allocation9 + $0x1cc] ss:$12 sps:$4 sm:$0xff]  }
 0x243   : > { %1923 = vmatpush1.bf16.msra.mxu1 %v7223_v55  ;;  %v7292_v55 = vld [vmem:[#allocation10 + $0x1b0] ss:$12 sps:$4 sm:$0xff]  }
 0x244   : > { %1924 = vmatprep.subr.bf16.mxu1 %v7231_v18  ;;  %v7300_v18 = vld [vmem:[#allocation10 + $0x1cc] ss:$12 sps:$4 sm:$0xff]  }
 0x245   : > { %2679 = vmatpush1.bf16.msra.mxu0 %v7226_v52  ;;  %v7295_v52 = vld [vmem:[#allocation9 + $0x1c8] ss:$12 sps:$4 sm:$0xff]  }
 0x246   : > { %2680 = vmatprep.subr.bf16.mxu0 %v7234_v57  ;;  %v7303_v57 = vld [vmem:[#allocation9 + $0x1e4] ss:$12 sps:$4 sm:$0xff]  }
 0x247   : > { %1925 = vmatpush1.bf16.msra.mxu1 %v7229_v58  ;;  %v7298_v58 = vld [vmem:[#allocation10 + $0x1c8] ss:$12 sps:$4 sm:$0xff]  }
 0x248   : > { %1926 = vmatprep.subr.bf16.mxu1 %v7237_v20  ;;  %v7306_v20 = vld [vmem:[#allocation10 + $0x1e4] ss:$12 sps:$4 sm:$0xff]  }
 0x249   : > { %2681 = vmatpush1.bf16.msra.mxu0 %v7232_v7  ;;  %v7301_v7 = vld [vmem:[#allocation9 + $0x1e0] ss:$12 sps:$4 sm:$0xff]  }
 0x24a   : > { %2682 = vmatprep.subr.bf16.mxu0 %v7240_v50  ;;  %v7309_v50 = vld [vmem:[#allocation9 + $0x1fc] ss:$12 sps:$4 sm:$0xff]  }
 0x24b   : > { %1927 = vmatpush1.bf16.msra.mxu1 %v7235_v22  ;;  %v7304_v22 = vld [vmem:[#allocation10 + $0x1e0] ss:$12 sps:$4 sm:$0xff]  }
 0x24c   : > { %1928 = vmatprep.subr.bf16.mxu1 %v7243_v62  ;;  %v7312_v62 = vld [vmem:[#allocation10 + $0x1fc] ss:$12 sps:$4 sm:$0xff]  }
 0x24d   : > { %2683 = vmatpush1.bf16.msra.mxu0 %v7238_v23  ;;  %v7307_v23 = vld [vmem:[#allocation9 + $0x1f8] ss:$12 sps:$4 sm:$0xff]  }
 0x24e   : > { %2684 = vmatprep.subr.bf16.mxu0 %v7246_v41  ;;  %v7315_v41 = vld [vmem:[#allocation9 + $0x214] ss:$12 sps:$4 sm:$0xff]  }
 0x24f   : > { %1929 = vmatpush1.bf16.msra.mxu1 %v7241_v60  ;;  %v7310_v60 = vld [vmem:[#allocation10 + $0x1f8] ss:$12 sps:$4 sm:$0xff]  }
 0x250   : > { %1930 = vmatprep.subr.bf16.mxu1 %v7249_v63  ;;  %v7318_v63 = vld [vmem:[#allocation10 + $0x214] ss:$12 sps:$4 sm:$0xff]  }
 0x251   : > { %2685 = vmatpush1.bf16.msra.mxu0 %v7244_v11  ;;  %v7313_v11 = vld [vmem:[#allocation9 + $0x210] ss:$12 sps:$4 sm:$0xff]  }
 0x252   : > { %2686 = vmatprep.subr.bf16.mxu0 %v7252_v29  ;;  %v7321_v29 = vld [vmem:[#allocation9 + $0x22c] ss:$12 sps:$4 sm:$0xff]  }
 0x253   : > { %1931 = vmatpush1.bf16.msra.mxu1 %v7247_v40  ;;  %v7316_v40 = vld [vmem:[#allocation10 + $0x210] ss:$12 sps:$4 sm:$0xff]  }
 0x254   : > { %1932 = vmatprep.subr.bf16.mxu1 %v7255_v28  ;;  %v7324_v28 = vld [vmem:[#allocation10 + $0x22c] ss:$12 sps:$4 sm:$0xff]  }
 0x255   : > { %2687 = vmatpush1.bf16.msra.mxu0 %v7250_v33  ;;  %v7319_v33 = vld [vmem:[#allocation9 + $0x228] ss:$12 sps:$4 sm:$0xff]  }
 0x256   : > { %2688 = vmatprep.subr.bf16.mxu0 %v7258_v16  ;;  %v7325_v16 = vld [vmem:[#allocation10 + $0xc8] ss:$12 sps:$4 sm:$0xff]  }
 0x257   : > { %1933 = vmatpush1.bf16.msra.mxu1 %v7253_v2  ;;  %v7322_v2 = vld [vmem:[#allocation10 + $0x228] ss:$12 sps:$4 sm:$0xff]  }
 0x258   : > { %1934 = vmatprep.subr.bf16.mxu1 %v7261_v19  ;;  %v7326_v19 = vld [vmem:[#allocation10 + $0x8] ss:$12 sps:$4 sm:$0xff]  }
 0x259   : > { %2689 = vmatpush1.bf16.msra.mxu0 %v7256_v0  ;;  %v7327_v0 = vld [vmem:[#allocation10 + $0xe0] ss:$12 sps:$4 sm:$0xff]  }
 0x25a   : > { %2690 = vmatprep.subr.bf16.mxu0 %v7264_v17  ;;  %v7328_v17 = vld [vmem:[#allocation10 + $0x20] ss:$12 sps:$4 sm:$0xff]  }
 0x25b   : > { %1935 = vmatpush1.bf16.msra.mxu1 %v7259_v6  ;;  %v7329_v6 = vld [vmem:[#allocation10 + $0xf8] ss:$12 sps:$4 sm:$0xff]  }
 0x25c   : > { %1936 = vmatprep.subr.bf16.mxu1 %v7267_v42  ;;  %v7330_v42 = vld [vmem:[#allocation10 + $0x38] ss:$12 sps:$4 sm:$0xff]  }
 0x25d   : > { %2691 = vmatpush1.bf16.msra.mxu0 %v7262_v35  ;;  %v7331_v35 = vld [vmem:[#allocation10 + $0x110] ss:$12 sps:$4 sm:$0xff]  }
 0x25e   : > { %2692 = vmatprep.subr.bf16.mxu0 %v7270_v3  ;;  %v7332_v3 = vld [vmem:[#allocation10 + $0x50] ss:$12 sps:$4 sm:$0xff]  }
 0x25f   : > { %1937 = vmatpush1.bf16.msra.mxu1 %v7265_v43  ;;  %v7333_v43 = vld [vmem:[#allocation10 + $0x128] ss:$12 sps:$4 sm:$0xff]  }
 0x260   : > { %1938 = vmatprep.subr.bf16.mxu1 %v7273_v49  ;;  %v7334_v49 = vld [vmem:[#allocation10 + $0x68] ss:$12 sps:$4 sm:$0xff]  }
 0x261   : > { %2693 = vmatpush1.bf16.msra.mxu0 %v7268_v25  ;;  %v7335_v25 = vld [vmem:[#allocation10 + $0x140] ss:$12 sps:$4 sm:$0xff]  }
 0x262   : > { %2694 = vmatprep.subr.bf16.mxu0 %v7276_v12  ;;  %v7336_v12 = vld [vmem:[#allocation10 + $0x80] ss:$12 sps:$4 sm:$0xff]  }
 0x263   : > { %1939 = vmatpush1.bf16.msra.mxu1 %v7271_v30  ;;  %v7337_v30 = vld [vmem:[#allocation10 + $0x158] ss:$12 sps:$4 sm:$0xff]  }
 0x264   : > { %1981 = vmatprep.subr.bf16.mxu1 %v7279_v37  ;;  %v7338_v37 = vld [vmem:[#allocation10 + $0x98] ss:$12 sps:$4 sm:$0xff]  }
 0x265   : > { %2695 = vmatpush1.bf16.msra.mxu0 %v7274_v53  ;;  %v7339_v53 = vld [vmem:[#allocation10 + $0x170] ss:$12 sps:$4 sm:$0xff]  }
 0x266   : > { %1941 = vmatmul.mubr.bf16.vlgmr.msra.gmra.mrb[40].mxu1 %v8484_v44  ;;  %2737 = vmatprep.subr.bf16.mxu0 %v7282_v45  ;;  %v7340_v45 = vld [vmem:[#allocation10 + $0xb0] ss:$12 sps:$4 sm:$0xff]  }
 0x267   : > { %1950 = vmatprep.mubr.bf16.mxu1 %v8499_v34  ;;  %1982 = vmatpush1.bf16.msra.mxu1 %v7277_v39  ;;  %v7341_v39 = vld [vmem:[#allocation10 + $0x188] ss:$12 sps:$4 sm:$0xff]  }
 0x268   : > { %2697 = vmatmul.mubr.bf16.vlgmr.msra.gmra.mrb[40].mxu0 %v8484_v44  ;;  %1983 = vmatprep.subr.bf16.mxu1 %v7285_v46  ;;  %v7342_v46 = vld [vmem:[#allocation10 + $0x1a0] ss:$12 sps:$4 sm:$0xff]  }
 0x269   : > { %2706 = vmatprep.mubr.bf16.mxu0 %v8499_v34  ;;  %2738 = vmatpush1.bf16.msra.mxu0 %v7280_v56  ;;  %v7343_v56 = vld [vmem:[#allocation10 + $0x1b8] ss:$12 sps:$4 sm:$0xff]  }
 0x26a   : > { %2739 = vmatprep.subr.bf16.mxu0 %v7288_v47  ;;  %v7344_v47 = vld [vmem:[#allocation10 + $0x1d0] ss:$12 sps:$4 sm:$0xff]  }
 0x26b   : > { %1984 = vmatpush1.bf16.msra.mxu1 %v7283_v27  ;;  %v7346_v27 = vld [vmem:[#allocation10 + $0x200] ss:$12 sps:$4 sm:$0xff]  }
 0x26c   : > { %1985 = vmatprep.subr.bf16.mxu1 %v7291_v21 }
 0x26d   : > { %2740 = vmatpush1.bf16.msra.mxu0 %v7286_v48 }
 0x26e   : > { %1951 = vmatmul.mubr.bf16.gmra.mrb[44].mxu1 %v8520_v61  ;;  %2741 = vmatprep.subr.bf16.mxu0 %v7294_v51 }
 0x26f   : > { %1960 = vmatprep.mubr.bf16.mxu1 %v8524_v15  ;;  %1986 = vmatpush1.bf16.msra.mxu1 %v7289_v31 }
 0x270   : > { %2707 = vmatmul.mubr.bf16.gmra.mrb[44].mxu0 %v8520_v61  ;;  %1987 = vmatprep.subr.bf16.mxu1 %v7297_v5 }
 0x271   : > { %2716 = vmatprep.mubr.bf16.mxu0 %v8524_v15  ;;  %2742 = vmatpush1.bf16.msra.mxu0 %v7292_v55 }
 0x272   : > { %2743 = vmatprep.subr.bf16.mxu0 %v7300_v18  ;;  %v7348_v18 = vld [vmem:[#allocation10 + $0x230] ss:$12 sps:$4 sm:$0xff]  }
 0x273   : > { %1988 = vmatpush1.bf16.msra.mxu1 %v7295_v52 }
 0x274   : > { %1989 = vmatprep.subr.bf16.mxu1 %v7303_v57 }
 0x275   : > { %2744 = vmatpush1.bf16.msra.mxu0 %v7298_v58 }
 0x276   : > { %1961 = vmatmul.mubr.bf16.gmra.mrb[48].mxu1 %v8548_v32  ;;  %2745 = vmatprep.subr.bf16.mxu0 %v7306_v20 }
 0x277   : > { %1970 = vmatprep.mubr.bf16.mxu1 %v8552_v8  ;;  %1990 = vmatpush1.bf16.msra.mxu1 %v7301_v7 }
 0x278   : > { %2717 = vmatmul.mubr.bf16.gmra.mrb[48].mxu0 %v8548_v32  ;;  %1991 = vmatprep.subr.bf16.mxu1 %v7309_v50 }
 0x279   : > { %2726 = vmatprep.mubr.bf16.mxu0 %v8552_v8  ;;  %2746 = vmatpush1.bf16.msra.mxu0 %v7304_v22 }
 0x27a   : > { %2747 = vmatprep.subr.bf16.mxu0 %v7312_v62 }
 0x27b   : > { %1992 = vmatpush1.bf16.msra.mxu1 %v7307_v23 }
 0x27c   : > { %1993 = vmatprep.subr.bf16.mxu1 %v7315_v41 }
 0x27d   : > { %2748 = vmatpush1.bf16.msra.mxu0 %v7310_v60 }
 0x27e   : > { %1971 = vmatmul.mubr.bf16.gmra.mrb[52].mxu1 %v8565_v14  ;;  %2749 = vmatprep.subr.bf16.mxu0 %v7318_v63 }
 0x27f   : > { %1994 = vmatpush1.bf16.msra.mxu1 %v7313_v11  ;;  %2013 = vmatprep.mubr.bf16.mxu1 %v9855_v24 }
 0x280   : > { %2727 = vmatmul.mubr.bf16.gmra.mrb[52].mxu0 %v8565_v14  ;;  %1995 = vmatprep.subr.bf16.mxu1 %v7321_v29 }
 0x281   : > { %2750 = vmatpush1.bf16.msra.mxu0 %v7316_v40  ;;  %2769 = vmatprep.mubr.bf16.mxu0 %v9855_v24 }
 0x282   : > { %2751 = vmatprep.subr.bf16.mxu0 %v7324_v28 }
 0x283   : > { %1996 = vmatpush1.bf16.msra.mxu1 %v7319_v33 }
 0x284   : > { %6294 = vmatprep.subr.bf16.mxu1 %v7325_v16 }
 0x285   : > { %2752 = vmatpush1.bf16.msra.mxu0 %v7322_v2 }
 0x286   : > { %2014 = vmatmul.mubr.bf16.vlgmr.msra.gmra.mrb[40].mxu1 %v8480_v26 }
 0x287   : > { %6295 = vmatpush3.bf16.msra.mxu1 %v7326_v19  ;;  %2023 = vmatprep.mubr.bf16.mxu1 %v9855_v24 }
 0x288   : > { %2770 = vmatmul.mubr.bf16.vlgmr.msra.gmra.mrb[40].mxu0 %v8480_v26  ;;  %6296 = vmatprep.subr.bf16.mxu1 %v7327_v0 }
 0x289   : > { %2779 = vmatprep.mubr.bf16.mxu0 %v9855_v24 }
 0x28b   : > { %6297 = vmatpush3.bf16.msra.mxu1 %v7328_v17 }
 0x28c   : > { %6298 = vmatprep.subr.bf16.mxu1 %v7329_v6 }
 0x28e   : > { %2024 = vmatmul.mubr.bf16.gmra.mrb[44].mxu1 %v8511_v36 }
 0x28f   : > { %6299 = vmatpush3.bf16.msra.mxu1 %v7330_v42  ;;  %2033 = vmatprep.mubr.bf16.mxu1 %v9855_v24 }
 0x290   : > { %2780 = vmatmul.mubr.bf16.gmra.mrb[44].mxu0 %v8511_v36  ;;  %6300 = vmatprep.subr.bf16.mxu1 %v7331_v35 }
 0x291   : > { %2789 = vmatprep.mubr.bf16.mxu0 %v9855_v24 }
 0x293   : > { %6301 = vmatpush3.bf16.msra.mxu1 %v7332_v3 }
 0x294   : > { %6302 = vmatprep.subr.bf16.mxu1 %v7333_v43 }
 0x296   : > { %2034 = vmatmul.mubr.bf16.gmra.mrb[48].mxu1 %v8544_v4 }
 0x297   : > { %6303 = vmatpush3.bf16.msra.mxu1 %v7334_v49  ;;  %2043 = vmatprep.mubr.bf16.mxu1 %v9855_v24 }
 0x298   : > { %2790 = vmatmul.mubr.bf16.gmra.mrb[48].mxu0 %v8544_v4  ;;  %6304 = vmatprep.subr.bf16.mxu1 %v7335_v25 }
 0x299   : > { %2799 = vmatprep.mubr.bf16.mxu0 %v9855_v24 }
 0x29b   : > { %6305 = vmatpush3.bf16.msra.mxu1 %v7336_v12 }
 0x29c   : > { %6306 = vmatprep.subr.bf16.mxu1 %v7337_v30 }
 0x29e   : > { %2044 = vmatmul.mubr.bf16.gmra.mrb[52].mxu1 %v8563_v13 }
 0x29f   : > { %6307 = vmatpush3.bf16.msra.mxu1 %v7338_v37  ;;  %2842 = vmatprep.mubr.bf16.mxu1 %v8478_v59  ;;  %v7345_v59 = vld [vmem:[#allocation10 + $0x1e8] ss:$12 sps:$4 sm:$0xff]  }
 0x2a0   : > { %2800 = vmatmul.mubr.bf16.gmra.mrb[52].mxu0 %v8563_v13  ;;  %6308 = vmatprep.subr.bf16.mxu1 %v7339_v53 }
 0x2a3   : > { %6309 = vmatpush3.bf16.msra.mxu1 %v7340_v45 }
 0x2a4   : > { %6542 = vmatprep.subr.bf16.mxu1 %v7341_v39 }
 0x2a6   : > { %2843 = vmatmul.mubr.bf16.vlgmr.msra.gmra.mrb[56].mxu1 %v8484_v44  ;;  %v7347_v44 = vld [vmem:[#allocation10 + $0x218] ss:$12 sps:$4 sm:$0xff]  }
 0x2a7   : > { %2850 = vmatprep.mubr.bf16.mxu1 %v8499_v34  ;;  %6543 = vmatpush3.bf16.msra.mxu1 %v7341_v39 }
 0x2a8   : > { %6544 = vmatprep.subr.bf16.mxu1 %v7342_v46 }
 0x2ab   : > { %6545 = vmatpush3.bf16.msra.mxu1 %v7342_v46 }
 0x2ac   : > { %6546 = vmatprep.subr.bf16.mxu1 %v7343_v56 }
 0x2ae   : > { %2851 = vmatmul.mubr.bf16.gmra.mrb[60].mxu1 %v8520_v61 }
 0x2af   : > { %2858 = vmatprep.mubr.bf16.mxu1 %v8524_v15  ;;  %6547 = vmatpush3.bf16.msra.mxu1 %v7343_v56 }
 0x2b0   : > { %6548 = vmatprep.subr.bf16.mxu1 %v7344_v47 }
 0x2b3   : > { %6549 = vmatpush3.bf16.msra.mxu1 %v7344_v47 }
 0x2b4   : > { %6550 = vmatprep.subr.bf16.mxu1 %v7345_v59 }
 0x2b6   : > { %2859 = vmatmul.mubr.bf16.gmra.mrb[64].mxu1 %v8548_v32 }
 0x2b7   : > { %2866 = vmatprep.mubr.bf16.mxu1 %v8552_v8  ;;  %6551 = vmatpush3.bf16.msra.mxu1 %v7345_v59 }
 0x2b8   : > { %6552 = vmatprep.subr.bf16.mxu1 %v7346_v27 }
 0x2b9   : > { %v1259_v34 = vpop.f32.mrb[0].mxu1 }
 0x2ba   : > { %v1186_v21 = vpop.f32.mrb[0].mxu0  ;;  %v1261_v48 = vpop.f32.mrb[1].mxu1 }
 0x2bb   : > { %v1260_v51 = vadd.f32 %v1259_v34, %v1186_v21  ;;  %6553 = vmatpush3.bf16.msra.mxu1 %v7346_v27  ;;  %v1188_v61 = vpop.f32.mrb[1].mxu0  ;;  %v1263_v15 = vpop.f32.mrb[2].mxu1 }
 0x2bc   : > { %v1262_v31 = vadd.f32 %v1261_v48, %v1188_v61  ;;  %v1190_v5 = vpop.f32.mrb[2].mxu0  ;;  %v1265_v55 = vpop.f32.mrb[3].mxu1  ;;  %6554 = vmatprep.subr.bf16.mxu1 %v7347_v44 }
 0x2bd   : > { %v1264_v52 = vadd.f32 %v1263_v15, %v1190_v5  ;;  %v1192_v57 = vpop.f32.mrb[3].mxu0 }
 0x2be   : > { %v1266_v32 = vadd.f32 %v1265_v55, %v1192_v57  ;;  %2867 = vmatmul.mubr.bf16.gmra.mrb[68].mxu1 %v8565_v14 }
 0x2bf   : > { %v8633_v8 = vpack.c.bf16 %v1264_v52, %v1260_v51  ;;  %6555 = vmatpush3.bf16.msra.mxu1 %v7347_v44  ;;  %6558 = vmatprep.mubr.bf16.mxu1 %v8480_v26 }
 0x2c0   : > { %v8636_v58 = vpack.c.bf16 %v1266_v32, %v1262_v31  ;;  %6556 = vmatprep.subr.bf16.mxu1 %v7348_v18 }
 0x2c1   : > { %v1269_v20 = vpop.f32.mrb[4].mxu1 }
 0x2c2   : > { %v1196_v7 = vpop.f32.mrb[4].mxu0  ;;  %v1271_v50 = vpop.f32.mrb[5].mxu1 }
 0x2c3   : > { %v1270_v22 = vadd.f32 %v1269_v20, %v1196_v7  ;;  %6557 = vmatpush3.bf16.msra.mxu1 %v7348_v18  ;;  %v1198_v62 = vpop.f32.mrb[5].mxu0  ;;  %v1273_v23 = vpop.f32.mrb[6].mxu1 }
 0x2c4   : > { %v1272_v41 = vadd.f32 %v1271_v50, %v1198_v62  ;;  %v1200_v60 = vpop.f32.mrb[6].mxu0  ;;  %v1275_v63 = vpop.f32.mrb[7].mxu1 }
 0x2c5   : > { %v1274_v11 = vadd.f32 %v1273_v23, %v1200_v60  ;;  %v1202_v14 = vpop.f32.mrb[7].mxu0 }
 0x2c6   : > { %v1276_v29 = vadd.f32 %v1275_v63, %v1202_v14  ;;  %6559 = vmatmul.mubr.bf16.vlgmr.msra.gmra.mrb[72].mxu1 %v8511_v36 }
 0x2c7   : > { %v8639_v40 = vpack.c.bf16 %v1274_v11, %v1270_v22  ;;  %6562 = vmatprep.mubr.bf16.mxu1 %v8544_v4 }
 0x2c8   : > { %v8642_v26 = vpack.c.bf16 %v1276_v29, %v1272_v41 }
 0x2c9   : > { %v1279_v28 = vpop.f32.mrb[8].mxu1 }
 0x2ca   : > { %v1206_v33 = vpop.f32.mrb[8].mxu0  ;;  %v1281_v16 = vpop.f32.mrb[9].mxu1 }
 0x2cb   : > { %v1280_v2 = vadd.f32 %v1279_v28, %v1206_v33  ;;  %v1208_v19 = vpop.f32.mrb[9].mxu0  ;;  %v1283_v0 = vpop.f32.mrb[10].mxu1 }
 0x2cc   : > { %v1282_v17 = vadd.f32 %v1281_v16, %v1208_v19  ;;  %v1210_v6 = vpop.f32.mrb[10].mxu0  ;;  %v1285_v42 = vpop.f32.mrb[11].mxu1 }
 0x2cd   : > { %v1284_v35 = vadd.f32 %v1283_v0, %v1210_v6  ;;  %v1212_v3 = vpop.f32.mrb[11].mxu0 }
 0x2ce   : > { %v1286_v43 = vadd.f32 %v1285_v42, %v1212_v3  ;;  %6563 = vmatmul.mubr.bf16.gmra.mrb[76].mxu1 %v8563_v13 }
 0x2cf   : > { %v8645_v36 = vpack.c.bf16 %v1284_v35, %v1280_v2  ;;  %6574 = vmatprep.mubr.msk.bf16.mxu1 %vm2971_vm0, %v8633_v8 }
 0x2d0   : > { %v8649_v4 = vpack.c.bf16 %v1286_v43, %v1282_v17 }
 0x2d1   : > { %v1289_v49 = vpop.f32.mrb[12].mxu1 }
 0x2d2   : > { %v1216_v25 = vpop.f32.mrb[12].mxu0  ;;  %v1291_v12 = vpop.f32.mrb[13].mxu1 }
 0x2d3   : > { %v1290_v30 = vadd.f32 %v1289_v49, %v1216_v25  ;;  %v1218_v37 = vpop.f32.mrb[13].mxu0  ;;  %v1293_v53 = vpop.f32.mrb[14].mxu1 }
 0x2d4   : > { %v1292_v45 = vadd.f32 %v1291_v12, %v1218_v37  ;;  %v1220_v39 = vpop.f32.mrb[14].mxu0  ;;  %v1295_v46 = vpop.f32.mrb[15].mxu1 }
 0x2d5   : > { %v1294_v56 = vadd.f32 %v1293_v53, %v1220_v39  ;;  %v1222_v47 = vpop.f32.mrb[15].mxu0 }
 0x2d6   : > { %v1296_v59 = vadd.f32 %v1295_v46, %v1222_v47 }
 0x2d7   : > { %v8651_v13 = vpack.c.bf16 %v1294_v56, %v1290_v30 }
 0x2d8   : > { %v8653_v27 = vpack.c.bf16 %v1296_v59, %v1292_v45 }
 0x2d9   : > { %v6206_v44 = vpop.f32.mrb[16].mxu1 }
 0x2da   : > { %v6207_v34 = vpop.f32.mrb[17].mxu1 }
 0x2db   : > { %v6208_v21 = vadd.f32 %v6207_v34, %v6206_v44  ;;  %v6258_v48 = vpop.f32.mrb[16].mxu0  ;;  %v6209_v51 = vpop.f32.mrb[18].mxu1 }
 0x2dc   : > { %v6259_v61 = vpop.f32.mrb[17].mxu0  ;;  %v6210_v15 = vpop.f32.mrb[19].mxu1 }
 0x2dd   : > { %v6260_v31 = vadd.f32 %v6259_v61, %v6258_v48  ;;  %v6211_v5 = vadd.f32 %v6210_v15, %v6209_v51  ;;  %v6261_v55 = vpop.f32.mrb[18].mxu0 }
 0x2de   : > { %v6262_v18 = vpop.f32.mrb[19].mxu0 }
 0x2df   : > { %v6263_v52 = vadd.f32 %v6262_v18, %v6261_v55 }
 0x2e1   : > { %v6212_v57 = vpop.f32.mrb[20].mxu1 }
 0x2e2   : > { %v6213_v32 = vpop.f32.mrb[21].mxu1 }
 0x2e3   : > { %v6214_v20 = vadd.f32 %v6213_v32, %v6212_v57  ;;  %v6264_v7 = vpop.f32.mrb[20].mxu0  ;;  %v6215_v50 = vpop.f32.mrb[22].mxu1 }
 0x2e4   : > { %v6265_v22 = vpop.f32.mrb[21].mxu0  ;;  %v6216_v62 = vpop.f32.mrb[23].mxu1 }
 0x2e5   : > { %v6266_v23 = vadd.f32 %v6265_v22, %v6264_v7  ;;  %v6217_v41 = vadd.f32 %v6216_v62, %v6215_v50  ;;  %v6267_v60 = vpop.f32.mrb[22].mxu0 }
 0x2e6   : > { %v6268_v63 = vpop.f32.mrb[23].mxu0 }
 0x2e7   : > { %v6269_v11 = vadd.f32 %v6268_v63, %v6267_v60 }
 0x2e9   : > { %v6218_v14 = vpop.f32.mrb[24].mxu1 }
 0x2ea   : > { %v6219_v29 = vpop.f32.mrb[25].mxu1 }
 0x2eb   : > { %v6220_v28 = vadd.f32 %v6219_v29, %v6218_v14  ;;  %v6270_v33 = vpop.f32.mrb[24].mxu0  ;;  %v6221_v16 = vpop.f32.mrb[26].mxu1 }
 0x2ec   : > { %v6271_v2 = vpop.f32.mrb[25].mxu0  ;;  %v6222_v19 = vpop.f32.mrb[27].mxu1 }
 0x2ed   : > { %v6272_v0 = vadd.f32 %v6271_v2, %v6270_v33  ;;  %v6223_v17 = vadd.f32 %v6222_v19, %v6221_v16  ;;  %v6273_v6 = vpop.f32.mrb[26].mxu0 }
 0x2ee   : > { %v6274_v42 = vpop.f32.mrb[27].mxu0 }
 0x2ef   : > { %v6275_v35 = vadd.f32 %v6274_v42, %v6273_v6 }
 0x2f1   : > { %v6224_v3 = vpop.f32.mrb[28].mxu1 }
 0x2f2   : > { %v6225_v43 = vpop.f32.mrb[29].mxu1 }
 0x2f3   : > { %v6226_v49 = vadd.f32 %v6225_v43, %v6224_v3  ;;  %v6276_v25 = vpop.f32.mrb[28].mxu0  ;;  %v6227_v12 = vpop.f32.mrb[30].mxu1 }
 0x2f4   : > { %v6277_v30 = vpop.f32.mrb[29].mxu0  ;;  %v6228_v37 = vpop.f32.mrb[31].mxu1 }
 0x2f5   : > { %v6278_v53 = vadd.f32 %v6277_v30, %v6276_v25  ;;  %v6229_v45 = vadd.f32 %v6228_v37, %v6227_v12  ;;  %v6279_v39 = vpop.f32.mrb[30].mxu0 }
 0x2f6   : > { %v6280_v46 = vpop.f32.mrb[31].mxu0 }
 0x2f7   : > { %v6281_v56 = vadd.f32 %v6280_v46, %v6279_v39 }
 0x2f9   : > { %v6512_v47 = vpop.f32.mrb[32].mxu1 }
 0x2fa   : > { %v1406_v59 = vadd.f32 %v6512_v47, %v6214_v20  ;;  %v1397_v44 = vpop.f32.mrb[33].mxu1 }
 0x2fb   : > { %v1398_v34 = vadd.f32 %v6208_v21, %v1397_v44  ;;  %v6536_v48 = vpop.f32.mrb[32].mxu0  ;;  %v6513_v51 = vpop.f32.mrb[34].mxu1 }
 0x2fc   : > { %v2162_v61 = vadd.f32 %v6536_v48, %v6266_v23  ;;  %v1409_v15 = vadd.f32 %v6513_v51, %v6217_v41  ;;  %v2153_v55 = vpop.f32.mrb[33].mxu0  ;;  %v1400_v18 = vpop.f32.mrb[35].mxu1 }
 0x2fd   : > { %v2154_v57 = vadd.f32 %v6260_v31, %v2153_v55  ;;  %v1401_v32 = vadd.f32 %v6211_v5, %v1400_v18  ;;  %v6537_v7 = vpop.f32.mrb[34].mxu0 }
 0x2fe   : > { %v8655_v50 = vpack.c.bf16 %v1409_v15, %v1406_v59  ;;  %v2165_v22 = vadd.f32 %v6537_v7, %v6269_v11  ;;  %v2156_v62 = vpop.f32.mrb[35].mxu0 }
 0x2ff   : > { %v8657_v60 = vpack.c.bf16 %v1401_v32, %v1398_v34  ;;  %v2157_v63 = vadd.f32 %v6263_v52, %v2156_v62 }
 0x300   : > { %9891 = vst [vmem:[#allocation23_spill] sm:$0xff] %v8655_v50  ;;  %v8659_v14 = vpack.c.bf16 %v2165_v22, %v2162_v61 }
 0x301   : > { %9892 = vst [vmem:[#allocation24_spill] sm:$0xff] %v8657_v60  ;;  %v8661_v20 = vpack.c.bf16 %v2157_v63, %v2154_v57  ;;  %v6516_v21 = vpop.f32.mrb[36].mxu1 }
 0x302   : > { %9893 = vst [vmem:[#allocation25_spill] sm:$0xff] %v8659_v14  ;;  %v1422_v29 = vadd.f32 %v6516_v21, %v6226_v49  ;;  %v1413_v23 = vpop.f32.mrb[37].mxu1 }
 0x303   : > { %9894 = vst [vmem:[#allocation26_spill] sm:$0xff] %v8661_v20  ;;  %v1414_v41 = vadd.f32 %v6220_v28, %v1413_v23  ;;  %v6540_v33 = vpop.f32.mrb[36].mxu0  ;;  %v6517_v16 = vpop.f32.mrb[38].mxu1 }
 0x304   : > { %v2178_v31 = vadd.f32 %v6540_v33, %v6278_v53  ;;  %v1425_v5 = vadd.f32 %v6517_v16, %v6229_v45  ;;  %v2169_v2 = vpop.f32.mrb[37].mxu0  ;;  %v1416_v19 = vpop.f32.mrb[39].mxu1 }
 0x305   : > { %v2170_v6 = vadd.f32 %v6272_v0, %v2169_v2  ;;  %v1417_v11 = vadd.f32 %v6223_v17, %v1416_v19  ;;  %v6541_v42 = vpop.f32.mrb[38].mxu0 }
 0x306   : > { %v8663_v3 = vpack.c.bf16 %v1425_v5, %v1422_v29  ;;  %v2181_v52 = vadd.f32 %v6541_v42, %v6281_v56  ;;  %v2172_v43 = vpop.f32.mrb[39].mxu0 }
 0x307   : > { %v8665_v25 = vpack.c.bf16 %v1417_v11, %v1414_v41  ;;  %v2173_v12 = vadd.f32 %v6275_v35, %v2172_v43 }
 0x308   : > { %9895 = vst [vmem:[#allocation27_spill] sm:$0xff] %v8663_v3  ;;  %v8667_v30 = vpack.c.bf16 %v2181_v52, %v2178_v31 }
 0x309   : > { %9896 = vst [vmem:[#allocation28_spill] sm:$0xff] %v8665_v25  ;;  %v8669_v49 = vpack.c.bf16 %v2173_v12, %v2170_v6 }
 0x30a   : > { %9897 = vst [vmem:[#allocation29_spill] sm:$0xff] %v8667_v30 }
 0x30b   : > { %9898 = vst [vmem:[#allocation30_spill] sm:$0xff] %v8669_v49 }
 0x359   : > { %v2015_v28 = vpop.f32.mrb[40].mxu1 }
 0x35a   : > { %v2017_v37 = vpop.f32.mrb[41].mxu1 }
 0x35b   : > { %v2771_v53 = vpop.f32.mrb[40].mxu0  ;;  %v2019_v45 = vpop.f32.mrb[42].mxu1 }
 0x35c   : > { %v2963_v39 = vpack.c.bf16 %v2019_v45, %v2015_v28  ;;  %v2773_v46 = vpop.f32.mrb[41].mxu0  ;;  %v2021_v0 = vpop.f32.mrb[43].mxu1 }
 0x35d   : > { %v8671_v17 = vpack.c.bf16 %v2021_v0, %v2017_v37  ;;  %v2775_v47 = vpop.f32.mrb[42].mxu0 }
 0x35e   : > { %v8673_v59 = vpack.c.bf16 %v2775_v47, %v2771_v53  ;;  %v2777_v56 = vpop.f32.mrb[43].mxu0  ;;  %3262 = vrot.lane.b32.xlu0 %v2963_v39, %s7906_s23  ;;  %6878 = vmatprep.subr.msk.bf16.mxu1 %vm2971_vm0, %v2963_v39  ;;  %v2985_v35 = vsel %vm2971_vm0, %v2963_v39, 0 }
 0x35f   : > { %v8678_v44 = vpack.c.bf16 %v2777_v56, %v2773_v46  ;;  %6567 = vmatpush3.bf16.xpose.msra.mxu1 %v2985_v35 }
 0x361   : > { %v2025_v34 = vpop.f32.mrb[44].mxu1 }
 0x362   : > { %3250 = vrot.lane.b32.xlu0 %v8633_v8, %s7906_s23  ;;  %v2027_v48 = vpop.f32.mrb[45].mxu1 }
 0x363   : > { %v2781_v51 = vpop.f32.mrb[44].mxu0  ;;  %v2029_v61 = vpop.f32.mrb[46].mxu1 }
 0x364   : > { %v2964_v15 = vpack.c.bf16 %v2029_v61, %v2025_v34  ;;  %v2783_v55 = vpop.f32.mrb[45].mxu0  ;;  %v2031_v18 = vpop.f32.mrb[47].mxu1 }
 0x365   : > { %v8682_v57 = vpack.c.bf16 %v2031_v18, %v2027_v48  ;;  %v2785_v32 = vpop.f32.mrb[46].mxu0 }
 0x366   : > { %v2968_v7 = vpack.c.bf16 %v2785_v32, %v2781_v51  ;;  %v2787_v22 = vpop.f32.mrb[47].mxu0  ;;  %3254 = vrot.lane.b32.xlu0 %v8645_v36, %s7906_s23  ;;  %3264 = vrot.lane.b32.xlu1 %v2964_v15, %s7906_s23  ;;  %v2988_v62 = vsel %vm2971_vm0, %v2964_v15, 0 }
 0x367   : > { %v8688_v63 = vpack.c.bf16 %v2787_v22, %v2783_v55  ;;  %6879 = vmatprep.subr.msk.bf16.mxu1 %vm2971_vm0, %v2964_v15 }
 0x368   : > { %6569 = vmatpush3.bf16.xpose.msra.mxu1 %v2988_v62 }
 0x369   : > { %v2035_v8 = vpop.f32.mrb[48].mxu1 }
 0x36a   : > { %v2037_v21 = vpop.f32.mrb[49].mxu1  ;;  %3471 = vrot.lane.b32.xlu0 %v8673_v59, %s7906_s23 }
 0x36b   : > { %v2791_v29 = vpop.f32.mrb[48].mxu0  ;;  %v2039_v23 = vpop.f32.mrb[50].mxu1 }
 0x36c   : > { %v2965_v41 = vpack.c.bf16 %v2039_v23, %v2035_v8  ;;  %v2793_v33 = vpop.f32.mrb[49].mxu0  ;;  %v2041_v16 = vpop.f32.mrb[51].mxu1 }
 0x36d   : > { %v8693_v31 = vpack.c.bf16 %v2041_v16, %v2037_v21  ;;  %v2795_v5 = vpop.f32.mrb[50].mxu0 }
 0x36e   : > { %v8695_v2 = vpack.c.bf16 %v2795_v5, %v2791_v29  ;;  %v2797_v19 = vpop.f32.mrb[51].mxu0  ;;  %3266 = vrot.lane.b32.xlu1 %v2965_v41, %s7906_s23  ;;  %6880 = vmatprep.subr.msk.bf16.mxu1 %vm2971_vm0, %v2965_v41  ;;  %v2991_v6 = vsel %vm2971_vm0, %v2965_v41, 0 }
 0x36f   : > { %v8700_v11 = vpack.c.bf16 %v2797_v19, %v2793_v33 }
 0x370   : > { %6571 = vmatpush3.bf16.xpose.msra.mxu1 %v2991_v6 }
 0x371   : > { %v2045_v42 = vpop.f32.mrb[52].mxu1 }
 0x372   : > { %v2047_v52 = vpop.f32.mrb[53].mxu1 }
 0x373   : > { %v2801_v43 = vpop.f32.mrb[52].mxu0  ;;  %v2049_v12 = vpop.f32.mrb[54].mxu1 }
 0x374   : > { %v2966_v28 = vpack.c.bf16 %v2049_v12, %v2045_v42  ;;  %v2803_v37 = vpop.f32.mrb[53].mxu0  ;;  %v2051_v53 = vpop.f32.mrb[55].mxu1 }
 0x375   : > { %v8702_v45 = vpack.c.bf16 %v2051_v53, %v2047_v52  ;;  %v2805_v39 = vpop.f32.mrb[54].mxu0 }
 0x376   : > { %v8704_v46 = vpack.c.bf16 %v2805_v39, %v2801_v43  ;;  %v2807_v0 = vpop.f32.mrb[55].mxu0  ;;  %3268 = vrot.lane.b32.xlu1 %v2966_v28, %s7906_s23  ;;  %6881 = vmatprep.subr.msk.bf16.mxu1 %vm2971_vm0, %v2966_v28  ;;  %v2994_v47 = vsel %vm2971_vm0, %v2966_v28, 0 }
 0x377   : > { %v8709_v56 = vpack.c.bf16 %v2807_v0, %v2803_v37 }
 0x378   : > { %6573 = vmatpush3.bf16.xpose.msra.mxu1 %v2994_v47 }
 0x379   : > { %6582 = vmatprep.subr.bf16.mxu1 %v8673_v59  ;;  %v6310_v35 = vpop.f32.mrb[56].mxu1 }
 0x37a   : > { %3252 = vrot.lane.b32.xlu1 %v8639_v40, %s7906_s23  ;;  %v6311_v34 = vpop.f32.mrb[57].mxu1 }
 0x37b   : > { %v6312_v48 = vadd.f32 %v6311_v34, %v6310_v35  ;;  %v6313_v51 = vpop.f32.mrb[58].mxu1 }
 0x37c   : > { %v6314_v61 = vpop.f32.mrb[59].mxu1 }
 0x37d   : > { %v6315_v15 = vadd.f32 %v6314_v61, %v6313_v51 }
 0x37e   : > { %3256 = vrot.lane.b32.xlu1 %v8651_v13, %s7906_s23 }
 0x37f   : > { %6575 = vmatmul.mubr.msk.bf16.vlgmr.msra.gmra.mrb[80].mxu1 %vm2971_vm0, %v8639_v40 }
 0x380   : > { %6578 = vmatprep.mubr.msk.bf16.mxu1 %vm2971_vm0, %v8645_v36  ;;  %6583 = vmatpush3.bf16.msra.mxu1 %v8673_v59 }
 0x381   : > { %6584 = vmatprep.subr.bf16.mxu1 %v2968_v7  ;;  %v6316_v55 = vpop.f32.mrb[60].mxu1 }
 0x382   : > { %v6317_v18 = vpop.f32.mrb[61].mxu1  ;;  %3473 = vrot.lane.b32.xlu1 %v2968_v7, %s7906_s23 }
 0x383   : > { %v6318_v32 = vadd.f32 %v6317_v18, %v6316_v55  ;;  %v6319_v22 = vpop.f32.mrb[62].mxu1 }
 0x384   : > { %6585 = vmatpush3.bf16.msra.mxu1 %v2968_v7  ;;  %v6320_v62 = vpop.f32.mrb[63].mxu1 }
 0x385   : > { %v6321_v8 = vadd.f32 %v6320_v62, %v6319_v22  ;;  %6586 = vmatprep.subr.bf16.mxu1 %v8695_v2 }
 0x387   : > { %6579 = vmatmul.mubr.msk.bf16.gmra.mrb[84].mxu1 %vm2971_vm0, %v8651_v13 }
 0x388   : > { %6587 = vmatpush3.bf16.msra.mxu1 %v8695_v2 }
 0x389   : > { %6588 = vmatprep.subr.bf16.mxu1 %v8704_v46  ;;  %v6322_v40 = vpop.f32.mrb[64].mxu1 }
 0x38a   : > { %v6323_v36 = vpop.f32.mrb[65].mxu1 }
 0x38b   : > { %v6324_v59 = vadd.f32 %v6323_v36, %v6322_v40  ;;  %v6325_v21 = vpop.f32.mrb[66].mxu1 }
 0x38c   : > { %6589 = vmatpush3.bf16.msra.mxu1 %v8704_v46  ;;  %v6326_v29 = vpop.f32.mrb[67].mxu1 }
 0x38d   : > { %v6327_v23 = vadd.f32 %v6326_v29, %v6325_v21 }
 0x391   : > { %v6328_v7 = vpop.f32.mrb[68].mxu1 }
 0x392   : > { %v6329_v41 = vpop.f32.mrb[69].mxu1 }
 0x393   : > { %v6330_v33 = vadd.f32 %v6329_v41, %v6328_v7  ;;  %v6331_v16 = vpop.f32.mrb[70].mxu1 }
 0x394   : > { %v6332_v5 = vpop.f32.mrb[71].mxu1 }
 0x395   : > { %v6333_v19 = vadd.f32 %v6332_v5, %v6331_v16  ;;  %v3588_v5 = vsel %vm2971_vm0, %v8682_v57, 0 }
 0x399   : > { %v6560_v6 = vpop.f32.mrb[72].mxu1 }
 0x39a   : > { %v2918_v13 = vadd.f32 %v6560_v6, %v6318_v32  ;;  %v2909_v42 = vpop.f32.mrb[73].mxu1  ;;  %v3594_v6 = vsel %vm2971_vm0, %v8702_v45, 0 }
 0x39b   : > { %v2910_v52 = vadd.f32 %v6312_v48, %v2909_v42  ;;  %v6561_v43 = vpop.f32.mrb[74].mxu1  ;;  %v2950_v42 = vand.u32 127, %v581_v1 }
 0x39c   : > { %v2921_v12 = vadd.f32 %v6561_v43, %v6321_v8  ;;  %v2912_v28 = vpop.f32.mrb[75].mxu1 }
 0x39d   : > { %v2913_v37 = vadd.f32 %v6315_v15, %v2912_v28  ;;  %vm8783_vm2 = vcmp.le.s32.totalorder %v2950_v42, %v8418_v38 }
 0x39e   : > { %v8728_v53 = vpack.c.bf16 %v2921_v12, %v2918_v13  ;;  %v2943_v13 = vadd.s32 16, %v8418_v38 }
 0x39f   : > { %v8730_v39 = vpack.c.bf16 %v2913_v37, %v2910_v52  ;;  %v2942_v52 = vadd.s32 8, %v8418_v38 }
 0x3a0   : > { %vm8778_vm1 = vcmp.le.s32.totalorder %v2950_v42, %v2943_v13  ;;  %v2945_v13 = vadd.s32 32, %v8418_v38 }
 0x3a1   : > { %v6564_v0 = vpop.f32.mrb[76].mxu1  ;;  %vm8792_vm3 = vcmp.le.s32.totalorder %v2950_v42, %v2942_v52 }
 0x3a2   : > { %v2934_v47 = vadd.f32 %v6564_v0, %v6330_v33  ;;  %v2925_v35 = vpop.f32.mrb[77].mxu1  ;;  %v3585_v33 = vsel %vm2971_vm0, %v8671_v17, 0  ;;  %vm8846_vm8 = vcmp.le.s32.totalorder %v2950_v42, %v2945_v13 }
 0x3a3   : > { %v2926_v34 = vadd.f32 %v6324_v59, %v2925_v35  ;;  %v6565_v51 = vpop.f32.mrb[78].mxu1 }
 0x3a4   : > { %v2937_v61 = vadd.f32 %v6565_v51, %v6333_v19  ;;  %v2928_v55 = vpop.f32.mrb[79].mxu1  ;;  %v3591_v19 = vsel %vm2971_vm0, %v8693_v31, 0 }
 0x3a5   : > { %v2929_v18 = vadd.f32 %v6327_v23, %v2928_v55 }
 0x3a6   : > { %v8732_v22 = vpack.c.bf16 %v2937_v61, %v2934_v47 }
 0x3a7   : > { %v8734_v32 = vpack.c.bf16 %v2929_v18, %v2926_v34  ;;  %v2944_v34 = vadd.s32 24, %v8418_v38 }
 0x3a9   : > { %vm8806_vm4 = vcmp.le.s32.totalorder %v2950_v42, %v2944_v34 }
 0x3d0   : > { %v3263_v48 = vpop.permute.xlu0 %3262 }
 0x3d1   : > { %6882 = vmatprep.subr.msk.bf16.mxu0 %vm2971_vm0, %v3263_v48  ;;  %v3283_v15 = vsel %vm2971_vm0, %v3263_v48, 0 }
 0x3d2   : > { %6599 = vmatpush3.bf16.xpose.msra.mxu0 %v3283_v15 }
 0x3d4   : > { %v3251_v62 = vpop.permute.xlu0 %3250 }
 0x3d5   : > { %6606 = vmatprep.mubr.msk.bf16.mxu0 %vm2971_vm0, %v3251_v62 }
 0x3d8   : > { %v3255_v8 = vpop.permute.xlu0 %3254  ;;  %v3265_v40 = vpop.permute.xlu1 %3264 }
 0x3d9   : > { %6883 = vmatprep.subr.msk.bf16.mxu0 %vm2971_vm0, %v3265_v40  ;;  %v3286_v36 = vsel %vm2971_vm0, %v3265_v40, 0  ;;  %v2948_v40 = vadd.s32 56, %v8418_v38 }
 0x3da   : > { %6601 = vmatpush3.bf16.xpose.msra.mxu0 %v3286_v36  ;;  %v2947_v36 = vadd.s32 48, %v8418_v38 }
 0x3db   : > { %vm8821_vm5 = vcmp.le.s32.totalorder %v2950_v42, %v2948_v40 }
 0x3dc   : > { %v8741_v59 = vpop.permute.xlu0 %3471  ;;  %vm8825_vm6 = vcmp.le.s32.totalorder %v2950_v42, %v2947_v36 }
 0x3dd   : > { %6614 = vmatprep.subr.bf16.mxu1 %v8741_v59 }
 0x3e0   : > { %v3267_v21 = vpop.permute.xlu1 %3266 }
 0x3e1   : > { %6884 = vmatprep.subr.msk.bf16.mxu0 %vm2971_vm0, %v3267_v21  ;;  %v3289_v29 = vsel %vm2971_vm0, %v3267_v21, 0 }
 0x3e2   : > { %6603 = vmatpush3.bf16.xpose.msra.mxu0 %v3289_v29 }
 0x3e8   : > { %v3269_v23 = vpop.permute.xlu1 %3268 }
 0x3e9   : > { %6885 = vmatprep.subr.msk.bf16.mxu0 %vm2971_vm0, %v3269_v23  ;;  %v3292_v7 = vsel %vm2971_vm0, %v3269_v23, 0 }
 0x3ea   : > { %6605 = vmatpush3.bf16.xpose.msra.mxu0 %v3292_v7  ;;  %v2946_v7 = vadd.s32 40, %v8418_v38 }
 0x3eb   : > { %6886 = vmatprep.subr.msk.bf16.mxu0 %vm2971_vm0, %v8671_v17 }
 0x3ec   : > { %v3253_v41 = vpop.permute.xlu1 %3252  ;;  %vm8832_vm7 = vcmp.le.s32.totalorder %v2950_v42, %v2946_v7 }
 0x3f0   : > { %v3257_v16 = vpop.permute.xlu1 %3256 }
 0x3f1   : > { %6607 = vmatmul.mubr.msk.bf16.vlgmr.msra.gmra.mrb[56].mxu0 %vm2971_vm0, %v3253_v41 }
 0x3f2   : > { %6610 = vmatprep.mubr.msk.bf16.mxu0 %vm2971_vm0, %v3255_v8  ;;  %6631 = vmatpush3.bf16.xpose.msra.mxu0 %v3585_v33 }
 0x3f3   : > { %6887 = vmatprep.subr.msk.bf16.mxu0 %vm2971_vm0, %v8682_v57 }
 0x3f9   : > { %6611 = vmatmul.mubr.msk.bf16.gmra.mrb[60].mxu0 %vm2971_vm0, %v3257_v16 }
 0x3fa   : > { %6633 = vmatpush3.bf16.xpose.msra.mxu0 %v3588_v5  ;;  %6638 = vmatprep.mubr.msk.bf16.mxu0 %vm2971_vm0, %v8636_v58 }
 0x3fb   : > { %6888 = vmatprep.subr.msk.bf16.mxu0 %vm2971_vm0, %v8693_v31 }
 0x402   : > { %6635 = vmatpush3.bf16.xpose.msra.mxu0 %v3591_v19 }
 0x403   : > { %6889 = vmatprep.subr.msk.bf16.mxu0 %vm2971_vm0, %v8702_v45 }
 0x40a   : > { %6637 = vmatpush3.bf16.xpose.msra.mxu0 %v3594_v6  ;;  %v9909_v6 = vmov 0 }
 0x40b   : > { %v9910_v6 = vsel %vm8825_vm6, 4294967295, %v9909_v6 }
 0x40c   : > { %9911 = vst [vmem:[#allocation31_spill] sm:$0xff] %v9910_v6 }
 0x411   : > { %6639 = vmatmul.mubr.msk.bf16.vlgmr.msra.gmra.mrb[64].mxu0 %vm2971_vm0, %v8642_v26 }
 0x412   : > { %6642 = vmatprep.mubr.msk.bf16.mxu0 %vm2971_vm0, %v8649_v4 }
 0x419   : > { %6643 = vmatmul.mubr.msk.bf16.gmra.mrb[68].mxu0 %vm2971_vm0, %v8653_v27 }
 0x452   : > { %v6576_v43 = vpop.f32.mrb[80].mxu1 }
 0x453   : > { %v3063_v28 = vmul.f32 0.05103104, %v6576_v43  ;;  %v3030_v37 = vpop.f32.mrb[81].mxu1 }
 0x454   : > { %v3061_v0 = vmul.f32 0.05103104, %v3030_v37  ;;  %v6577_v47 = vpop.f32.mrb[82].mxu1 }
 0x455   : > { %v3033_v51 = vpop.f32.mrb[83].mxu1  ;;  %v8790_v1 = vsel %vm8778_vm1, %v3063_v28, -1e+30  ;;  %v3064_v48 = vmul.f32 0.05103104, %v6577_v47 }
 0x456   : > { %v3062_v55 = vmul.f32 0.05103104, %v3033_v51  ;;  %v3083_v18 = vsel %vm2971_vm0, %v8790_v1, -inf  ;;  %v8800_v15 = vsel %vm8783_vm2, %v3061_v0, -1e+30  ;;  %v9912_v0 = vmov 0 }
 0x457   : > { %3084 = vmax.xlane.f32.xlu0 %v3083_v18  ;;  %v3077_v23 = vsel %vm2971_vm0, %v8800_v15, -inf  ;;  %v8819_v16 = vsel %vm8806_vm4, %v3064_v48, -1e+30  ;;  %v9913_v0 = vsel %vm8832_vm7, 4294967295, %v9912_v0 }
 0x458   : > { %v8804_v62 = vsel %vm8792_vm3, %v3062_v55, -1e+30  ;;  %v3086_v37 = vsel %vm2971_vm0, %v8819_v16, -inf  ;;  %9914 = vst [vmem:[#allocation32_spill] sm:$0xff] %v9913_v0 }
 0x459   : > { %v3080_v21 = vsel %vm2971_vm0, %v8804_v62, -inf }
 0x45a   : > { %v6580_v29 = vpop.f32.mrb[84].mxu1  ;;  %3081 = vmax.xlane.f32.xlu1 %v3080_v21 }
 0x45b   : > { %v3067_v41 = vmul.f32 0.05103104, %v6580_v29  ;;  %v3046_v33 = vpop.f32.mrb[85].mxu1  ;;  %3078 = vmax.xlane.f32.xlu0 %v3077_v23 }
 0x45c   : > { %v6581_v5 = vpop.f32.mrb[86].mxu1  ;;  %v3065_v47 = vmul.f32 0.05103104, %v3046_v33 }
 0x45d   : > { %v3068_v52 = vmul.f32 0.05103104, %v6581_v5  ;;  %v3049_v43 = vpop.f32.mrb[87].mxu1  ;;  %v8842_v51 = vsel %vm8825_vm6, %v3067_v41, -1e+30 }
 0x45e   : > { %v3066_v28 = vmul.f32 0.05103104, %v3049_v43  ;;  %v3095_v48 = vsel %vm2971_vm0, %v8842_v51, -inf  ;;  %v8858_v40 = vsel %vm8846_vm8, %v3065_v47, -1e+30 }
 0x45f   : > { %3087 = vmax.xlane.f32.xlu0 %v3086_v37  ;;  %v8838_v34 = vsel %vm8821_vm5, %v3068_v52, -1e+30  ;;  %v3089_v42 = vsel %vm2971_vm0, %v8858_v40, -inf }
 0x460   : > { %v3098_v38 = vsel %vm2971_vm0, %v8838_v34, -inf  ;;  %v8852_v18 = vsel %vm8832_vm7, %v3066_v28, -1e+30 }
 0x461   : > { %3099 = vmax.xlane.f32.xlu1 %v3098_v38  ;;  %v3092_v36 = vsel %vm2971_vm0, %v8852_v18, -inf }
 0x463   : > { %3096 = vmax.xlane.f32.xlu0 %v3095_v48 }
 0x465   : > { %3093 = vmax.xlane.f32.xlu1 %v3092_v36 }
 0x467   : > { %3090 = vmax.xlane.f32.xlu0 %v3089_v42 }
 0x4c4   : > { %v6608_v21 = vpop.f32.mrb[56].mxu0 }
 0x4c5   : > { %v3361_v29 = vmul.f32 0.05103104, %v6608_v21  ;;  %v3328_v23 = vpop.f32.mrb[57].mxu0 }
 0x4c6   : > { %v3359_v7 = vmul.f32 0.05103104, %v3328_v23  ;;  %v6609_v41 = vpop.f32.mrb[58].mxu0 }
 0x4c7   : > { %v3362_v33 = vmul.f32 0.05103104, %v6609_v41  ;;  %v3331_v5 = vpop.f32.mrb[59].mxu0  ;;  %v8866_v13 = vsel %vm8778_vm1, %v3361_v29, -1e+30 }
 0x4c8   : > { %v3360_v52 = vmul.f32 0.05103104, %v3331_v5  ;;  %v3381_v43 = vsel %vm2971_vm0, %v8866_v13, -inf  ;;  %v8876_v37 = vsel %vm8783_vm2, %v3359_v7, -1e+30 }
 0x4c9   : > { %3382 = vmax.xlane.f32.xlu0 %v3381_v43  ;;  %v8872_v28 = vsel %vm8806_vm4, %v3362_v33, -1e+30  ;;  %v3375_v36 = vsel %vm2971_vm0, %v8876_v37, -inf }
 0x4ca   : > { %v3384_v47 = vsel %vm2971_vm0, %v8872_v28, -inf  ;;  %v8882_v38 = vsel %vm8792_vm3, %v3360_v52, -1e+30 }
 0x4cb   : > { %3385 = vmax.xlane.f32.xlu1 %v3384_v47  ;;  %v3378_v7 = vsel %vm2971_vm0, %v8882_v38, -inf }
 0x4cc   : > { %v6612_v48 = vpop.f32.mrb[60].mxu0 }
 0x4cd   : > { %v3365_v42 = vmul.f32 0.05103104, %v6612_v48  ;;  %3376 = vmax.xlane.f32.xlu0 %v3375_v36  ;;  %v3344_v21 = vpop.f32.mrb[61].mxu0 }
 0x4ce   : > { %v3363_v29 = vmul.f32 0.05103104, %v3344_v21  ;;  %v6613_v23 = vpop.f32.mrb[62].mxu0 }
 0x4cf   : > { %v3366_v41 = vmul.f32 0.05103104, %v6613_v23  ;;  %3379 = vmax.xlane.f32.xlu1 %v3378_v7  ;;  %v3347_v33 = vpop.f32.mrb[63].mxu0  ;;  %v8890_v5 = vsel %vm8825_vm6, %v3365_v42, -1e+30 }
 0x4d0   : > { %v3364_v52 = vmul.f32 0.05103104, %v3347_v33  ;;  %v3393_v43 = vsel %vm2971_vm0, %v8890_v5, -inf  ;;  %v8900_v48 = vsel %vm8846_vm8, %v3363_v29, -1e+30 }
 0x4d1   : > { %3394 = vmax.xlane.f32.xlu0 %v3393_v43  ;;  %v8896_v47 = vsel %vm8821_vm5, %v3366_v41, -1e+30  ;;  %v3387_v21 = vsel %vm2971_vm0, %v8900_v48, -inf }
 0x4d2   : > { %v3396_v36 = vsel %vm2971_vm0, %v8896_v47, -inf  ;;  %v8906_v42 = vsel %vm8832_vm7, %v3364_v52, -1e+30 }
 0x4d3   : > { %3397 = vmax.xlane.f32.xlu1 %v3396_v36  ;;  %v3390_v23 = vsel %vm2971_vm0, %v8906_v42, -inf }
 0x4d5   : > { %3388 = vmax.xlane.f32.xlu0 %v3387_v21 }
 0x4d7   : > { %3391 = vmax.xlane.f32.xlu1 %v3390_v23 }
 0x4e4   : > { %v6640_v7 = vpop.f32.mrb[64].mxu0 }
 0x4e5   : > { %v3663_v41 = vmul.f32 0.05103104, %v6640_v7  ;;  %v3630_v29 = vpop.f32.mrb[65].mxu0 }
 0x4e6   : > { %v3661_v33 = vmul.f32 0.05103104, %v3630_v29  ;;  %v6641_v43 = vpop.f32.mrb[66].mxu0 }
 0x4e7   : > { %v3664_v24 = vmul.f32 0.05103104, %v6641_v43  ;;  %v3633_v10 = vpop.f32.mrb[67].mxu0  ;;  %v8914_v52 = vsel %vm8778_vm1, %v3663_v41, -1e+30 }
 0x4e8   : > { %v3662_v36 = vmul.f32 0.05103104, %v3633_v10  ;;  %v3683_v9 = vsel %vm2971_vm0, %v8914_v52, -inf  ;;  %v8926_v7 = vsel %vm8783_vm2, %v3661_v33, -1e+30 }
 0x4e9   : > { %v8920_v21 = vsel %vm8806_vm4, %v3664_v24, -1e+30  ;;  %3684 = vmax.xlane.f32.xlu0 %v3683_v9  ;;  %v3677_v43 = vsel %vm2971_vm0, %v8926_v7, -inf }
 0x4ea   : > { %v3686_v23 = vsel %vm2971_vm0, %v8920_v21, -inf  ;;  %v8930_v10 = vsel %vm8792_vm3, %v3662_v36, -1e+30 }
 0x4eb   : > { %3687 = vmax.xlane.f32.xlu1 %v3686_v23  ;;  %v3680_v3 = vsel %vm2971_vm0, %v8930_v10, -inf }
 0x4ec   : > { %v6644_v41 = vpop.f32.mrb[68].mxu0 }
 0x4ed   : > { %v3667_v29 = vmul.f32 0.05103104, %v6644_v41  ;;  %v3646_v24 = vpop.f32.mrb[69].mxu0  ;;  %3678 = vmax.xlane.f32.xlu0 %v3677_v43 }
 0x4ee   : > { %v3665_v9 = vmul.f32 0.05103104, %v3646_v24  ;;  %v6645_v54 = vpop.f32.mrb[70].mxu0 }
 0x4ef   : > { %v3668_v25 = vmul.f32 0.05103104, %v6645_v54  ;;  %3681 = vmax.xlane.f32.xlu1 %v3680_v3  ;;  %v3649_v33 = vpop.f32.mrb[71].mxu0  ;;  %v8938_v36 = vsel %vm8825_vm6, %v3667_v29, -1e+30 }
 0x4f0   : > { %v3666_v23 = vmul.f32 0.05103104, %v3649_v33  ;;  %v3695_v41 = vsel %vm2971_vm0, %v8938_v36, -inf  ;;  %v8948_v24 = vsel %vm8846_vm8, %v3665_v9, -1e+30  ;;  %v3085_v33 = vpop.xlane.xlu0 %3084 }
 0x4f1   : > { %3696 = vmax.xlane.f32.xlu0 %v3695_v41  ;;  %v8944_v43 = vsel %vm8821_vm5, %v3668_v25, -1e+30  ;;  %v3689_v29 = vsel %vm2971_vm0, %v8948_v24, -inf  ;;  %v8964_v41 = vpop.permute.xlu1 %3473 }
 0x4f2   : > { %v3698_v54 = vsel %vm2971_vm0, %v8944_v43, -inf  ;;  %v8954_v3 = vsel %vm8832_vm7, %v3666_v23, -1e+30 }
 0x4f3   : > { %3699 = vmax.xlane.f32.xlu1 %v3698_v54  ;;  %v3692_v25 = vsel %vm2971_vm0, %v8954_v3, -inf  ;;  %v3103_v54 = vsub.f32 %v8790_v1, %v3085_v33 }
 0x4f4   : > { %v3079_v9 = vpop.xlane.xlu0 %3078 }
 0x4f5   : > { %3690 = vmax.xlane.f32.xlu0 %v3689_v29  ;;  %v3082_v50 = vpop.xlane.xlu1 %3081  ;;  %v3113_v30 = vmul.f32 1.442695, %v3103_v54 }
 0x4f6   : > { %v3102_v14 = vsub.f32 %v8804_v62, %v3082_v50 }
 0x4f7   : > { %3693 = vmax.xlane.f32.xlu1 %v3692_v25  ;;  %v3101_v25 = vsub.f32 %v8800_v15, %v3079_v9  ;;  %7461 = vpow2.f32 %v3113_v30 }
 0x4f8   : > { %v3088_v23 = vpop.xlane.xlu0 %3087  ;;  %v3111_v0 = vmul.f32 1.442695, %v3102_v14 }
 0x4f9   : > { %v3104_v29 = vsub.f32 %v8819_v16, %v3088_v23  ;;  %v3100_v49 = vpop.xlane.xlu1 %3099  ;;  %v3109_v20 = vmul.f32 1.442695, %v3101_v25 }
 0x4fa   : > { %v3108_v1 = vsub.f32 %v8838_v34, %v3100_v49 }
 0x4fc   : > { %v3097_v60 = vpop.xlane.xlu0 %3096  ;;  %v3123_v15 = vmul.f32 1.442695, %v3108_v1 }
 0x4fd   : > { %v3094_v33 = vpop.xlane.xlu1 %3093 }
 0x4fe   : > { %v3106_v9 = vsub.f32 %v8852_v18, %v3094_v33 }
 0x500   : > { %v3091_v6 = vpop.xlane.xlu0 %3090 }
 0x501   : > { %v3105_v23 = vsub.f32 %v8858_v40, %v3091_v6  ;;  %v8974_v30 = vpop.eup %7461 }
 0x502   : > { %v3131_v14 = vsel %vm2971_vm0, %v8974_v30, 0.0 }
 0x503   : > { %v3117_v50 = vmul.f32 1.442695, %v3105_v23 }
 0x508   : > { %3477 = vrot.lane.b32.xlu1 %v8704_v46, %s7906_s23  ;;  %v3115_v46 = vmul.f32 1.442695, %v3104_v29 }
 0x50a   : > { %7463 = vpow2.f32 %v3115_v46 }
 0x50b   : > { %3475 = vrot.lane.b32.xlu0 %v8695_v2, %s7906_s23  ;;  %v3107_v2 = vsub.f32 %v8842_v51, %v3097_v60  ;;  %7465 = vpow2.f32 %v3109_v20  ;;  %v3119_v60 = vmul.f32 1.442695, %v3106_v9 }
 0x50c   : > { %7467 = vpow2.f32 %v3111_v0 }
 0x50d   : > { %v3121_v16 = vmul.f32 1.442695, %v3107_v2 }
 0x50f   : > { %7469 = vpow2.f32 %v3121_v16 }
 0x510   : > { %7471 = vpow2.f32 %v3123_v15 }
 0x511   : > { %7473 = vpow2.f32 %v3117_v50 }
 0x512   : > { %7475 = vpow2.f32 %v3119_v60 }
 0x514   : > { %v8976_v62 = vpop.eup %7463 }
 0x515   : > { %v8980_v20 = vpop.eup %7465  ;;  %v3134_v49 = vsel %vm2971_vm0, %v8976_v62, 0.0 }
 0x516   : > { %v8984_v6 = vpop.eup %7467  ;;  %v3125_v0 = vsel %vm2971_vm0, %v8980_v20, 0.0 }
 0x517   : > { %v3128_v51 = vsel %vm2971_vm0, %v8984_v6, 0.0 }
 0x519   : > { %v8988_v34 = vpop.eup %7469 }
 0x51a   : > { %v8992_v18 = vpop.eup %7471  ;;  %v3143_v40 = vsel %vm2971_vm0, %v8988_v34, 0.0 }
 0x51b   : > { %v8996_v54 = vpop.eup %7473  ;;  %v3146_v29 = vsel %vm2971_vm0, %v8992_v18, 0.0 }
 0x51c   : > { %v9000_v25 = vpop.eup %7475  ;;  %v3137_v46 = vsel %vm2971_vm0, %v8996_v54, 0.0 }
 0x51d   : > { %v3140_v2 = vsel %vm2971_vm0, %v9000_v25, 0.0 }
 0x52a   : > { %3132 = vadd.xlane.f32.xlu0 %v3131_v14 }
 0x52c   : > { %3135 = vadd.xlane.f32.xlu1 %v3134_v49 }
 0x52e   : > { %3126 = vadd.xlane.f32.xlu0 %v3125_v0 }
 0x530   : > { %3129 = vadd.xlane.f32.xlu1 %v3128_v51 }
 0x532   : > { %3144 = vadd.xlane.f32.xlu0 %v3143_v40 }
 0x534   : > { %3147 = vadd.xlane.f32.xlu1 %v3146_v29 }
 0x536   : > { %3138 = vadd.xlane.f32.xlu0 %v3137_v46 }
 0x538   : > { %3141 = vadd.xlane.f32.xlu1 %v3140_v2 }
 0x556   : > { %v3383_v1 = vpop.xlane.xlu0 %3382 }
 0x557   : > { %v3401_v33 = vsub.f32 %v8866_v13, %v3383_v1 }
 0x558   : > { %v3386_v16 = vpop.xlane.xlu1 %3385 }
 0x559   : > { %v3411_v23 = vmul.f32 1.442695, %v3401_v33  ;;  %v3402_v15 = vsub.f32 %v8872_v28, %v3386_v16 }
 0x55a   : > { %v3377_v9 = vpop.xlane.xlu0 %3376 }
 0x55b   : > { %7477 = vpow2.f32 %v3411_v23  ;;  %v3413_v50 = vmul.f32 1.442695, %v3402_v15  ;;  %v3399_v60 = vsub.f32 %v8876_v37, %v3377_v9 }
 0x55c   : > { %v3380_v14 = vpop.xlane.xlu1 %3379 }
 0x55d   : > { %7479 = vpow2.f32 %v3413_v50  ;;  %v3407_v49 = vmul.f32 1.442695, %v3399_v60  ;;  %v3400_v0 = vsub.f32 %v8882_v38, %v3380_v14 }
 0x55e   : > { %v3395_v51 = vpop.xlane.xlu0 %3394 }
 0x55f   : > { %7481 = vpow2.f32 %v3407_v49  ;;  %v3409_v40 = vmul.f32 1.442695, %v3400_v0  ;;  %v3405_v29 = vsub.f32 %v8890_v5, %v3395_v51 }
 0x560   : > { %v3398_v13 = vpop.xlane.xlu1 %3397 }
 0x561   : > { %7483 = vpow2.f32 %v3409_v40  ;;  %v3419_v46 = vmul.f32 1.442695, %v3405_v29  ;;  %v3406_v28 = vsub.f32 %v8896_v47, %v3398_v13 }
 0x562   : > { %v3389_v2 = vpop.xlane.xlu0 %3388 }
 0x563   : > { %7485 = vpow2.f32 %v3419_v46  ;;  %v3421_v1 = vmul.f32 1.442695, %v3406_v28  ;;  %v3403_v37 = vsub.f32 %v8900_v48, %v3389_v2 }
 0x564   : > { %v3392_v33 = vpop.xlane.xlu1 %3391 }
 0x565   : > { %v9013_v16 = vpop.eup %7477  ;;  %v3415_v23 = vmul.f32 1.442695, %v3403_v37  ;;  %v3404_v38 = vsub.f32 %v8906_v42, %v3392_v33  ;;  %7487 = vpow2.f32 %v3421_v1 }
 0x566   : > { %v3429_v5 = vsel %vm2971_vm0, %v9013_v16, 0.0 }
 0x567   : > { %v9018_v15 = vpop.eup %7479  ;;  %7489 = vpow2.f32 %v3415_v23  ;;  %v3417_v9 = vmul.f32 1.442695, %v3404_v38  ;;  %3430 = vadd.xlane.f32.xlu0 %v3429_v5 }
 0x568   : > { %v3432_v47 = vsel %vm2971_vm0, %v9018_v15, 0.0 }
 0x569   : > { %v9022_v50 = vpop.eup %7481  ;;  %3433 = vadd.xlane.f32.xlu1 %v3432_v47  ;;  %7491 = vpow2.f32 %v3417_v9 }
 0x56a   : > { %v3423_v48 = vsel %vm2971_vm0, %v9022_v50, 0.0 }
 0x56b   : > { %v9026_v60 = vpop.eup %7483  ;;  %3424 = vadd.xlane.f32.xlu0 %v3423_v48 }
 0x56c   : > { %v3426_v42 = vsel %vm2971_vm0, %v9026_v60, 0.0 }
 0x56d   : > { %v9030_v14 = vpop.eup %7485  ;;  %3427 = vadd.xlane.f32.xlu1 %v3426_v42 }
 0x56e   : > { %v3441_v0 = vsel %vm2971_vm0, %v9030_v14, 0.0 }
 0x56f   : > { %v9032_v49 = vpop.eup %7487 }
 0x570   : > { %v3444_v29 = vsel %vm2971_vm0, %v9032_v49, 0.0 }
 0x571   : > { %v9036_v51 = vpop.eup %7489  ;;  %3442 = vadd.xlane.f32.xlu1 %v3441_v0 }
 0x572   : > { %v3435_v40 = vsel %vm2971_vm0, %v9036_v51, 0.0 }
 0x573   : > { %3436 = vadd.xlane.f32.xlu0 %v3435_v40  ;;  %v9042_v13 = vpop.eup %7491 }
 0x574   : > { %v3438_v1 = vsel %vm2971_vm0, %v9042_v13, 0.0 }
 0x575   : > { %3445 = vadd.xlane.f32.xlu1 %v3444_v29 }
 0x576   : > { %v3685_v46 = vpop.xlane.xlu0 %3684 }
 0x577   : > { %v3703_v28 = vsub.f32 %v8914_v52, %v3685_v46 }
 0x578   : > { %v3688_v2 = vpop.xlane.xlu1 %3687 }
 0x579   : > { %v3704_v37 = vsub.f32 %v8920_v21, %v3688_v2  ;;  %3439 = vadd.xlane.f32.xlu1 %v3438_v1  ;;  %v3713_v33 = vmul.f32 1.442695, %v3703_v28 }
 0x57a   : > { %v3679_v38 = vpop.xlane.xlu0 %3678 }
 0x57b   : > { %v3715_v23 = vmul.f32 1.442695, %v3704_v37  ;;  %7493 = vpow2.f32 %v3713_v33  ;;  %v3701_v5 = vsub.f32 %v8926_v7, %v3679_v38 }
 0x57c   : > { %v3682_v9 = vpop.xlane.xlu1 %3681 }
 0x57d   : > { %v3702_v47 = vsub.f32 %v8930_v10, %v3682_v9  ;;  %7495 = vpow2.f32 %v3715_v23  ;;  %v3709_v48 = vmul.f32 1.442695, %v3701_v5 }
 0x57e   : > { %v3697_v52 = vpop.xlane.xlu0 %3696 }
 0x57f   : > { %v3711_v42 = vmul.f32 1.442695, %v3702_v47  ;;  %7497 = vpow2.f32 %v3709_v48  ;;  %v3707_v0 = vsub.f32 %v8938_v36, %v3697_v52 }
 0x580   : > { %v3700_v40 = vpop.xlane.xlu1 %3699 }
 0x581   : > { %7499 = vpow2.f32 %v3711_v42  ;;  %v3721_v21 = vmul.f32 1.442695, %v3707_v0  ;;  %v3708_v7 = vsub.f32 %v8944_v43, %v3700_v40 }
 0x582   : > { %v3691_v29 = vpop.xlane.xlu0 %3690 }
 0x583   : > { %v3705_v46 = vsub.f32 %v8948_v24, %v3691_v29  ;;  %7501 = vpow2.f32 %v3721_v21  ;;  %v3723_v33 = vmul.f32 1.442695, %v3708_v7 }
 0x584   : > { %v3694_v10 = vpop.xlane.xlu1 %3693 }
 0x585   : > { %v9052_v28 = vpop.eup %7493  ;;  %v3717_v2 = vmul.f32 1.442695, %v3705_v46  ;;  %v3706_v23 = vsub.f32 %v8954_v3, %v3694_v10 }
 0x586   : > { %v3731_v1 = vsel %vm2971_vm0, %v9052_v28, 0.0 }
 0x587   : > { %v9057_v37 = vpop.eup %7495  ;;  %3732 = vadd.xlane.f32.xlu0 %v3731_v1  ;;  %7503 = vpow2.f32 %v3717_v2  ;;  %v3719_v5 = vmul.f32 1.442695, %v3706_v23 }
 0x588   : > { %v3734_v24 = vsel %vm2971_vm0, %v9057_v37, 0.0  ;;  %7505 = vpow2.f32 %v3723_v33  ;;  %v3478_v29 = vpop.permute.xlu1 %3477 }
 0x589   : > { %v9059_v36 = vpop.eup %7497  ;;  %7507 = vpow2.f32 %v3719_v5 }
 0x58a   : > { %v3725_v43 = vsel %vm2971_vm0, %v9059_v36, 0.0 }
 0x58b   : > { %v9066_v38 = vpop.eup %7499  ;;  %3735 = vadd.xlane.f32.xlu0 %v3734_v24  ;;  %3726 = vadd.xlane.f32.xlu1 %v3725_v43 }
 0x58c   : > { %v3728_v9 = vsel %vm2971_vm0, %v9066_v38, 0.0 }
 0x58d   : > { %v9070_v47 = vpop.eup %7501 }
 0x58e   : > { %v3743_v3 = vsel %vm2971_vm0, %v9070_v47, 0.0 }
 0x58f   : > { %3729 = vadd.xlane.f32.xlu0 %v3728_v9 }
 0x591   : > { %v9074_v48 = vpop.eup %7503 }
 0x592   : > { %v3737_v42 = vsel %vm2971_vm0, %v9074_v48, 0.0  ;;  %v9078_v52 = vpop.eup %7505 }
 0x593   : > { %3744 = vadd.xlane.f32.xlu0 %v3743_v3  ;;  %v3746_v0 = vsel %vm2971_vm0, %v9078_v52, 0.0  ;;  %v9082_v40 = vpop.eup %7507 }
 0x594   : > { %v3740_v21 = vsel %vm2971_vm0, %v9082_v40, 0.0 }
 0x597   : > { %3738 = vadd.xlane.f32.xlu0 %v3737_v42 }
 0x59b   : > { %3747 = vadd.xlane.f32.xlu0 %v3746_v0 }
 0x59c   : > { %3862 = vrot.lane.b32.xlu1 %v8671_v17, %s7906_s23  ;;  %v3476_v17 = vpop.permute.xlu0 %3475 }
 0x59f   : > { %3741 = vadd.xlane.f32.xlu0 %v3740_v21 }
 0x5a0   : > { %3866 = vrot.lane.b32.xlu1 %v8693_v31, %s7906_s23 }
 0x5a4   : > { %3868 = vrot.lane.b32.xlu1 %v8702_v45, %s7906_s23 }
 0x5a8   : > { %3850 = vrot.lane.b32.xlu1 %v8636_v58, %s7906_s23 }
 0x5ac   : > { %3852 = vrot.lane.b32.xlu1 %v8642_v26, %s7906_s23 }
 0x5b0   : > { %3854 = vrot.lane.b32.xlu1 %v8649_v4, %s7906_s23 }
 0x5b4   : > { %3856 = vrot.lane.b32.xlu1 %v8653_v27, %s7906_s23 }
 0x5b5   : > { %3864 = vrot.lane.b32.xlu0 %v8682_v57, %s7906_s23 }
 0x5b7   : > { %v3133_v31 = vpop.xlane.xlu0 %3132 }
 0x5b9   : > { %v3136_v46 = vpop.xlane.xlu1 %3135 }
 0x5ba   : > { %7509 = vrcp.f32 %v3136_v46 }
 0x5bb   : > { %v3127_v45 = vpop.xlane.xlu0 %3126 }
 0x5bc   : > { %7511 = vrcp.f32 %v3127_v45 }
 0x5bd   : > { %7513 = vrcp.f32 %v3133_v31  ;;  %v3130_v58 = vpop.xlane.xlu1 %3129 }
 0x5be   : > { %7515 = vrcp.f32 %v3130_v58 }
 0x5bf   : > { %v3145_v26 = vpop.xlane.xlu0 %3144 }
 0x5c1   : > { %v3148_v7 = vpop.xlane.xlu1 %3147 }
 0x5c2   : > { %7517 = vrcp.f32 %v3148_v7 }
 0x5c3   : > { %v3139_v4 = vpop.xlane.xlu0 %3138 }
 0x5c4   : > { %7519 = vrcp.f32 %v3139_v4  ;;  %v7510_v2 = vpop.eup %7509 }
 0x5c5   : > { %7521 = vrcp.f32 %v3145_v26  ;;  %v3142_v27 = vpop.xlane.xlu1 %3141  ;;  %v3156_v33 = vmul.f32 %v7510_v2, %v8976_v62 }
 0x5c6   : > { %v7512_v10 = vpop.eup %7511  ;;  %7523 = vrcp.f32 %v3142_v27 }
 0x5c7   : > { %v7514_v1 = vpop.eup %7513  ;;  %v3150_v23 = vmul.f32 %v7512_v10, %v8980_v20 }
 0x5c8   : > { %v7516_v57 = vpop.eup %7515  ;;  %v3154_v43 = vmul.f32 %v7514_v1, %v8974_v30 }
 0x5c9   : > { %v3152_v24 = vmul.f32 %v7516_v57, %v8984_v6 }
 0x5ca   : > { %v3166_v9 = vpack.c.bf16 %v3156_v33, %v3154_v43 }
 0x5cb   : > { %v3165_v5 = vpack.c.bf16 %v3152_v24, %v3150_v23 }
 0x5cc   : > { %v7518_v3 = vpop.eup %7517 }
 0x5cd   : > { %6590 = vmatprep.mubr.msk.bf16.mxu1 %vm2971_vm0, %v3165_v5  ;;  %v3164_v62 = vmul.f32 %v7518_v3, %v8992_v18 }
 0x5ce   : > { %v7520_v42 = vpop.eup %7519  ;;  %6591 = vmatmul.mubr.msk.bf16.vlgmr.msra.gmra.mrb[88].mxu1 %vm2971_vm0, %v3166_v9 }
 0x5cf   : > { %v7522_v0 = vpop.eup %7521  ;;  %6615 = vmatpush3.bf16.msra.mxu1 %v8741_v59  ;;  %v3158_v20 = vmul.f32 %v7520_v42, %v8996_v54 }
 0x5d0   : > { %v7524_v21 = vpop.eup %7523  ;;  %6616 = vmatprep.subr.bf16.mxu1 %v8964_v41  ;;  %v3162_v6 = vmul.f32 %v7522_v0, %v8988_v34 }
 0x5d1   : > { %v3160_v30 = vmul.f32 %v7524_v21, %v9000_v25 }
 0x5d2   : > { %v3168_v46 = vpack.c.bf16 %v3164_v62, %v3162_v6 }
 0x5d3   : > { %6617 = vmatpush3.bf16.msra.mxu1 %v8964_v41  ;;  %v3167_v31 = vpack.c.bf16 %v3160_v30, %v3158_v20 }
 0x5d4   : > { %6618 = vmatprep.subr.bf16.mxu1 %v3476_v17 }
 0x5d5   : > { %6594 = vmatprep.mubr.msk.bf16.mxu1 %vm2971_vm0, %v3167_v31 }
 0x5d6   : > { %6595 = vmatmul.mubr.msk.bf16.gmra.mrb[92].mxu1 %vm2971_vm0, %v3168_v46 }
 0x5d7   : > { %6619 = vmatpush3.bf16.msra.mxu1 %v3476_v17 }
 0x5d8   : > { %6620 = vmatprep.subr.bf16.mxu1 %v3478_v29 }
 0x5db   : > { %6621 = vmatpush3.bf16.msra.mxu1 %v3478_v29 }
 0x5dc   : > { %6646 = vmatprep.subr.bf16.mxu1 %v8678_v44 }
 0x5f4   : > { %v3431_v59 = vpop.xlane.xlu0 %3430 }
 0x5f6   : > { %v3434_v18 = vpop.xlane.xlu1 %3433 }
 0x5f7   : > { %7525 = vrcp.f32 %v3434_v18 }
 0x5f8   : > { %v3425_v54 = vpop.xlane.xlu0 %3424 }
 0x5f9   : > { %7527 = vrcp.f32 %v3425_v54 }
 0x5fa   : > { %7529 = vrcp.f32 %v3431_v59  ;;  %v3428_v34 = vpop.xlane.xlu1 %3427 }
 0x5fb   : > { %7531 = vrcp.f32 %v3428_v34 }
 0x5fe   : > { %v3443_v41 = vpop.xlane.xlu1 %3442 }
 0x600   : > { %v3437_v45 = vpop.xlane.xlu0 %3436 }
 0x601   : > { %v7526_v25 = vpop.eup %7525 }
 0x602   : > { %v3446_v58 = vpop.xlane.xlu1 %3445  ;;  %v3454_v29 = vmul.f32 %v7526_v25, %v9018_v15 }
 0x603   : > { %v7528_v26 = vpop.eup %7527  ;;  %7533 = vrcp.f32 %v3446_v58 }
 0x604   : > { %v7530_v7 = vpop.eup %7529  ;;  %7535 = vrcp.f32 %v3437_v45  ;;  %v3448_v2 = vmul.f32 %v7528_v26, %v9022_v50 }
 0x605   : > { %v7532_v17 = vpop.eup %7531  ;;  %7537 = vrcp.f32 %v3443_v41  ;;  %v3452_v10 = vmul.f32 %v7530_v7, %v9013_v16 }
 0x606   : > { %v3440_v4 = vpop.xlane.xlu1 %3439  ;;  %v3450_v27 = vmul.f32 %v7532_v17, %v9026_v60 }
 0x607   : > { %7539 = vrcp.f32 %v3440_v4  ;;  %v3464_v57 = vpack.c.bf16 %v3454_v29, %v3452_v10 }
 0x608   : > { %v3463_v1 = vpack.c.bf16 %v3450_v27, %v3448_v2 }
 0x60a   : > { %6622 = vmatprep.mubr.msk.bf16.mxu1 %vm2971_vm0, %v3463_v1 }
 0x60b   : > { %6623 = vmatmul.mubr.msk.bf16.vlgmr.msra.gmra.mrb[96].mxu1 %vm2971_vm0, %v3464_v57 }
 0x60c   : > { %6647 = vmatpush3.bf16.msra.mxu1 %v8678_v44 }
 0x60d   : > { %6648 = vmatprep.subr.bf16.mxu1 %v8688_v63  ;;  %v7534_v15 = vpop.eup %7533 }
 0x60e   : > { %v7536_v33 = vpop.eup %7535  ;;  %v3462_v16 = vmul.f32 %v7534_v15, %v9032_v49 }
 0x60f   : > { %v7538_v23 = vpop.eup %7537  ;;  %v3456_v60 = vmul.f32 %v7536_v33, %v9036_v51 }
 0x610   : > { %6649 = vmatpush3.bf16.msra.mxu1 %v8688_v63  ;;  %v3460_v43 = vmul.f32 %v7538_v23, %v9030_v14 }
 0x611   : > { %v7540_v50 = vpop.eup %7539  ;;  %6650 = vmatprep.subr.bf16.mxu1 %v8700_v11 }
 0x612   : > { %v3458_v24 = vmul.f32 %v7540_v50, %v9042_v13  ;;  %v3466_v3 = vpack.c.bf16 %v3462_v16, %v3460_v43 }
 0x614   : > { %6651 = vmatpush3.bf16.msra.mxu1 %v8700_v11  ;;  %v3465_v5 = vpack.c.bf16 %v3458_v24, %v3456_v60  ;;  %v3733_v9 = vpop.xlane.xlu0 %3732 }
 0x615   : > { %6652 = vmatprep.subr.bf16.mxu1 %v8709_v56 }
 0x616   : > { %6626 = vmatprep.mubr.msk.bf16.mxu1 %vm2971_vm0, %v3465_v5 }
 0x617   : > { %6627 = vmatmul.mubr.msk.bf16.gmra.mrb[100].mxu1 %vm2971_vm0, %v3466_v3 }
 0x618   : > { %6653 = vmatpush3.bf16.msra.mxu1 %v8709_v56  ;;  %v3736_v49 = vpop.xlane.xlu0 %3735  ;;  %v3727_v42 = vpop.xlane.xlu1 %3726 }
 0x619   : > { %7541 = vrcp.f32 %v3736_v49 }
 0x61a   : > { %7543 = vrcp.f32 %v3727_v42 }
 0x61b   : > { %7545 = vrcp.f32 %v3733_v9 }
 0x61c   : > { %v3730_v51 = vpop.xlane.xlu0 %3729  ;;  %v3863_v14 = vpop.permute.xlu1 %3862 }
 0x61d   : > { %7547 = vrcp.f32 %v3730_v51  ;;  %6890 = vmatprep.subr.msk.bf16.mxu1 %vm2971_vm0, %v3863_v14  ;;  %v3883_v25 = vsel %vm2971_vm0, %v3863_v14, 0 }
 0x620   : > { %v3745_v13 = vpop.xlane.xlu0 %3744 }
 0x623   : > { %v7542_v0 = vpop.eup %7541 }
 0x624   : > { %v3739_v21 = vpop.xlane.xlu0 %3738  ;;  %v7544_v62 = vpop.eup %7543  ;;  %v3756_v6 = vmul.f32 %v7542_v0, %v9057_v37 }
 0x625   : > { %v7546_v20 = vpop.eup %7545  ;;  %v3750_v46 = vmul.f32 %v7544_v62, %v9059_v36  ;;  %v3867_v36 = vpop.permute.xlu1 %3866 }
 0x626   : > { %v3754_v18 = vmul.f32 %v7546_v20, %v9052_v28  ;;  %v3889_v1 = vsel %vm2971_vm0, %v3867_v36, 0 }
 0x627   : > { %v7548_v30 = vpop.eup %7547 }
 0x628   : > { %v3748_v31 = vpop.xlane.xlu0 %3747  ;;  %v3752_v59 = vmul.f32 %v7548_v30, %v9066_v38  ;;  %v3766_v34 = vpack.c.bf16 %v3756_v6, %v3754_v18 }
 0x629   : > { %7549 = vrcp.f32 %v3748_v31  ;;  %v3869_v7 = vpop.permute.xlu1 %3868 }
 0x62a   : > { %v3765_v54 = vpack.c.bf16 %v3752_v59, %v3750_v46  ;;  %7551 = vrcp.f32 %v3739_v21 }
 0x62b   : > { %7553 = vrcp.f32 %v3745_v13 }
 0x62c   : > { %v3742_v41 = vpop.xlane.xlu0 %3741  ;;  %6654 = vmatprep.mubr.msk.bf16.mxu1 %vm2971_vm0, %v3765_v54 }
 0x62d   : > { %7555 = vrcp.f32 %v3742_v41  ;;  %6655 = vmatmul.mubr.msk.bf16.vlgmr.msra.gmra.mrb[104].mxu1 %vm2971_vm0, %v3766_v34  ;;  %v3851_v57 = vpop.permute.xlu1 %3850 }
 0x62e   : > { %6663 = vmatpush3.bf16.xpose.msra.mxu1 %v3883_v25 }
 0x630   : > { %v3865_v37 = vpop.permute.xlu0 %3864 }
 0x631   : > { %6891 = vmatprep.subr.msk.bf16.mxu1 %vm2971_vm0, %v3865_v37  ;;  %v3886_v45 = vsel %vm2971_vm0, %v3865_v37, 0 }
 0x633   : > { %v7550_v38 = vpop.eup %7549 }
 0x634   : > { %v7552_v28 = vpop.eup %7551  ;;  %v3764_v17 = vmul.f32 %v7550_v38, %v9078_v52  ;;  %v3853_v52 = vpop.permute.xlu1 %3852 }
 0x635   : > { %v7554_v58 = vpop.eup %7553  ;;  %v3758_v29 = vmul.f32 %v7552_v28, %v9074_v48  ;;  %v3892_v48 = vsel %vm2971_vm0, %v3869_v7, 0 }
 0x636   : > { %6665 = vmatpush3.bf16.xpose.msra.mxu1 %v3886_v45  ;;  %v3762_v2 = vmul.f32 %v7554_v58, %v9070_v47 }
 0x637   : > { %v7556_v26 = vpop.eup %7555  ;;  %6892 = vmatprep.subr.msk.bf16.mxu1 %vm2971_vm0, %v3867_v36 }
 0x638   : > { %v3760_v4 = vmul.f32 %v7556_v26, %v9082_v40  ;;  %v3768_v10 = vpack.c.bf16 %v3764_v17, %v3762_v2  ;;  %v3855_v47 = vpop.permute.xlu1 %3854 }
 0x63a   : > { %v3767_v27 = vpack.c.bf16 %v3760_v4, %v3758_v29 }
 0x63c   : > { %6658 = vmatprep.mubr.msk.bf16.mxu1 %vm2971_vm0, %v3767_v27  ;;  %v3857_v40 = vpop.permute.xlu1 %3856 }
 0x63d   : > { %6659 = vmatmul.mubr.msk.bf16.gmra.mrb[108].mxu1 %vm2971_vm0, %v3768_v10 }
 0x63e   : > { %6667 = vmatpush3.bf16.xpose.msra.mxu1 %v3889_v1  ;;  %6670 = vmatprep.mubr.msk.bf16.mxu1 %vm2971_vm0, %v3851_v57 }
 0x63f   : > { %6893 = vmatprep.subr.msk.bf16.mxu1 %vm2971_vm0, %v3869_v7 }
 0x646   : > { %6669 = vmatpush3.bf16.xpose.msra.mxu1 %v3892_v48 }
 0x647   : > { %6710 = vmatprep.subr.bf16.mxu1 %v8730_v39 }
 0x64d   : > { %6671 = vmatmul.mubr.msk.bf16.vlgmr.msra.gmra.mrb[112].mxu1 %vm2971_vm0, %v3853_v52 }
 0x64e   : > { %6674 = vmatprep.mubr.msk.bf16.mxu1 %vm2971_vm0, %v3855_v47  ;;  %6711 = vmatpush3.bf16.msra.mxu1 %v8730_v39 }
 0x64f   : > { %6712 = vmatprep.subr.bf16.mxu1 %v8728_v53 }
 0x652   : > { %6713 = vmatpush3.bf16.msra.mxu1 %v8728_v53 }
 0x653   : > { %6714 = vmatprep.subr.bf16.mxu1 %v8734_v32 }
 0x655   : > { %6675 = vmatmul.mubr.msk.bf16.gmra.mrb[116].mxu1 %vm2971_vm0, %v3857_v40 }
 0x656   : > { %6715 = vmatpush3.bf16.msra.mxu1 %v8734_v32 }
 0x657   : > { %6716 = vmatprep.subr.bf16.mxu1 %v8732_v22 }
 0x65a   : > { %6717 = vmatpush3.bf16.msra.mxu1 %v8732_v22 }
 0x6a1   : > { %v9169_v15 = vpop.f32.mrb[88].mxu1 }
 0x6a2   : > { %9917 = vst [vmem:[#allocation33_spill] sm:$0xff] %v9169_v15  ;;  %v9171_v33 = vpop.f32.mrb[89].mxu1 }
 0x6a3   : > { %9918 = vst [vmem:[#allocation34_spill] sm:$0xff] %v9171_v33  ;;  %v9173_v23 = vpop.f32.mrb[90].mxu1 }
 0x6a4   : > { %9919 = vst [vmem:[#allocation35_spill] sm:$0xff] %v9173_v23  ;;  %v9175_v50 = vpop.f32.mrb[91].mxu1 }
 0x6a5   : > { %9920 = vst [vmem:[#allocation36_spill] sm:$0xff] %v9175_v50 }
 0x6a9   : > { %v9177_v16 = vpop.f32.mrb[92].mxu1 }
 0x6aa   : > { %9921 = vst [vmem:[#allocation37_spill] sm:$0xff] %v9177_v16  ;;  %v9179_v60 = vpop.f32.mrb[93].mxu1 }
 0x6ab   : > { %9922 = vst [vmem:[#allocation38_spill] sm:$0xff] %v9179_v60  ;;  %v9181_v24 = vpop.f32.mrb[94].mxu1 }
 0x6ac   : > { %9923 = vst [vmem:[#allocation39_spill] sm:$0xff] %v9181_v24  ;;  %v9183_v43 = vpop.f32.mrb[95].mxu1 }
 0x6ad   : > { %9924 = vst [vmem:[#allocation40_spill] sm:$0xff] %v9183_v43 }
 0x6de   : > { %v9185_v5 = vpop.f32.mrb[96].mxu1 }
 0x6df   : > { %v9187_v9 = vpop.f32.mrb[97].mxu1 }
 0x6e0   : > { %v9189_v3 = vpop.f32.mrb[98].mxu1 }
 0x6e1   : > { %v9193_v42 = vpop.f32.mrb[99].mxu1 }
 0x6ea   : > { %v9197_v14 = vpop.f32.mrb[100].mxu1 }
 0x6eb   : > { %v9199_v13 = vpop.f32.mrb[101].mxu1 }
 0x6ec   : > { %v9201_v0 = vpop.f32.mrb[102].mxu1 }
 0x6ed   : > { %v9205_v62 = vpop.f32.mrb[103].mxu1 }
 0x700   : > { %v9209_v30 = vpop.f32.mrb[104].mxu1 }
 0x701   : > { %v9211_v6 = vpop.f32.mrb[105].mxu1 }
 0x702   : > { %v9213_v31 = vpop.f32.mrb[106].mxu1 }
 0x703   : > { %9925 = vst [vmem:[#allocation41_spill] sm:$0xff] %v9213_v31  ;;  %v9215_v46 = vpop.f32.mrb[107].mxu1 }
 0x710   : > { %v9217_v59 = vpop.f32.mrb[108].mxu1 }
 0x711   : > { %9926 = vst [vmem:[#allocation42_spill] sm:$0xff] %v9217_v59  ;;  %v9219_v18 = vpop.f32.mrb[109].mxu1 }
 0x712   : > { %9927 = vst [vmem:[#allocation43_spill] sm:$0xff] %v9219_v18  ;;  %v9221_v54 = vpop.f32.mrb[110].mxu1 }
 0x713   : > { %9928 = vst [vmem:[#allocation44_spill] sm:$0xff] %v9221_v54  ;;  %v9223_v34 = vpop.f32.mrb[111].mxu1 }
 0x714   : > { %9929 = vst [vmem:[#allocation45_spill] sm:$0xff] %v9223_v34 }
 0x720   : > { %v6672_v41 = vpop.f32.mrb[112].mxu1 }
 0x721   : > { %v3961_v25 = vmul.f32 0.05103104, %v6672_v41  ;;  %v3928_v37 = vpop.f32.mrb[113].mxu1 }
 0x722   : > { %v3959_v36 = vmul.f32 0.05103104, %v3928_v37  ;;  %v6673_v38 = vpop.f32.mrb[114].mxu1 }
 0x723   : > { %v3931_v28 = vpop.f32.mrb[115].mxu1  ;;  %v3969_v45 = vsel %vm8778_vm1, %v3961_v25, -1e+30  ;;  %v3962_v7 = vmul.f32 0.05103104, %v6673_v38 }
 0x724   : > { %v3960_v58 = vmul.f32 0.05103104, %v3931_v28  ;;  %v3981_v26 = vsel %vm2971_vm0, %v3969_v45, -inf  ;;  %v3967_v17 = vsel %vm8783_vm2, %v3959_v36, -1e+30 }
 0x725   : > { %3982 = vmax.xlane.f32.xlu0 %v3981_v26  ;;  %v3975_v27 = vsel %vm2971_vm0, %v3967_v17, -inf  ;;  %v3970_v1 = vsel %vm8806_vm4, %v3962_v7, -1e+30 }
 0x726   : > { %v3968_v29 = vsel %vm8792_vm3, %v3960_v58, -1e+30  ;;  %v3984_v41 = vsel %vm2971_vm0, %v3970_v1, -inf }
 0x727   : > { %v3978_v4 = vsel %vm2971_vm0, %v3968_v29, -inf }
 0x728   : > { %3979 = vmax.xlane.f32.xlu1 %v3978_v4  ;;  %v6676_v2 = vpop.f32.mrb[116].mxu1 }
 0x729   : > { %3976 = vmax.xlane.f32.xlu0 %v3975_v27  ;;  %v3944_v10 = vpop.f32.mrb[117].mxu1  ;;  %v3965_v25 = vmul.f32 0.05103104, %v6676_v2 }
 0x72a   : > { %v3963_v57 = vmul.f32 0.05103104, %v3944_v10  ;;  %v6677_v48 = vpop.f32.mrb[118].mxu1 }
 0x72b   : > { %v3966_v52 = vmul.f32 0.05103104, %v6677_v48  ;;  %v3947_v47 = vpop.f32.mrb[119].mxu1  ;;  %v3973_v4 = vsel %vm8825_vm6, %v3965_v25, -1e+30 }
 0x72c   : > { %v3964_v40 = vmul.f32 0.05103104, %v3947_v47  ;;  %v3971_v36 = vsel %vm8846_vm8, %v3963_v57, -1e+30  ;;  %v3993_v27 = vsel %vm2971_vm0, %v3973_v4, -inf }
 0x72d   : > { %3985 = vmax.xlane.f32.xlu0 %v3984_v41  ;;  %v3974_v37 = vsel %vm8821_vm5, %v3966_v52, -1e+30  ;;  %v3987_v26 = vsel %vm2971_vm0, %v3971_v36, -inf }
 0x72e   : > { %v3996_v38 = vsel %vm2971_vm0, %v3974_v37, -inf  ;;  %v3972_v58 = vsel %vm8832_vm7, %v3964_v40, -1e+30 }
 0x72f   : > { %3997 = vmax.xlane.f32.xlu1 %v3996_v38  ;;  %v3990_v2 = vsel %vm2971_vm0, %v3972_v58, -inf }
 0x731   : > { %3988 = vmax.xlane.f32.xlu0 %v3987_v26 }
 0x733   : > { %3991 = vmax.xlane.f32.xlu1 %v3990_v2 }
 0x735   : > { %3994 = vmax.xlane.f32.xlu0 %v3993_v27 }
 0x744   : > { %4073 = vrot.lane.b32.xlu1 %v8688_v63, %s7906_s23 }
 0x748   : > { %4075 = vrot.lane.b32.xlu1 %v8700_v11, %s7906_s23 }
 0x7b2   : > { %v3983_v10 = vpop.xlane.xlu0 %3982 }
 0x7b3   : > { %v4001_v57 = vsub.f32 %v3969_v45, %v3983_v10 }
 0x7b5   : > { %v4011_v48 = vmul.f32 1.442695, %v4001_v57  ;;  %v3980_v52 = vpop.xlane.xlu1 %3979 }
 0x7b6   : > { %v3977_v47 = vpop.xlane.xlu0 %3976  ;;  %v4000_v41 = vsub.f32 %v3968_v29, %v3980_v52 }
 0x7b7   : > { %7557 = vpow2.f32 %v4011_v48  ;;  %v3999_v40 = vsub.f32 %v3967_v17, %v3977_v47 }
 0x7b8   : > { %v4009_v2 = vmul.f32 1.442695, %v4000_v41 }
 0x7b9   : > { %v4007_v25 = vmul.f32 1.442695, %v3999_v40 }
 0x7ba   : > { %v3986_v38 = vpop.xlane.xlu0 %3985 }
 0x7bb   : > { %7559 = vpow2.f32 %v4007_v25  ;;  %v4002_v26 = vsub.f32 %v3970_v1, %v3986_v38 }
 0x7bc   : > { %v3998_v48 = vpop.xlane.xlu1 %3997 }
 0x7bd   : > { %v4013_v27 = vmul.f32 1.442695, %v4002_v26  ;;  %v4006_v38 = vsub.f32 %v3974_v37, %v3998_v48 }
 0x7be   : > { %v3989_v57 = vpop.xlane.xlu0 %3988 }
 0x7bf   : > { %7561 = vpow2.f32 %v4013_v27  ;;  %v4003_v52 = vsub.f32 %v3971_v36, %v3989_v57  ;;  %v4021_v27 = vmul.f32 1.442695, %v4006_v38 }
 0x7c0   : > { %7563 = vpow2.f32 %v4009_v2  ;;  %v3992_v25 = vpop.xlane.xlu1 %3991 }
 0x7c1   : > { %v9253_v21 = vpop.eup %7557  ;;  %v4015_v40 = vmul.f32 1.442695, %v4003_v52  ;;  %v4004_v26 = vsub.f32 %v3972_v58, %v3992_v25 }
 0x7c2   : > { %v4029_v63 = vsel %vm2971_vm0, %v9253_v21, 0.0  ;;  %v3995_v47 = vpop.xlane.xlu0 %3994 }
 0x7c3   : > { %4030 = vadd.xlane.f32.xlu0 %v4029_v63  ;;  %v4005_v41 = vsub.f32 %v3973_v4, %v3995_v47  ;;  %7565 = vpow2.f32 %v4015_v40  ;;  %v4017_v63 = vmul.f32 1.442695, %v4004_v26 }
 0x7c5   : > { %v9257_v11 = vpop.eup %7559  ;;  %v4019_v2 = vmul.f32 1.442695, %v4005_v41 }
 0x7c6   : > { %v4023_v45 = vsel %vm2971_vm0, %v9257_v11, 0.0 }
 0x7c7   : > { %4024 = vadd.xlane.f32.xlu0 %v4023_v45  ;;  %7567 = vpow2.f32 %v4019_v2 }
 0x7c8   : > { %7569 = vpow2.f32 %v4021_v27 }
 0x7c9   : > { %v7562_v17 = vpop.eup %7561  ;;  %7571 = vpow2.f32 %v4017_v63 }
 0x7ca   : > { %v4032_v29 = vsel %vm2971_vm0, %v7562_v17, 0.0  ;;  %v7564_v1 = vpop.eup %7563 }
 0x7cb   : > { %4033 = vadd.xlane.f32.xlu1 %v4032_v29  ;;  %v4026_v10 = vsel %vm2971_vm0, %v7564_v1, 0.0 }
 0x7cf   : > { %4027 = vadd.xlane.f32.xlu1 %v4026_v10  ;;  %v4074_v10 = vpop.permute.xlu1 %4073 }
 0x7d3   : > { %v4076_v48 = vpop.permute.xlu1 %4075 }
 0x7dd   : > { %4071 = vrot.lane.b32.xlu0 %v8678_v44, %s7906_s23  ;;  %v9267_v44 = vpop.eup %7565 }
 0x7de   : > { %v9271_v45 = vpop.eup %7567 }
 0x7df   : > { %v9273_v36 = vpop.eup %7569  ;;  %v4041_v37 = vsel %vm2971_vm0, %v9271_v45, 0.0 }
 0x7e0   : > { %4077 = vrot.lane.b32.xlu1 %v8709_v56, %s7906_s23  ;;  %v4035_v56 = vsel %vm2971_vm0, %v9267_v44, 0.0  ;;  %v9277_v58 = vpop.eup %7571  ;;  %v4044_v4 = vsel %vm2971_vm0, %v9273_v36, 0.0 }
 0x7e1   : > { %v4038_v29 = vsel %vm2971_vm0, %v9277_v58, 0.0 }
 0x7fc   : > { %4036 = vadd.xlane.f32.xlu0 %v4035_v56  ;;  %v9932_v56 = vld [vmem:[#allocation26_spill] sm:$0xff] }
 0x800   : > { %4042 = vadd.xlane.f32.xlu0 %v4041_v37 }
 0x804   : > { %4045 = vadd.xlane.f32.xlu0 %v4044_v4  ;;  %4039 = vadd.xlane.f32.xlu1 %v4038_v29 }
 0x850   : > { %v4031_v57 = vpop.xlane.xlu0 %4030 }
 0x854   : > { %v4025_v52 = vpop.xlane.xlu0 %4024 }
 0x858   : > { %v4072_v47 = vpop.permute.xlu0 %4071  ;;  %v4034_v40 = vpop.xlane.xlu1 %4033 }
 0x859   : > { %6678 = vmatprep.subr.bf16.mxu0 %v4072_v47  ;;  %7573 = vrcp.f32 %v4034_v40 }
 0x85a   : > { %6679 = vmatpush3.bf16.msra.mxu0 %v4072_v47  ;;  %7575 = vrcp.f32 %v4025_v52  ;;  %v9933_v52 = vld [vmem:[#allocation25_spill] sm:$0xff] }
 0x85b   : > { %6680 = vmatprep.subr.bf16.mxu0 %v4074_v10  ;;  %7577 = vrcp.f32 %v4031_v57 }
 0x85c   : > { %v4028_v41 = vpop.xlane.xlu1 %4027 }
 0x85d   : > { %7579 = vrcp.f32 %v4028_v41 }
 0x85e   : > { %6681 = vmatpush3.bf16.msra.mxu0 %v4074_v10 }
 0x85f   : > { %6682 = vmatprep.subr.bf16.mxu0 %v4076_v48 }
 0x860   : > { %v4078_v25 = vpop.permute.xlu1 %4077 }
 0x862   : > { %6683 = vmatpush3.bf16.msra.mxu0 %v4076_v48  ;;  %v4185_v48 = vsel %vm2971_vm0, %v9932_v56, 0 }
 0x863   : > { %6684 = vmatprep.subr.bf16.mxu0 %v4078_v25  ;;  %v7574_v38 = vpop.eup %7573 }
 0x864   : > { %v7576_v26 = vpop.eup %7575  ;;  %v4054_v63 = vmul.f32 %v7574_v38, %v7562_v17  ;;  %v4188_v17 = vsel %vm2971_vm0, %v9933_v52, 0 }
 0x865   : > { %v7578_v2 = vpop.eup %7577  ;;  %v4048_v37 = vmul.f32 %v7576_v26, %v9257_v11  ;;  %v9934_v11 = vld [vmem:[#allocation30_spill] sm:$0xff] }
 0x866   : > { %6685 = vmatpush3.bf16.msra.mxu0 %v4078_v25  ;;  %v4052_v29 = vmul.f32 %v7578_v2, %v9253_v21  ;;  %v4191_v21 = vsel %vm2971_vm0, %v9934_v11, 0 }
 0x867   : > { %v7580_v27 = vpop.eup %7579  ;;  %6894 = vmatprep.subr.msk.bf16.mxu0 %vm2971_vm0, %v9932_v56 }
 0x868   : > { %v4050_v4 = vmul.f32 %v7580_v27, %v7564_v1  ;;  %v4064_v10 = vpack.c.bf16 %v4054_v63, %v4052_v29  ;;  %v9935_v1 = vld [vmem:[#allocation29_spill] sm:$0xff] }
 0x869   : > { %v4194_v47 = vsel %vm2971_vm0, %v9935_v1, 0 }
 0x86a   : > { %v4063_v57 = vpack.c.bf16 %v4050_v4, %v4048_v37 }
 0x86c   : > { %6686 = vmatprep.mubr.msk.bf16.mxu0 %vm2971_vm0, %v4063_v57 }
 0x86d   : > { %6687 = vmatmul.mubr.msk.bf16.vlgmr.msra.gmra.mrb[72].mxu0 %vm2971_vm0, %v4064_v10 }
 0x86f   : > { %6695 = vmatpush3.bf16.xpose.msra.mxu0 %v4185_v48 }
 0x870   : > { %6895 = vmatprep.subr.msk.bf16.mxu0 %vm2971_vm0, %v9933_v52 }
 0x877   : > { %6697 = vmatpush3.bf16.xpose.msra.mxu0 %v4188_v17  ;;  %v9936_v17 = vld [vmem:[#allocation24_spill] sm:$0xff] }
 0x878   : > { %6896 = vmatprep.subr.msk.bf16.mxu0 %vm2971_vm0, %v9934_v11 }
 0x87f   : > { %6699 = vmatpush3.bf16.xpose.msra.mxu0 %v4191_v21  ;;  %v9937_v21 = vld [vmem:[#allocation23_spill] sm:$0xff] }
 0x880   : > { %6897 = vmatprep.subr.msk.bf16.mxu0 %vm2971_vm0, %v9935_v1 }
 0x887   : > { %6701 = vmatpush3.bf16.xpose.msra.mxu0 %v4194_v47  ;;  %v9938_v47 = vld [vmem:[#allocation28_spill] sm:$0xff] }
 0x889   : > { %v4037_v40 = vpop.xlane.xlu0 %4036 }
 0x88d   : > { %v4043_v41 = vpop.xlane.xlu0 %4042 }
 0x88e   : > { %7581 = vrcp.f32 %v4043_v41 }
 0x88f   : > { %7583 = vrcp.f32 %v4037_v40 }
 0x891   : > { %v4046_v25 = vpop.xlane.xlu0 %4045  ;;  %v4040_v38 = vpop.xlane.xlu1 %4039 }
 0x892   : > { %7585 = vrcp.f32 %v4046_v25 }
 0x893   : > { %7587 = vrcp.f32 %v4040_v38 }
 0x898   : > { %v7582_v26 = vpop.eup %7581 }
 0x899   : > { %v7584_v2 = vpop.eup %7583  ;;  %v4060_v37 = vmul.f32 %v7582_v26, %v9271_v45  ;;  %v9939_v45 = vld [vmem:[#allocation27_spill] sm:$0xff] }
 0x89a   : > { %v4056_v29 = vmul.f32 %v7584_v2, %v9267_v44 }
 0x89c   : > { %v7586_v27 = vpop.eup %7585 }
 0x89d   : > { %v7588_v63 = vpop.eup %7587  ;;  %v4062_v4 = vmul.f32 %v7586_v27, %v9273_v36 }
 0x89e   : > { %v4058_v57 = vmul.f32 %v7588_v63, %v9277_v58 }
 0x89f   : > { %v4066_v10 = vpack.c.bf16 %v4062_v4, %v4060_v37 }
 0x8a0   : > { %v4065_v48 = vpack.c.bf16 %v4058_v57, %v4056_v29 }
 0x8a2   : > { %6690 = vmatprep.mubr.msk.bf16.mxu0 %vm2971_vm0, %v4065_v48 }
 0x8a3   : > { %6691 = vmatmul.mubr.msk.bf16.gmra.mrb[76].mxu0 %vm2971_vm0, %v4066_v10 }
 0x8a4   : > { %6702 = vmatprep.mubr.msk.bf16.mxu0 %vm2971_vm0, %v9936_v17 }
 0x8ab   : > { %6703 = vmatmul.mubr.msk.bf16.vlgmr.msra.gmra.mrb[80].mxu0 %vm2971_vm0, %v9937_v21 }
 0x8ac   : > { %6706 = vmatprep.mubr.msk.bf16.mxu0 %vm2971_vm0, %v9938_v47 }
 0x8b3   : > { %6707 = vmatmul.mubr.msk.bf16.gmra.mrb[84].mxu0 %vm2971_vm0, %v9939_v45 }
 0x940   : > { %v9317_v44 = vpop.f32.mrb[72].mxu0 }
 0x941   : > { %v9319_v36 = vpop.f32.mrb[73].mxu0 }
 0x942   : > { %v9321_v58 = vpop.f32.mrb[74].mxu0 }
 0x943   : > { %v9325_v41 = vpop.f32.mrb[75].mxu0 }
 0x976   : > { %v9329_v38 = vpop.f32.mrb[76].mxu0 }
 0x977   : > { %v9331_v26 = vpop.f32.mrb[77].mxu0 }
 0x978   : > { %v9333_v2 = vpop.f32.mrb[78].mxu0 }
 0x979   : > { %v9337_v63 = vpop.f32.mrb[79].mxu0 }
 0x97e   : > { %v6704_v4 = vpop.f32.mrb[80].mxu0 }
 0x97f   : > { %v4230_v29 = vpop.f32.mrb[81].mxu0  ;;  %v4263_v57 = vmul.f32 0.05103104, %v6704_v4 }
 0x980   : > { %v4261_v10 = vmul.f32 0.05103104, %v4230_v29  ;;  %v6705_v48 = vpop.f32.mrb[82].mxu0 }
 0x981   : > { %v4233_v20 = vpop.f32.mrb[83].mxu0  ;;  %v4264_v51 = vmul.f32 0.05103104, %v6705_v48  ;;  %v4271_v27 = vsel %vm8778_vm1, %v4263_v57, -1e+30 }
 0x982   : > { %v4269_v49 = vsel %vm8783_vm2, %v4261_v10, -1e+30  ;;  %v4262_v40 = vmul.f32 0.05103104, %v4233_v20  ;;  %v4283_v10 = vsel %vm2971_vm0, %v4271_v27, -inf }
 0x983   : > { %v4277_v25 = vsel %vm2971_vm0, %v4269_v49, -inf  ;;  %v4272_v4 = vsel %vm8806_vm4, %v4264_v51, -1e+30 }
 0x984   : > { %v4270_v24 = vsel %vm8792_vm3, %v4262_v40, -1e+30  ;;  %4278 = vmax.xlane.f32.xlu0 %v4277_v25  ;;  %v4286_v57 = vsel %vm2971_vm0, %v4272_v4, -inf }
 0x985   : > { %v4280_v37 = vsel %vm2971_vm0, %v4270_v24, -inf }
 0x986   : > { %4281 = vmax.xlane.f32.xlu1 %v4280_v37  ;;  %v6708_v29 = vpop.f32.mrb[84].mxu0 }
 0x987   : > { %v4246_v16 = vpop.f32.mrb[85].mxu0  ;;  %v4267_v20 = vmul.f32 0.05103104, %v6708_v29 }
 0x988   : > { %v4265_v48 = vmul.f32 0.05103104, %v4246_v16  ;;  %4284 = vmax.xlane.f32.xlu0 %v4283_v10  ;;  %v6709_v43 = vpop.f32.mrb[86].mxu0 }
 0x989   : > { %v4249_v60 = vpop.f32.mrb[87].mxu0  ;;  %v4268_v25 = vmul.f32 0.05103104, %v6709_v43  ;;  %v4275_v37 = vsel %vm8825_vm6, %v4267_v20, -1e+30 }
 0x98a   : > { %v4273_v40 = vsel %vm8846_vm8, %v4265_v48, -1e+30  ;;  %v4266_v23 = vmul.f32 0.05103104, %v4249_v60  ;;  %4287 = vmax.xlane.f32.xlu1 %v4286_v57  ;;  %v4295_v48 = vsel %vm2971_vm0, %v4275_v37, -inf }
 0x98b   : > { %v4289_v51 = vsel %vm2971_vm0, %v4273_v40, -inf  ;;  %v4276_v10 = vsel %vm8821_vm5, %v4268_v25, -1e+30 }
 0x98c   : > { %v4274_v29 = vsel %vm8832_vm7, %v4266_v23, -1e+30  ;;  %4290 = vmax.xlane.f32.xlu0 %v4289_v51  ;;  %v4298_v60 = vsel %vm2971_vm0, %v4276_v10, -inf }
 0x98d   : > { %v4292_v16 = vsel %vm2971_vm0, %v4274_v29, -inf }
 0x98e   : > { %4293 = vmax.xlane.f32.xlu1 %v4292_v16 }
 0x990   : > { %4296 = vmax.xlane.f32.xlu0 %v4295_v48 }
 0x992   : > { %4299 = vmax.xlane.f32.xlu1 %v4298_v60 }
 0xa11   : > { %v4279_v43 = vpop.xlane.xlu0 %4278 }
 0xa12   : > { %v4301_v57 = vsub.f32 %v4269_v49, %v4279_v43 }
 0xa13   : > { %v4282_v15 = vpop.xlane.xlu1 %4281 }
 0xa14   : > { %v4302_v33 = vsub.f32 %v4270_v24, %v4282_v15  ;;  %v4309_v23 = vmul.f32 1.442695, %v4301_v57 }
 0xa15   : > { %v4285_v20 = vpop.xlane.xlu0 %4284 }
 0xa16   : > { %v4303_v50 = vsub.f32 %v4271_v27, %v4285_v20  ;;  %v4311_v18 = vmul.f32 1.442695, %v4302_v33 }
 0xa17   : > { %v4288_v51 = vpop.xlane.xlu1 %4287 }
 0xa18   : > { %v4313_v54 = vmul.f32 1.442695, %v4303_v50  ;;  %v4304_v59 = vsub.f32 %v4272_v4, %v4288_v51 }
 0xa19   : > { %v4291_v34 = vpop.xlane.xlu0 %4290 }
 0xa1a   : > { %7589 = vpow2.f32 %v4313_v54  ;;  %v4315_v25 = vmul.f32 1.442695, %v4304_v59  ;;  %v4305_v16 = vsub.f32 %v4273_v40, %v4291_v34 }
 0xa1b   : > { %7591 = vpow2.f32 %v4309_v23  ;;  %v4294_v40 = vpop.xlane.xlu1 %4293 }
 0xa1c   : > { %7593 = vpow2.f32 %v4315_v25  ;;  %v4317_v31 = vmul.f32 1.442695, %v4305_v16  ;;  %v4306_v20 = vsub.f32 %v4274_v29, %v4294_v40 }
 0xa1d   : > { %v4297_v48 = vpop.xlane.xlu0 %4296  ;;  %7595 = vpow2.f32 %v4311_v18 }
 0xa1e   : > { %v4307_v60 = vsub.f32 %v4275_v37, %v4297_v48  ;;  %v4319_v51 = vmul.f32 1.442695, %v4306_v20 }
 0xa1f   : > { %v4300_v37 = vpop.xlane.xlu1 %4299 }
 0xa20   : > { %v4321_v49 = vmul.f32 1.442695, %v4307_v60  ;;  %v4308_v57 = vsub.f32 %v4276_v10, %v4300_v37 }
 0xa22   : > { %7597 = vpow2.f32 %v4321_v49  ;;  %v4323_v23 = vmul.f32 1.442695, %v4308_v57 }
 0xa23   : > { %7599 = vpow2.f32 %v4317_v31 }
 0xa24   : > { %v7590_v43 = vpop.eup %7589  ;;  %7601 = vpow2.f32 %v4323_v23 }
 0xa25   : > { %v7592_v15 = vpop.eup %7591  ;;  %v4331_v24 = vsel %vm2971_vm0, %v7590_v43, 0.0  ;;  %7603 = vpow2.f32 %v4319_v51 }
 0xa26   : > { %v7594_v50 = vpop.eup %7593  ;;  %4332 = vadd.xlane.f32.xlu0 %v4331_v24  ;;  %v4325_v59 = vsel %vm2971_vm0, %v7592_v15, 0.0 }
 0xa27   : > { %v4334_v33 = vsel %vm2971_vm0, %v7594_v50, 0.0  ;;  %v7596_v54 = vpop.eup %7595 }
 0xa28   : > { %4335 = vadd.xlane.f32.xlu1 %v4334_v33  ;;  %v4328_v18 = vsel %vm2971_vm0, %v7596_v54, 0.0 }
 0xa2a   : > { %4326 = vadd.xlane.f32.xlu0 %v4325_v59 }
 0xa2c   : > { %v9369_v34 = vpop.eup %7597  ;;  %4329 = vadd.xlane.f32.xlu1 %v4328_v18 }
 0xa2d   : > { %v4343_v31 = vsel %vm2971_vm0, %v9369_v34, 0.0  ;;  %v9373_v27 = vpop.eup %7599 }
 0xa2e   : > { %4344 = vadd.xlane.f32.xlu0 %v4343_v31  ;;  %v4337_v4 = vsel %vm2971_vm0, %v9373_v27, 0.0 }
 0xa32   : > { %4338 = vadd.xlane.f32.xlu0 %v4337_v4 }
 0xa3d   : > { %4464 = vrot.lane.b32.xlu1 %v9933_v52, %s7906_s23  ;;  %v7602_v52 = vpop.eup %7601 }
 0xa3e   : > { %v7604_v25 = vpop.eup %7603 }
 0xa41   : > { %4466 = vrot.lane.b32.xlu1 %v9934_v11, %s7906_s23  ;;  %v4346_v11 = vsel %vm2971_vm0, %v7602_v52, 0.0 }
 0xa48   : > { %4462 = vrot.lane.b32.xlu0 %v9932_v56, %s7906_s23  ;;  %v4340_v56 = vsel %vm2971_vm0, %v7604_v25, 0.0 }
 0xa4c   : > { %4450 = vrot.lane.b32.xlu0 %v9936_v17, %s7906_s23 }
 0xa50   : > { %4454 = vrot.lane.b32.xlu0 %v9938_v47, %s7906_s23 }
 0xa65   : > { %4347 = vadd.xlane.f32.xlu1 %v4346_v11 }
 0xa69   : > { %4341 = vadd.xlane.f32.xlu1 %v4340_v56 }
 0xa7a   : > { %4468 = vrot.lane.b32.xlu1 %v9935_v1, %s7906_s23 }
 0xa7e   : > { %4452 = vrot.lane.b32.xlu1 %v9937_v21, %s7906_s23 }
 0xa82   : > { %4456 = vrot.lane.b32.xlu1 %v9939_v45, %s7906_s23 }
 0xab3   : > { %v4333_v17 = vpop.xlane.xlu0 %4332 }
 0xab5   : > { %v4336_v47 = vpop.xlane.xlu1 %4335 }
 0xab6   : > { %7605 = vrcp.f32 %v4336_v47 }
 0xab7   : > { %v4327_v29 = vpop.xlane.xlu0 %4326 }
 0xab8   : > { %7607 = vrcp.f32 %v4327_v29 }
 0xab9   : > { %7609 = vrcp.f32 %v4333_v17  ;;  %v4330_v10 = vpop.xlane.xlu1 %4329 }
 0xaba   : > { %7611 = vrcp.f32 %v4330_v10 }
 0xabb   : > { %v4345_v16 = vpop.xlane.xlu0 %4344 }
 0xabd   : > { %v4465_v37 = vpop.permute.xlu1 %4464 }
 0xabe   : > { %v4486_v57 = vsel %vm2971_vm0, %v4465_v37, 0 }
 0xabf   : > { %v4339_v48 = vpop.xlane.xlu0 %4338 }
 0xac0   : > { %v7606_v60 = vpop.eup %7605 }
 0xac1   : > { %v4356_v59 = vmul.f32 %v7606_v60, %v7594_v50  ;;  %v4467_v50 = vpop.permute.xlu1 %4466 }
 0xac2   : > { %v7608_v49 = vpop.eup %7607 }
 0xac3   : > { %v7610_v24 = vpop.eup %7609  ;;  %v4463_v1 = vpop.permute.xlu0 %4462  ;;  %v4350_v21 = vmul.f32 %v7608_v49, %v7592_v15 }
 0xac4   : > { %v7612_v33 = vpop.eup %7611  ;;  %6898 = vmatprep.subr.msk.bf16.mxu1 %vm2971_vm0, %v4463_v1  ;;  %v4354_v18 = vmul.f32 %v7610_v24, %v7590_v43  ;;  %v4483_v40 = vsel %vm2971_vm0, %v4463_v1, 0  ;;  %v4489_v43 = vsel %vm2971_vm0, %v4467_v50, 0 }
 0xac5   : > { %v4352_v45 = vmul.f32 %v7612_v33, %v7596_v54 }
 0xac6   : > { %v4366_v4 = vpack.c.bf16 %v4356_v59, %v4354_v18 }
 0xac7   : > { %v4365_v31 = vpack.c.bf16 %v4352_v45, %v4350_v21  ;;  %v4451_v49 = vpop.permute.xlu0 %4450 }
 0xac9   : > { %6718 = vmatprep.mubr.msk.bf16.mxu1 %vm2971_vm0, %v4365_v31 }
 0xaca   : > { %6719 = vmatmul.mubr.msk.bf16.vlgmr.msra.gmra.mrb[120].mxu1 %vm2971_vm0, %v4366_v4 }
 0xacb   : > { %6727 = vmatpush3.bf16.xpose.msra.mxu1 %v4483_v40  ;;  %v4455_v1 = vpop.permute.xlu0 %4454 }
 0xacc   : > { %6899 = vmatprep.subr.msk.bf16.mxu1 %vm2971_vm0, %v4465_v37 }
 0xad3   : > { %6729 = vmatpush3.bf16.xpose.msra.mxu1 %v4486_v57 }
 0xad4   : > { %6900 = vmatprep.subr.msk.bf16.mxu1 %vm2971_vm0, %v4467_v50 }
 0xadb   : > { %6731 = vmatpush3.bf16.xpose.msra.mxu1 %v4489_v43 }
 0xaf2   : > { %v4348_v15 = vpop.xlane.xlu1 %4347 }
 0xaf3   : > { %7613 = vrcp.f32 %v4348_v15 }
 0xaf4   : > { %7615 = vrcp.f32 %v4339_v48 }
 0xaf5   : > { %7617 = vrcp.f32 %v4345_v16 }
 0xaf6   : > { %v4342_v54 = vpop.xlane.xlu1 %4341 }
 0xaf7   : > { %7619 = vrcp.f32 %v4342_v54 }
 0xafa   : > { %v4469_v20 = vpop.permute.xlu1 %4468 }
 0xafb   : > { %v4492_v23 = vsel %vm2971_vm0, %v4469_v20, 0  ;;  %6901 = vmatprep.subr.msk.bf16.mxu1 %vm2971_vm0, %v4469_v20 }
 0xafc   : > { %6733 = vmatpush3.bf16.xpose.msra.mxu1 %v4492_v23 }
 0xafd   : > { %v7614_v51 = vpop.eup %7613 }
 0xafe   : > { %v7616_v11 = vpop.eup %7615  ;;  %v4364_v47 = vmul.f32 %v7614_v51, %v7602_v52  ;;  %v4453_v24 = vpop.permute.xlu1 %4452 }
 0xaff   : > { %v7618_v56 = vpop.eup %7617  ;;  %v4358_v29 = vmul.f32 %v7616_v11, %v9373_v27 }
 0xb00   : > { %v4362_v60 = vmul.f32 %v7618_v56, %v9369_v34 }
 0xb01   : > { %v7620_v17 = vpop.eup %7619 }
 0xb02   : > { %v4360_v10 = vmul.f32 %v7620_v17, %v7604_v25  ;;  %v4368_v16 = vpack.c.bf16 %v4364_v47, %v4362_v60  ;;  %v4457_v52 = vpop.permute.xlu1 %4456 }
 0xb04   : > { %v4367_v48 = vpack.c.bf16 %v4360_v10, %v4358_v29 }
 0xb06   : > { %6722 = vmatprep.mubr.msk.bf16.mxu1 %vm2971_vm0, %v4367_v48 }
 0xb07   : > { %6723 = vmatmul.mubr.msk.bf16.gmra.mrb[124].mxu1 %vm2971_vm0, %v4368_v16 }
 0xb08   : > { %6734 = vmatprep.mubr.msk.bf16.mxu1 %vm2971_vm0, %v4451_v49 }
 0xb0f   : > { %6735 = vmatmul.mubr.msk.bf16.vlgmr.msra.gmra.mrb[128].mxu1 %vm2971_vm0, %v4453_v24 }
 0xb10   : > { %6738 = vmatprep.mubr.msk.bf16.mxu1 %vm2971_vm0, %v4455_v1 }
 0xb17   : > { %6739 = vmatmul.mubr.msk.bf16.gmra.mrb[132].mxu1 %vm2971_vm0, %v4457_v52 }
 0xb9d   : > { %v9413_v27 = vpop.f32.mrb[120].mxu1 }
 0xb9e   : > { %v9415_v34 = vpop.f32.mrb[121].mxu1 }
 0xb9f   : > { %v9417_v25 = vpop.f32.mrb[122].mxu1 }
 0xba0   : > { %v9419_v33 = vpop.f32.mrb[123].mxu1 }
 0xbda   : > { %v9421_v59 = vpop.f32.mrb[124].mxu1 }
 0xbdb   : > { %v9423_v21 = vpop.f32.mrb[125].mxu1 }
 0xbdc   : > { %v9425_v45 = vpop.f32.mrb[126].mxu1 }
 0xbdd   : > { %v9427_v18 = vpop.f32.mrb[127].mxu1 }
 0xbe2   : > { %v6736_v31 = vpop.f32.mrb[128].mxu1 }
 0xbe3   : > { %v4528_v4 = vpop.f32.mrb[129].mxu1  ;;  %v4561_v40 = vmul.f32 0.05103104, %v6736_v31 }
 0xbe4   : > { %v4559_v37 = vmul.f32 0.05103104, %v4528_v4  ;;  %v6737_v57 = vpop.f32.mrb[130].mxu1 }
 0xbe5   : > { %v4531_v50 = vpop.f32.mrb[131].mxu1  ;;  %v4569_v20 = vsel %vm8778_vm1, %v4561_v40, -1e+30  ;;  %v4562_v23 = vmul.f32 0.05103104, %v6737_v57 }
 0xbe6   : > { %v4567_v43 = vsel %vm8783_vm2, %v4559_v37, -1e+30  ;;  %v4560_v15 = vmul.f32 0.05103104, %v4531_v50  ;;  %v4581_v47 = vsel %vm2971_vm0, %v4569_v20, -inf }
 0xbe7   : > { %v4575_v54 = vsel %vm2971_vm0, %v4567_v43, -inf  ;;  %v4570_v35 = vsel %vm8806_vm4, %v4562_v23, -1e+30 }
 0xbe8   : > { %v4568_v51 = vsel %vm8792_vm3, %v4560_v15, -1e+30  ;;  %4576 = vmax.xlane.f32.xlu0 %v4575_v54  ;;  %v4584_v61 = vsel %vm2971_vm0, %v4570_v35, -inf }
 0xbe9   : > { %v4578_v11 = vsel %vm2971_vm0, %v4568_v51, -inf }
 0xbea   : > { %4579 = vmax.xlane.f32.xlu1 %v4578_v11  ;;  %v6740_v56 = vpop.f32.mrb[132].mxu1 }
 0xbeb   : > { %v4544_v17 = vpop.f32.mrb[133].mxu1  ;;  %v4565_v16 = vmul.f32 0.05103104, %v6740_v56 }
 0xbec   : > { %v4563_v29 = vmul.f32 0.05103104, %v4544_v17  ;;  %4582 = vmax.xlane.f32.xlu0 %v4581_v47  ;;  %v6741_v10 = vpop.f32.mrb[134].mxu1 }
 0xbed   : > { %v4547_v12 = vpop.f32.mrb[135].mxu1  ;;  %v4566_v60 = vmul.f32 0.05103104, %v6741_v10  ;;  %v4573_v31 = vsel %vm8825_vm6, %v4565_v16, -1e+30 }
 0xbee   : > { %v4564_v48 = vmul.f32 0.05103104, %v4547_v12  ;;  %v4571_v49 = vsel %vm8846_vm8, %v4563_v29, -1e+30  ;;  %v4593_v55 = vsel %vm2971_vm0, %v4573_v31, -inf }
 0xbef   : > { %v4574_v8 = vsel %vm8821_vm5, %v4566_v60, -1e+30  ;;  %v4587_v52 = vsel %vm2971_vm0, %v4571_v49, -inf }
 0xbf0   : > { %v4572_v24 = vsel %vm8832_vm7, %v4564_v48, -1e+30  ;;  %4585 = vmax.xlane.f32.xlu0 %v4584_v61  ;;  %v4596_v4 = vsel %vm2971_vm0, %v4574_v8, -inf }
 0xbf1   : > { %v4590_v1 = vsel %vm2971_vm0, %v4572_v24, -inf }
 0xbf2   : > { %4591 = vmax.xlane.f32.xlu1 %v4590_v1 }
 0xbf4   : > { %4588 = vmax.xlane.f32.xlu0 %v4587_v52 }
 0xbf6   : > { %4597 = vmax.xlane.f32.xlu1 %v4596_v4 }
 0xbf8   : > { %4594 = vmax.xlane.f32.xlu0 %v4593_v55 }
 0xc0e   : > { %4671 = vrot.lane.b32.xlu0 %v8730_v39, %s7906_s23 }
 0xc75   : > { %v4577_v28 = vpop.xlane.xlu0 %4576 }
 0xc76   : > { %v4599_v40 = vsub.f32 %v4567_v43, %v4577_v28 }
 0xc77   : > { %v4580_v19 = vpop.xlane.xlu1 %4579 }
 0xc78   : > { %v4607_v50 = vmul.f32 1.442695, %v4599_v40  ;;  %v4600_v15 = vsub.f32 %v4568_v51, %v4580_v19 }
 0xc79   : > { %v4583_v37 = vpop.xlane.xlu0 %4582 }
 0xc7a   : > { %v4601_v57 = vsub.f32 %v4569_v20, %v4583_v37  ;;  %v4609_v56 = vmul.f32 1.442695, %v4600_v15 }
 0xc7c   : > { %v4611_v54 = vmul.f32 1.442695, %v4601_v57 }
 0xc7d   : > { %v4586_v7 = vpop.xlane.xlu0 %4585 }
 0xc7e   : > { %7621 = vpow2.f32 %v4611_v54  ;;  %v4602_v23 = vsub.f32 %v4570_v35, %v4586_v7  ;;  %v7349_v54 = vld [vmem:[#allocation12 + $0xc8] ss:$12 sps:$4 sm:$0xff]  }
 0xc7f   : > { %v4592_v11 = vpop.xlane.xlu1 %4591  ;;  %7623 = vpow2.f32 %v4607_v50  ;;  %v7350_v7 = vld [vmem:[#allocation12 + $0x8] ss:$12 sps:$4 sm:$0xff]   ;;  %6442 = vmatprep.subr.bf16.mxu1 %v7349_v54 }
 0xc80   : > { %v4613_v17 = vmul.f32 1.442695, %v4602_v23  ;;  %6443 = vmatpush3.bf16.msra.mxu1 %v7350_v7  ;;  %v7351_v23 = vld [vmem:[#allocation12 + $0xe0] ss:$12 sps:$4 sm:$0xff]  }
 0xc81   : > { %v4589_v47 = vpop.xlane.xlu0 %4588  ;;  %6444 = vmatprep.subr.bf16.mxu1 %v7351_v23  ;;  %v9948_v23 = vld [vmem:[#allocation41_spill] sm:$0xff] }
 0xc82   : > { %7625 = vpow2.f32 %v4613_v17  ;;  %v4603_v29 = vsub.f32 %v4571_v49, %v4589_v47  ;;  %v4604_v49 = vsub.f32 %v4572_v24, %v4592_v11  ;;  %v7352_v11 = vld [vmem:[#allocation12 + $0x20] ss:$12 sps:$4 sm:$0xff]   ;;  %v7354_v17 = vld [vmem:[#allocation12 + $0x38] ss:$12 sps:$4 sm:$0xff]   ;;  %v7355_v47 = vld [vmem:[#allocation12 + $0x110] ss:$12 sps:$4 sm:$0xff]  }
 0xc83   : > { %7627 = vpow2.f32 %v4609_v56  ;;  %v4598_v39 = vpop.xlane.xlu1 %4597  ;;  %v7353_v56 = vld [vmem:[#allocation12 + $0xf8] ss:$12 sps:$4 sm:$0xff]  }
 0xc84   : > { %v4615_v20 = vmul.f32 1.442695, %v4603_v29  ;;  %v4606_v60 = vsub.f32 %v4574_v8, %v4598_v39  ;;  %v4617_v4 = vmul.f32 1.442695, %v4604_v49  ;;  %6445 = vmatpush3.bf16.msra.mxu1 %v7352_v11  ;;  %v9940_v29 = vpack.i.bf16 %v9325_v41, %v9319_v36  ;;  %v7357_v39 = vld [vmem:[#allocation12 + $0x128] ss:$12 sps:$4 sm:$0xff]  }
 0xc85   : > { %v4595_v10 = vpop.xlane.xlu0 %4594  ;;  %6446 = vmatprep.subr.bf16.mxu1 %v7353_v56  ;;  %v9942_v36 = vpack.i.bf16 %v9337_v63, %v9331_v26  ;;  %v7360_v41 = vld [vmem:[#allocation12 + $0x80] ss:$12 sps:$4 sm:$0xff]   ;;  %v9945_v26 = vpack.i.bf16 %v9189_v3, %v9185_v5  ;;  %v7363_v63 = vld [vmem:[#allocation12 + $0x170] ss:$12 sps:$4 sm:$0xff]  }
 0xc86   : > { %v4605_v43 = vsub.f32 %v4573_v31, %v4595_v10  ;;  %v4621_v1 = vmul.f32 1.442695, %v4606_v60  ;;  %v9941_v10 = vpack.i.bf16 %v9321_v58, %v9317_v44  ;;  %v9943_v44 = vpack.i.bf16 %v9193_v42, %v9187_v9  ;;  %v7364_v60 = vld [vmem:[#allocation12 + $0xb0] ss:$12 sps:$4 sm:$0xff]  }
 0xc87   : > { %v9944_v58 = vpack.i.bf16 %v9333_v2, %v9329_v38  ;;  %v9946_v9 = vpack.i.bf16 %v9205_v62, %v9199_v13  ;;  %v9947_v42 = vpack.i.bf16 %v9201_v0, %v9197_v14 }
 0xc88   : > { %v9455_v12 = vpop.eup %7621  ;;  %v4619_v51 = vmul.f32 1.442695, %v4605_v43  ;;  %6447 = vmatpush3.bf16.msra.mxu1 %v7354_v17  ;;  %v7359_v43 = vld [vmem:[#allocation12 + $0x140] ss:$12 sps:$4 sm:$0xff]  }
 0xc89   : > { %v4672_v48 = vpop.permute.xlu0 %4671  ;;  %v4629_v35 = vsel %vm2971_vm0, %v9455_v12, 0.0  ;;  %v9459_v61 = vpop.eup %7623  ;;  %6448 = vmatprep.subr.bf16.mxu1 %v7355_v47  ;;  %v9949_v47 = vld [vmem:[#allocation43_spill] sm:$0xff] }
 0xc8a   : > { %7629 = vpow2.f32 %v4619_v51  ;;  %4630 = vadd.xlane.f32.xlu0 %v4629_v35  ;;  %6742 = vmatprep.subr.bf16.mxu0 %v4672_v48  ;;  %v4623_v52 = vsel %vm2971_vm0, %v9459_v61, 0.0 }
 0xc8b   : > { %6743 = vmatpush3.bf16.msra.mxu0 %v4672_v48  ;;  %7631 = vpow2.f32 %v4615_v20  ;;  %v7361_v20 = vld [vmem:[#allocation12 + $0x158] ss:$12 sps:$4 sm:$0xff]  }
 0xc8c   : > { %v9461_v16 = vpop.eup %7625  ;;  %7633 = vpow2.f32 %v4621_v1 }
 0xc8d   : > { %v4632_v8 = vsel %vm2971_vm0, %v9461_v16, 0.0  ;;  %v9467_v31 = vpop.eup %7627  ;;  %7635 = vpow2.f32 %v4617_v4 }
 0xc8e   : > { %4624 = vadd.xlane.f32.xlu0 %v4623_v52  ;;  %4633 = vadd.xlane.f32.xlu1 %v4632_v8  ;;  %v4626_v55 = vsel %vm2971_vm0, %v9467_v31, 0.0 }
 0xc92   : > { %4627 = vadd.xlane.f32.xlu1 %v4626_v55 }
 0xc94   : > { %v9471_v28 = vpop.eup %7629 }
 0xc95   : > { %v4641_v24 = vsel %vm2971_vm0, %v9471_v28, 0.0  ;;  %v9475_v40 = vpop.eup %7631 }
 0xc96   : > { %4642 = vadd.xlane.f32.xlu1 %v4641_v24  ;;  %v4635_v19 = vsel %vm2971_vm0, %v9475_v40, 0.0  ;;  %v9479_v37 = vpop.eup %7633 }
 0xc97   : > { %v4644_v57 = vsel %vm2971_vm0, %v9479_v37, 0.0  ;;  %v9483_v50 = vpop.eup %7635 }
 0xc98   : > { %v4638_v15 = vsel %vm2971_vm0, %v9483_v50, 0.0 }
 0xc9a   : > { %4636 = vadd.xlane.f32.xlu1 %v4635_v19 }
 0xc9e   : > { %4645 = vadd.xlane.f32.xlu1 %v4644_v57 }
 0xca2   : > { %4639 = vadd.xlane.f32.xlu1 %v4638_v15 }
 0xca4   : > { %4675 = vrot.lane.b32.xlu0 %v8734_v32, %s7906_s23  ;;  %v7356_v32 = vld [vmem:[#allocation12 + $0x50] ss:$12 sps:$4 sm:$0xff]  }
 0xca5   : > { %6449 = vmatpush3.bf16.msra.mxu1 %v7356_v32  ;;  %v9950_v32 = vld [vmem:[#allocation45_spill] sm:$0xff] }
 0xca6   : > { %6450 = vmatprep.subr.bf16.mxu1 %v7357_v39 }
 0xca8   : > { %4677 = vrot.lane.b32.xlu0 %v8732_v22, %s7906_s23  ;;  %v7358_v22 = vld [vmem:[#allocation12 + $0x68] ss:$12 sps:$4 sm:$0xff]  }
 0xca9   : > { %6451 = vmatpush3.bf16.msra.mxu1 %v7358_v22 }
 0xcaa   : > { %6452 = vmatprep.subr.bf16.mxu1 %v7359_v43 }
 0xcac   : > { %7002 = vrot.lane.b32.xlu0 %v9940_v29, %s7906_s23 }
 0xcad   : > { %6453 = vmatpush3.bf16.msra.mxu1 %v7360_v41  ;;  %v9951_v41 = vld [vmem:[#allocation42_spill] sm:$0xff] }
 0xcae   : > { %6454 = vmatprep.subr.bf16.mxu1 %v7361_v20 }
 0xcb0   : > { %7012 = vrot.lane.b32.xlu0 %v9941_v10, %s7906_s23 }
 0xcb3   : > { %4673 = vrot.lane.b32.xlu1 %v8728_v53, %s7906_s23  ;;  %v7362_v53 = vld [vmem:[#allocation12 + $0x98] ss:$12 sps:$4 sm:$0xff]  }
 0xcb4   : > { %7022 = vrot.lane.b32.xlu0 %v9942_v36, %s7906_s23  ;;  %6455 = vmatpush3.bf16.msra.mxu1 %v7362_v53 }
 0xcb5   : > { %6456 = vmatprep.subr.bf16.mxu1 %v7363_v63 }
 0xcb7   : > { %7007 = vrot.lane.b32.xlu1 %v9943_v44, %s7906_s23  ;;  %v9952_v44 = vld [vmem:[#allocation44_spill] sm:$0xff] }
 0xcb8   : > { %7032 = vrot.lane.b32.xlu0 %v9944_v58, %s7906_s23  ;;  %6457 = vmatpush3.bf16.msra.mxu1 %v7364_v60 }
 0xcbb   : > { %7017 = vrot.lane.b32.xlu1 %v9945_v26, %s7906_s23 }
 0xcbf   : > { %7027 = vrot.lane.b32.xlu1 %v9946_v9, %s7906_s23 }
 0xcc3   : > { %7037 = vrot.lane.b32.xlu1 %v9947_v42, %s7906_s23 }
 0xd17   : > { %v4631_v38 = vpop.xlane.xlu0 %4630 }
 0xd1b   : > { %v4625_v2 = vpop.xlane.xlu0 %4624  ;;  %v4634_v51 = vpop.xlane.xlu1 %4633 }
 0xd1c   : > { %7637 = vrcp.f32 %v4625_v2 }
 0xd1f   : > { %v4676_v5 = vpop.permute.xlu0 %4675  ;;  %v4628_v3 = vpop.xlane.xlu1 %4627 }
 0xd20   : > { %7639 = vrcp.f32 %v4628_v3  ;;  %v9953_v3 = vld [vmem:[#allocation36_spill] sm:$0xff] }
 0xd21   : > { %7641 = vrcp.f32 %v4634_v51 }
 0xd22   : > { %7643 = vrcp.f32 %v4631_v38 }
 0xd23   : > { %v9525_v48 = vpop.permute.xlu0 %4677  ;;  %v4643_v35 = vpop.xlane.xlu1 %4642 }
 0xd26   : > { %v7638_v13 = vpop.eup %7637 }
 0xd27   : > { %v7003_v49 = vpop.permute.xlu0 %7002  ;;  %v4637_v1 = vpop.xlane.xlu1 %4636  ;;  %v4648_v19 = vmul.f32 %v7638_v13, %v9459_v61 }
 0xd28   : > { %v7005_v62 = vunpack.i.h.bf16 %v7003_v49  ;;  %v7004_v52 = vunpack.i.l.bf16 %v7003_v49  ;;  %7645 = vrcp.f32 %v4637_v1  ;;  %v9954_v1 = vld [vmem:[#allocation34_spill] sm:$0xff] }
 0xd2a   : > { %v7640_v8 = vpop.eup %7639  ;;  %v4864_v14 = vsel %vm2971_vm0, %v9211_v6, %v7004_v52  ;;  %v4865_v0 = vsel %vm2971_vm0, %v9215_v46, %v7005_v62 }
 0xd2b   : > { %v7013_v4 = vpop.permute.xlu0 %7012  ;;  %v4646_v55 = vpop.xlane.xlu1 %4645  ;;  %v9531_v24 = vpack.c.bf16 %v4865_v0, %v4864_v14  ;;  %v4650_v57 = vmul.f32 %v7640_v8, %v9467_v31 }
 0xd2c   : > { %v7015_v15 = vunpack.i.h.bf16 %v7013_v4  ;;  %v7014_v54 = vunpack.i.l.bf16 %v7013_v4  ;;  %v7642_v53 = vpop.eup %7641 }
 0xd2d   : > { %5567 = vmatprep.mubr.bf16.mxu1 %v9531_v24  ;;  %v4663_v7 = vpack.c.bf16 %v4650_v57, %v4648_v19  ;;  %v7644_v60 = vpop.eup %7643  ;;  %v4654_v51 = vmul.f32 %v7642_v53, %v9461_v16  ;;  %v7365_v16 = vld [vmem:[#allocation12] ss:$12 sps:$4 sm:$0xff]   ;;  %v7370_v19 = vld [vmem:[#allocation12 + $0x1c] ss:$12 sps:$4 sm:$0xff]  }
 0xd2e   : > { %v4866_v6 = vsel %vm2971_vm0, %v9209_v30, %v7014_v54  ;;  %v4867_v46 = vsel %vm2971_vm0, %v9948_v23, %v7015_v15  ;;  %v4652_v14 = vmul.f32 %v7644_v60, %v9455_v12  ;;  %v9955_v57 = vld [vmem:[#allocation33_spill] sm:$0xff]  ;;  %v9960_v53 = vld [vmem:[#allocation39_spill] sm:$0xff] }
 0xd2f   : > { %v7023_v11 = vpop.permute.xlu0 %7022  ;;  %6750 = vmatprep.mubr.msk.bf16.mxu0 %vm2971_vm0, %v4663_v7  ;;  %v4640_v61 = vpop.xlane.xlu1 %4639  ;;  %v9541_v56 = vpack.c.bf16 %v4867_v46, %v4866_v6 }
 0xd30   : > { %v7025_v31 = vunpack.i.h.bf16 %v7023_v11  ;;  %v7024_v17 = vunpack.i.l.bf16 %v7023_v11  ;;  %7647 = vrcp.f32 %v4640_v61  ;;  %v7368_v11 = vld [vmem:[#allocation12 + $0x18] ss:$12 sps:$4 sm:$0xff]  }
 0xd31   : > { %7649 = vrcp.f32 %v4646_v55  ;;  %v4664_v55 = vpack.c.bf16 %v4654_v51, %v4652_v14  ;;  %v7385_v51 = vld [vmem:[#allocation12 + $0x94] ss:$12 sps:$4 sm:$0xff]   ;;  %v7395_v14 = vld [vmem:[#allocation12 + $0xf0] ss:$12 sps:$4 sm:$0xff]  }
 0xd32   : > { %v4868_v29 = vsel %vm2971_vm0, %v9949_v47, %v7024_v17  ;;  %v4869_v39 = vsel %vm2971_vm0, %v9950_v32, %v7025_v31  ;;  %7651 = vrcp.f32 %v4643_v35  ;;  %v7646_v38 = vpop.eup %7645  ;;  %v7367_v35 = vld [vmem:[#allocation12 + $0x4] ss:$12 sps:$4 sm:$0xff]   ;;  %v7373_v31 = vld [vmem:[#allocation12 + $0x34] ss:$12 sps:$4 sm:$0xff]  }
 0xd33   : > { %v7033_v30 = vpop.permute.xlu0 %7032  ;;  %v4674_v10 = vpop.permute.xlu1 %4673  ;;  %v9547_v22 = vpack.c.bf16 %v4869_v39, %v4868_v29  ;;  %v4656_v4 = vmul.f32 %v7646_v38, %v9475_v40  ;;  %v9957_v17 = vld [vmem:[#allocation38_spill] sm:$0xff]  ;;  %v9958_v29 = vld [vmem:[#allocation40_spill] sm:$0xff]  ;;  %v7382_v38 = vld [vmem:[#allocation12 + $0x7c] ss:$12 sps:$4 sm:$0xff]  }
 0xd34   : > { %v7035_v43 = vunpack.i.h.bf16 %v7033_v30  ;;  %v7034_v36 = vunpack.i.l.bf16 %v7033_v30  ;;  %6744 = vmatprep.subr.bf16.mxu0 %v4674_v10 }
 0xd35   : > { %6745 = vmatpush3.bf16.msra.mxu0 %v4674_v10 }
 0xd36   : > { %6746 = vmatprep.subr.bf16.mxu0 %v4676_v5  ;;  %v4870_v20 = vsel %vm2971_vm0, %v9951_v41, %v7034_v36  ;;  %v4871_v58 = vsel %vm2971_vm0, %v9952_v44, %v7035_v43  ;;  %v7371_v41 = vld [vmem:[#allocation12 + $0x30] ss:$12 sps:$4 sm:$0xff]   ;;  %v9959_v44 = vld [vmem:[#allocation37_spill] sm:$0xff] }
 0xd37   : > { %v7008_v26 = vpop.permute.xlu1 %7007  ;;  %v9553_v63 = vpack.c.bf16 %v4871_v58, %v4870_v20  ;;  %v7376_v20 = vld [vmem:[#allocation12 + $0x4c] ss:$12 sps:$4 sm:$0xff]  }
 0xd38   : > { %v7010_v9 = vunpack.i.h.bf16 %v7008_v26  ;;  %v7009_v42 = vunpack.i.l.bf16 %v7008_v26 }
 0xd39   : > { %6747 = vmatpush3.bf16.msra.mxu0 %v4676_v5 }
 0xd3a   : > { %v7648_v2 = vpop.eup %7647  ;;  %v4857_v49 = vsel %vm2971_vm0, %v9953_v3, %v7010_v9  ;;  %v4856_v13 = vsel %vm2971_vm0, %v9954_v1, %v7009_v42  ;;  %6748 = vmatprep.subr.bf16.mxu0 %v9525_v48  ;;  %v7379_v9 = vld [vmem:[#allocation12 + $0x64] ss:$12 sps:$4 sm:$0xff]   ;;  %v7377_v42 = vld [vmem:[#allocation12 + $0x60] ss:$12 sps:$4 sm:$0xff]  }
 0xd3b   : > { %v9561_v62 = vpack.c.bf16 %v4857_v49, %v4856_v13  ;;  %v7018_v52 = vpop.permute.xlu1 %7017  ;;  %v4658_v8 = vmul.f32 %v7648_v2, %v9483_v50  ;;  %v9956_v50 = vld [vmem:[#allocation35_spill] sm:$0xff]  ;;  %v7650_v54 = vpop.eup %7649  ;;  %v7386_v49 = vld [vmem:[#allocation12 + $0xa8] ss:$12 sps:$4 sm:$0xff]   ;;  %v7391_v1 = vld [vmem:[#allocation12 + $0xc4] ss:$12 sps:$4 sm:$0xff]  }
 0xd3c   : > { %v7020_v5 = vunpack.i.h.bf16 %v7018_v52  ;;  %v7019_v0 = vunpack.i.l.bf16 %v7018_v52  ;;  %v7652_v40 = vpop.eup %7651  ;;  %v4662_v61 = vmul.f32 %v7650_v54, %v9479_v37  ;;  %v7380_v2 = vld [vmem:[#allocation12 + $0x78] ss:$12 sps:$4 sm:$0xff]   ;;  %v7383_v3 = vld [vmem:[#allocation12 + $0x90] ss:$12 sps:$4 sm:$0xff]   ;;  %v7389_v13 = vld [vmem:[#allocation12 + $0xc0] ss:$12 sps:$4 sm:$0xff]  }
 0xd3d   : > { %6749 = vmatpush3.bf16.msra.mxu0 %v9525_v48  ;;  %5568 = vmatmul.mubr.bf16.vlgmr.msra.gmra.mrb[136].mxu1 %v9561_v62  ;;  %v4665_v6 = vpack.c.bf16 %v4658_v8, %v4656_v4  ;;  %v4660_v36 = vmul.f32 %v7652_v40, %v9471_v28  ;;  %v7374_v28 = vld [vmem:[#allocation12 + $0x48] ss:$12 sps:$4 sm:$0xff]   ;;  %v7392_v52 = vld [vmem:[#allocation12 + $0xd8] ss:$12 sps:$4 sm:$0xff]   ;;  %v7401_v4 = vld [vmem:[#allocation12 + $0x120] ss:$12 sps:$4 sm:$0xff]  }
 0xd3e   : > { %5575 = vmatprep.mubr.bf16.mxu1 %v9541_v56  ;;  %5389 = vmatprep.subr.bf16.mxu0 %v7367_v35  ;;  %v4858_v15 = vsel %vm2971_vm0, %v9955_v57, %v7019_v0  ;;  %v4859_v12 = vsel %vm2971_vm0, %v9956_v50, %v7020_v5  ;;  %v7394_v35 = vld [vmem:[#allocation12 + $0xdc] ss:$12 sps:$4 sm:$0xff]   ;;  %v7397_v8 = vld [vmem:[#allocation12 + $0xf4] ss:$12 sps:$4 sm:$0xff]   ;;  %v7400_v5 = vld [vmem:[#allocation12 + $0x10c] ss:$12 sps:$4 sm:$0xff]  }
 0xd3f   : > { %v7028_v7 = vpop.permute.xlu1 %7027  ;;  %v9573_v48 = vpack.c.bf16 %v4859_v12, %v4858_v15  ;;  %v4666_v37 = vpack.c.bf16 %v4662_v61, %v4660_v36  ;;  %v7398_v0 = vld [vmem:[#allocation12 + $0x108] ss:$12 sps:$4 sm:$0xff]   ;;  %v7407_v15 = vld [vmem:[#allocation12 + $0x150] ss:$12 sps:$4 sm:$0xff]   ;;  %v7412_v50 = vld [vmem:[#allocation12 + $0x16c] ss:$12 sps:$4 sm:$0xff]  }
 0xd40   : > { %v7030_v23 = vunpack.i.h.bf16 %v7028_v7  ;;  %v7029_v46 = vunpack.i.l.bf16 %v7028_v7  ;;  %6751 = vmatmul.mubr.msk.bf16.vlgmr.msra.gmra.mrb[88].mxu0 %vm2971_vm0, %v4664_v55  ;;  %v7406_v55 = vld [vmem:[#allocation12 + $0x13c] ss:$12 sps:$4 sm:$0xff]   ;;  %v7409_v57 = vld [vmem:[#allocation12 + $0x154] ss:$12 sps:$4 sm:$0xff]   ;;  %v9961_v54 = vmov 0  }
 0xd41   : > { %6754 = vmatprep.mubr.msk.bf16.mxu0 %vm2971_vm0, %v4665_v6  ;;  %5390 = vmatpush1.bf16.msra.mxu0 %v7365_v16  ;;  %v7403_v16 = vld [vmem:[#allocation12 + $0x124] ss:$12 sps:$4 sm:$0xff]   ;;  %v7410_v12 = vld [vmem:[#allocation12 + $0x168] ss:$12 sps:$4 sm:$0xff]   ;;  %v7413_v7 = vld [vmem:[#allocation12 + $0x180] ss:$12 sps:$4 sm:$0xff]  }
 0xd42   : > { %5391 = vmatprep.subr.bf16.mxu0 %v7370_v19  ;;  %v4860_v47 = vsel %vm2971_vm0, %v9957_v17, %v7029_v46  ;;  %v4861_v32 = vsel %vm2971_vm0, %v9958_v29, %v7030_v23  ;;  %v7404_v19 = vld [vmem:[#allocation12 + $0x138] ss:$12 sps:$4 sm:$0xff]   ;;  %v7418_v23 = vld [vmem:[#allocation12 + $0x19c] ss:$12 sps:$4 sm:$0xff]   ;;  %v7427_v17 = vld [vmem:[#allocation12 + $0x1e0] ss:$12 sps:$4 sm:$0xff]  }
 0xd43   : > { %v7038_v39 = vpop.permute.xlu1 %7037  ;;  %v9582_v30 = vpack.c.bf16 %v4861_v32, %v4860_v47  ;;  %v7415_v6 = vld [vmem:[#allocation12 + $0x184] ss:$12 sps:$4 sm:$0xff]   ;;  %v9606_v46 = vld [vmem:[#allocation12 + $0x188] ss:$12 sps:$4 sm:$0xff]   ;;  %v7425_v40 = vld [vmem:[#allocation12 + $0x1cc] ss:$12 sps:$4 sm:$0xff]  }
 0xd44   : > { %v7040_v10 = vunpack.i.h.bf16 %v7038_v39  ;;  %v7039_v43 = vunpack.i.l.bf16 %v7038_v39  ;;  %6782 = vmatprep.subr.bf16.mxu1 %v9606_v46  ;;  %v7423_v61 = vld [vmem:[#allocation12 + $0x1c8] ss:$12 sps:$4 sm:$0xff]   ;;  %v7431_v29 = vld [vmem:[#allocation12 + $0x1f8] ss:$12 sps:$4 sm:$0xff]   ;;  %v7435_v39 = vld [vmem:[#allocation12 + $0x210] ss:$12 sps:$4 sm:$0xff]  }
 0xd45   : > { %5392 = vmatpush1.bf16.msra.mxu0 %v7368_v11  ;;  %5576 = vmatmul.mubr.bf16.gmra.mrb[140].mxu1 %v9573_v48  ;;  %v9617_v11 = vld [vmem:[#allocation12 + $0x1d0] ss:$12 sps:$4 sm:$0xff]   ;;  %v7437_v32 = vld [vmem:[#allocation12 + $0x214] ss:$12 sps:$4 sm:$0xff]  }
 0xd46   : > { %5583 = vmatprep.mubr.bf16.mxu1 %v9547_v22  ;;  %5393 = vmatprep.subr.bf16.mxu0 %v7373_v31  ;;  %v4862_v58 = vsel %vm2971_vm0, %v9959_v44, %v7039_v43  ;;  %v4863_v26 = vsel %vm2971_vm0, %v9960_v53, %v7040_v10  ;;  %v7429_v31 = vld [vmem:[#allocation12 + $0x1e4] ss:$12 sps:$4 sm:$0xff]   ;;  %v7433_v47 = vld [vmem:[#allocation12 + $0x1fc] ss:$12 sps:$4 sm:$0xff]   ;;  %v7441_v43 = vld [vmem:[#allocation12 + $0x22c] ss:$12 sps:$4 sm:$0xff]  }
 0xd47   : > { %v9591_v60 = vpack.c.bf16 %v4863_v26, %v4862_v58  ;;  %6790 = vmatpush3.bf16.msra.mxu1 %v9606_v46  ;;  %v7439_v10 = vld [vmem:[#allocation12 + $0x228] ss:$12 sps:$4 sm:$0xff]   ;;  %v9626_v36 = vld [vmem:[#allocation12 + $0x200] ss:$12 sps:$4 sm:$0xff]  }
 0xd48   : > { %6755 = vmatmul.mubr.msk.bf16.gmra.mrb[92].mxu0 %vm2971_vm0, %v4666_v37 }
 0xd49   : > { %5394 = vmatpush1.bf16.msra.mxu0 %v7371_v41  ;;  %5421 = vmatprep.mubr.bf16.mxu0 %v9531_v24  ;;  %v7388_v24 = vld [vmem:[#allocation12 + $0xac] ss:$12 sps:$4 sm:$0xff]  }
 0xd4a   : > { %5395 = vmatprep.subr.bf16.mxu0 %v7376_v20 }
 0xd4d   : > { %5396 = vmatpush1.bf16.msra.mxu0 %v7374_v28  ;;  %5584 = vmatmul.mubr.bf16.gmra.mrb[144].mxu1 %v9582_v30 }
 0xd4e   : > { %5591 = vmatprep.mubr.bf16.mxu1 %v9553_v63  ;;  %5397 = vmatprep.subr.bf16.mxu0 %v7379_v9 }
 0xd51   : > { %5398 = vmatpush1.bf16.msra.mxu0 %v7377_v42 }
 0xd52   : > { %5399 = vmatprep.subr.bf16.mxu0 %v7382_v38  ;;  %v9635_v38 = vld [vmem:[#allocation12 + $0x218] ss:$12 sps:$4 sm:$0xff]  }
 0xd55   : > { %5400 = vmatpush1.bf16.msra.mxu0 %v7380_v2  ;;  %5592 = vmatmul.mubr.bf16.gmra.mrb[148].mxu1 %v9591_v60  ;;  %v9637_v2 = vld [vmem:[#allocation12 + $0x230] ss:$12 sps:$4 sm:$0xff]  }
 0xd56   : > { %5401 = vmatprep.subr.bf16.mxu0 %v7385_v51 }
 0xd59   : > { %5402 = vmatpush1.bf16.msra.mxu0 %v7383_v3 }
 0xd5a   : > { %5403 = vmatprep.subr.bf16.mxu0 %v7388_v24 }
 0xd5d   : > { %5404 = vmatpush1.bf16.msra.mxu0 %v7386_v49 }
 0xd5e   : > { %5405 = vmatprep.subr.bf16.mxu0 %v7391_v1 }
 0xd61   : > { %5406 = vmatpush1.bf16.msra.mxu0 %v7389_v13 }
 0xd62   : > { %5407 = vmatprep.subr.bf16.mxu0 %v7394_v35 }
 0xd65   : > { %5408 = vmatpush1.bf16.msra.mxu0 %v7392_v52 }
 0xd66   : > { %5409 = vmatprep.subr.bf16.mxu0 %v7397_v8 }
 0xd69   : > { %5410 = vmatpush1.bf16.msra.mxu0 %v7395_v14 }
 0xd6a   : > { %5411 = vmatprep.subr.bf16.mxu0 %v7400_v5 }
 0xd6d   : > { %5412 = vmatpush1.bf16.msra.mxu0 %v7398_v0 }
 0xd6e   : > { %5413 = vmatprep.subr.bf16.mxu0 %v7403_v16 }
 0xd71   : > { %5414 = vmatpush1.bf16.msra.mxu0 %v7401_v4 }
 0xd72   : > { %5415 = vmatprep.subr.bf16.mxu0 %v7406_v55 }
 0xd75   : > { %5416 = vmatpush1.bf16.msra.mxu0 %v7404_v19 }
 0xd76   : > { %5417 = vmatprep.subr.bf16.mxu0 %v7409_v57 }
 0xd79   : > { %5418 = vmatpush1.bf16.msra.mxu0 %v7407_v15 }
 0xd7a   : > { %5419 = vmatprep.subr.bf16.mxu0 %v7412_v50 }
 0xd7d   : > { %5420 = vmatpush1.bf16.msra.mxu0 %v7410_v12 }
 0xd7e   : > { %5462 = vmatprep.subr.bf16.mxu0 %v7415_v6 }
 0xd80   : > { %5422 = vmatmul.mubr.bf16.vlgmr.msra.gmra.mrb[96].mxu0 %v9561_v62  ;;  %v9608_v62 = vld [vmem:[#allocation12 + $0x1a0] ss:$12 sps:$4 sm:$0xff]  }
 0xd81   : > { %5431 = vmatprep.mubr.bf16.mxu0 %v9541_v56  ;;  %5463 = vmatpush1.bf16.msra.mxu0 %v7413_v7  ;;  %v7416_v56 = vld [vmem:[#allocation12 + $0x198] ss:$12 sps:$4 sm:$0xff]  }
 0xd82   : > { %5464 = vmatprep.subr.bf16.mxu0 %v7418_v23  ;;  %6783 = vmatprep.subr.bf16.mxu1 %v9608_v62 }
 0xd83   : > { %6791 = vmatpush3.bf16.msra.mxu1 %v9608_v62 }
 0xd85   : > { %5465 = vmatpush1.bf16.msra.mxu0 %v7416_v56 }
 0xd88   : > { %5432 = vmatmul.mubr.bf16.gmra.mrb[100].mxu0 %v9573_v48  ;;  %v7419_v48 = vld [vmem:[#allocation12 + $0x1b0] ss:$12 sps:$4 sm:$0xff]  }
 0xd89   : > { %5441 = vmatprep.mubr.bf16.mxu0 %v9547_v22  ;;  %v7421_v22 = vld [vmem:[#allocation12 + $0x1b4] ss:$12 sps:$4 sm:$0xff]  }
 0xd8a   : > { %5466 = vmatprep.subr.bf16.mxu0 %v7421_v22 }
 0xd8b   : > { %5467 = vmatpush1.bf16.msra.mxu0 %v7419_v48 }
 0xd8c   : > { %5468 = vmatprep.subr.bf16.mxu0 %v7425_v40 }
 0xd8f   : > { %5469 = vmatpush1.bf16.msra.mxu0 %v7423_v61 }
 0xd90   : > { %5442 = vmatmul.mubr.bf16.gmra.mrb[104].mxu0 %v9582_v30  ;;  %5470 = vmatprep.subr.bf16.mxu0 %v7429_v31  ;;  %v9622_v30 = vld [vmem:[#allocation12 + $0x1e8] ss:$12 sps:$4 sm:$0xff]  }
 0xd91   : > { %5451 = vmatprep.mubr.bf16.mxu0 %v9553_v63  ;;  %v9613_v63 = vld [vmem:[#allocation12 + $0x1b8] ss:$12 sps:$4 sm:$0xff]  }
 0xd92   : > { %6784 = vmatprep.subr.bf16.mxu1 %v9613_v63 }
 0xd93   : > { %6792 = vmatpush3.bf16.msra.mxu1 %v9613_v63  ;;  %5471 = vmatpush1.bf16.msra.mxu0 %v7427_v17 }
 0xd94   : > { %6785 = vmatprep.subr.bf16.mxu1 %v9617_v11  ;;  %5472 = vmatprep.subr.bf16.mxu0 %v7433_v47 }
 0xd97   : > { %6793 = vmatpush3.bf16.msra.mxu1 %v9617_v11  ;;  %5473 = vmatpush1.bf16.msra.mxu0 %v7431_v29 }
 0xd98   : > { %5452 = vmatmul.mubr.bf16.gmra.mrb[108].mxu0 %v9591_v60  ;;  %5474 = vmatprep.subr.bf16.mxu0 %v7437_v32 }
 0xd99   : > { %5494 = vmatprep.mubr.bf16.mxu0 %v9961_v54  ;;  %6786 = vmatprep.subr.bf16.mxu1 %v9622_v30 }
 0xd9b   : > { %5475 = vmatpush1.bf16.msra.mxu0 %v7435_v39  ;;  %6794 = vmatpush3.bf16.msra.mxu1 %v9622_v30 }
 0xd9c   : > { %5476 = vmatprep.subr.bf16.mxu0 %v7441_v43  ;;  %6787 = vmatprep.subr.bf16.mxu1 %v9626_v36 }
 0xd9f   : > { %5477 = vmatpush1.bf16.msra.mxu0 %v7439_v10  ;;  %6795 = vmatpush3.bf16.msra.mxu1 %v9626_v36 }
 0xda0   : > { %6758 = vmatprep.subr.bf16.mxu0 %v9606_v46  ;;  %6788 = vmatprep.subr.bf16.mxu1 %v9635_v38 }
 0xda3   : > { %6796 = vmatpush3.bf16.msra.mxu1 %v9635_v38 }
 0xda4   : > { %6789 = vmatprep.subr.bf16.mxu1 %v9637_v2 }
 0xda7   : > { %6797 = vmatpush3.bf16.msra.mxu1 %v9637_v2 }
 0xe10   : > { %v6458_v41 = vpop.f32.mrb[136].mxu1 }
 0xe11   : > { %v6459_v37 = vpop.f32.mrb[137].mxu1 }
 0xe12   : > { %v9629_v20 = vadd.f32 %v6459_v37, %v6458_v41  ;;  %v6461_v44 = vpop.f32.mrb[138].mxu1 }
 0xe13   : > { %v6752_v58 = vpop.f32.mrb[88].mxu0  ;;  %v6462_v53 = vpop.f32.mrb[139].mxu1 }
 0xe14   : > { %v9633_v26 = vadd.f32 %v6462_v53, %v6461_v44  ;;  %v4729_v60 = vpop.f32.mrb[89].mxu0 }
 0xe15   : > { %v6753_v28 = vpop.f32.mrb[90].mxu0 }
 0xe16   : > { %v7046_v9 = vpack.i.bf16 %v6753_v28, %v6752_v58  ;;  %v4732_v42 = vpop.f32.mrb[91].mxu0 }
 0xe17   : > { %v7041_v51 = vpack.i.bf16 %v4732_v42, %v4729_v60  ;;  %v7654_v42 = vld [vmem:[%s8189_s27] sm:$0xff] }
 0xe18   : > { %7047 = vrot.lane.b32.xlu1 %v7046_v9, %s7906_s23  ;;  %v6464_v3 = vpop.f32.mrb[140].mxu1 }
 0xe19   : > { %7042 = vrot.lane.b32.xlu0 %v7041_v51, %s7906_s23  ;;  %v6465_v24 = vpop.f32.mrb[141].mxu1 }
 0xe1a   : > { %v9643_v49 = vadd.f32 %v6465_v24, %v6464_v3  ;;  %v6467_v1 = vpop.f32.mrb[142].mxu1  ;;  %v7655_v3 = vld [vmem:[%s8189_s27 + $0x8] sm:$0xff] }
 0xe1b   : > { %v6756_v13 = vpop.f32.mrb[92].mxu0  ;;  %v6468_v35 = vpop.f32.mrb[143].mxu1 }
 0xe1c   : > { %v9646_v52 = vadd.f32 %v6468_v35, %v6467_v1  ;;  %v4745_v8 = vpop.f32.mrb[93].mxu0 }
 0xe1d   : > { %v6757_v14 = vpop.f32.mrb[94].mxu0 }
 0xe1e   : > { %v7056_v5 = vpack.i.bf16 %v6757_v14, %v6756_v13  ;;  %v4748_v0 = vpop.f32.mrb[95].mxu0  ;;  %v7656_v13 = vld [vmem:[%s8189_s27 + $0x18] sm:$0xff] }
 0xe1f   : > { %v7051_v16 = vpack.i.bf16 %v4748_v0, %v4745_v8  ;;  %v7657_v8 = vld [vmem:[%s8189_s27 + $0x20] sm:$0xff] }
 0xe20   : > { %7057 = vrot.lane.b32.xlu1 %v7056_v5, %s7906_s23  ;;  %v6470_v4 = vpop.f32.mrb[144].mxu1  ;;  %v9964_v5 = vld [vmem:[#allocation21_spill] sm:$0xff] }
 0xe21   : > { %7052 = vrot.lane.b32.xlu0 %v7051_v16, %s7906_s23  ;;  %v6471_v55 = vpop.f32.mrb[145].mxu1 }
 0xe22   : > { %v9651_v19 = vadd.f32 %v6471_v55, %v6470_v4  ;;  %v6473_v57 = vpop.f32.mrb[146].mxu1 }
 0xe23   : > { %v6474_v15 = vpop.f32.mrb[147].mxu1 }
 0xe24   : > { %v9653_v50 = vadd.f32 %v6474_v15, %v6473_v57 }
 0xe28   : > { %v6476_v12 = vpop.f32.mrb[148].mxu1 }
 0xe29   : > { %v6477_v7 = vpop.f32.mrb[149].mxu1 }
 0xe2a   : > { %v9655_v6 = vadd.f32 %v6477_v7, %v6476_v12  ;;  %v6479_v23 = vpop.f32.mrb[150].mxu1 }
 0xe2b   : > { %v6480_v56 = vpop.f32.mrb[151].mxu1 }
 0xe2c   : > { %v9657_v22 = vadd.f32 %v6480_v56, %v6479_v23 }
 0xe8a   : > { %v7048_v48 = vpop.permute.xlu1 %7047 }
 0xe8b   : > { %v7050_v40 = vunpack.i.h.bf16 %v7048_v48  ;;  %v7049_v61 = vunpack.i.l.bf16 %v7048_v48  ;;  %v7043_v31 = vpop.permute.xlu0 %7042 }
 0xe8c   : > { %v7045_v17 = vunpack.i.h.bf16 %v7043_v31  ;;  %v7044_v47 = vunpack.i.l.bf16 %v7043_v31 }
 0xe8d   : > { %v4874_v29 = vsel %vm2971_vm0, %v9413_v27, %v7049_v61  ;;  %v4875_v32 = vsel %vm2971_vm0, %v9417_v25, %v7050_v40 }
 0xe8e   : > { %v4873_v39 = vsel %vm2971_vm0, %v9419_v33, %v7045_v17  ;;  %v4872_v10 = vsel %vm2971_vm0, %v9415_v34, %v7044_v47  ;;  %v4885_v43 = vpack.c.bf16 %v4875_v32, %v4874_v29  ;;  %v7659_v32 = vld [vmem:[%s8189_s27 + $0x38] sm:$0xff] }
 0xe8f   : > { %v4882_v41 = vpack.c.bf16 %v4873_v39, %v4872_v10  ;;  %v7660_v10 = vld [vmem:[%s8189_s27 + $0xa0] sm:$0xff] }
 0xe91   : > { %5495 = vmatmul.mubr.bf16.vlgmr.msra.gmra.mrb[96].mxu0 %v4882_v41 }
 0xe92   : > { %v7058_v37 = vpop.permute.xlu1 %7057  ;;  %6759 = vmatpush3.bf16.msra.mxu0 %v9606_v46  ;;  %5504 = vmatprep.mubr.bf16.mxu0 %v9961_v54 }
 0xe93   : > { %v7060_v44 = vunpack.i.h.bf16 %v7058_v37  ;;  %v7059_v58 = vunpack.i.l.bf16 %v7058_v37  ;;  %v7053_v27 = vpop.permute.xlu0 %7052  ;;  %6760 = vmatprep.subr.bf16.mxu0 %v9608_v62 }
 0xe94   : > { %v7055_v25 = vunpack.i.h.bf16 %v7053_v27  ;;  %v7054_v53 = vunpack.i.l.bf16 %v7053_v27  ;;  %v7662_v27 = vld [vmem:[%s8189_s27 + $0x70] sm:$0xff] }
 0xe95   : > { %v4879_v33 = vsel %vm2971_vm0, %v9425_v45, %v7060_v44  ;;  %v4878_v34 = vsel %vm2971_vm0, %v9421_v59, %v7059_v58  ;;  %v4988_v59 = vld [vmem:[%s9848_s8] sm:$0x7]  ;;  %v7661_v44 = vld [vmem:[%s8189_s27 + $0x48] sm:$0xff] }
 0xe96   : > { %v4891_v60 = vpack.c.bf16 %v4879_v33, %v4878_v34  ;;  %6761 = vmatpush3.bf16.msra.mxu0 %v9608_v62  ;;  %v4876_v46 = vsel %vm2971_vm0, %v9423_v21, %v7054_v53  ;;  %v4877_v28 = vsel %vm2971_vm0, %v9427_v18, %v7055_v25  ;;  %v9962_v21 = vld [vmem:[#allocation22_spill] sm:$0xff]  ;;  %v9963_v18 = vld [vmem:[#allocation20_spill] sm:$0xff]  ;;  %v9717_v0 = vrot.slane %v4988_v59, %v9964_v5  ;;  %v7664_v34 = vld [vmem:[%s8189_s27 + $0xb8] sm:$0xff] }
 0xe97   : > { %6762 = vmatprep.subr.bf16.mxu0 %v9613_v63  ;;  %v4888_v9 = vpack.c.bf16 %v4877_v28, %v4876_v46  ;;  %v9697_v45 = vrot.slane %v4988_v59, %v9962_v21  ;;  %v7663_v53 = vld [vmem:[%s8189_s27 + $0x50] sm:$0xff]  ;;  %v7665_v46 = vld [vmem:[%s8189_s27 + $0x88] sm:$0xff] }
 0xe98   : > { %v5594_v4 = vadd.f32 %v9655_v6, %v9717_v0  ;;  %v5586_v12 = vadd.f32 %v9651_v19, %v9717_v0  ;;  %v5597_v40 = vadd.f32 %v9657_v22, %v9717_v0  ;;  %v7658_v6 = vld [vmem:[%s8189_s27 + $0x30] sm:$0xff]  ;;  %v5589_v19 = vadd.f32 %v9653_v50, %v9717_v0 }
 0xe99   : > { %5505 = vmatmul.mubr.bf16.gmra.mrb[100].mxu0 %v4885_v43  ;;  %6778 = vmatprep.mubr.bf16.mxu1 %v4888_v9 }
 0xe9a   : > { %6763 = vmatpush3.bf16.msra.mxu0 %v9613_v63  ;;  %6779 = vmatmul.mubr.bf16.vlgmr.msra.gmra.mrb[152].mxu1 %v4891_v60 }
 0xe9b   : > { %6764 = vmatprep.subr.bf16.mxu0 %v9617_v11  ;;  %5514 = vmatprep.mubr.bf16.mxu0 %v9961_v54 }
 0xe9e   : > { %6765 = vmatpush3.bf16.msra.mxu0 %v9617_v11 }
 0xe9f   : > { %6766 = vmatprep.subr.bf16.mxu0 %v9622_v30 }
 0xea1   : > { %5515 = vmatmul.mubr.bf16.gmra.mrb[104].mxu0 %v4888_v9 }
 0xea2   : > { %6767 = vmatpush3.bf16.msra.mxu0 %v9622_v30  ;;  %5524 = vmatprep.mubr.bf16.mxu0 %v9961_v54  ;;  %v9700_v54 = vrot.slane %v4988_v59, %v9963_v18 }
 0xea3   : > { %6768 = vmatprep.subr.bf16.mxu0 %v9626_v36 }
 0xea6   : > { %6769 = vmatpush3.bf16.msra.mxu0 %v9626_v36 }
 0xea7   : > { %6770 = vmatprep.subr.bf16.mxu0 %v9635_v38 }
 0xea9   : > { %5525 = vmatmul.mubr.bf16.gmra.mrb[108].mxu0 %v4891_v60 }
 0xeaa   : > { %6771 = vmatpush3.bf16.msra.mxu0 %v9635_v38  ;;  %6774 = vmatprep.mubr.bf16.mxu0 %v4882_v41 }
 0xeab   : > { %6772 = vmatprep.subr.bf16.mxu0 %v9637_v2 }
 0xeae   : > { %6773 = vmatpush3.bf16.msra.mxu0 %v9637_v2 }
 0xeb1   : > { %6775 = vmatmul.mubr.bf16.vlgmr.msra.gmra.mrb[112].mxu0 %v4885_v43 }
 0xf64   : > { %v5496_v62 = vpop.f32.mrb[96].mxu0 }
 0xf65   : > { %v6814_v63 = vadd.f32 %v5496_v62, %v9697_v45  ;;  %v5498_v11 = vpop.f32.mrb[97].mxu0 }
 0xf66   : > { %v6815_v30 = vadd.f32 %v5498_v11, %v9700_v54  ;;  %v5500_v36 = vpop.f32.mrb[98].mxu0 }
 0xf67   : > { %v5665_v38 = vadd.f32 %v7654_v42, %v6814_v63  ;;  %v6816_v2 = vadd.f32 %v5500_v36, %v9697_v45  ;;  %v5502_v51 = vpop.f32.mrb[99].mxu0  ;;  %v7666_v63 = vld [vmem:[%s8189_s27 + $0x60] sm:$0xff]  ;;  %v7667_v42 = vld [vmem:[%s8189_s27 + $0x68] sm:$0xff] }
 0xf68   : > { %v5666_v24 = vadd.f32 %v7655_v3, %v6815_v30  ;;  %v6817_v1 = vadd.f32 %v5502_v51, %v9700_v54  ;;  %v7668_v51 = vld [vmem:[%s8189_s27 + $0x78] sm:$0xff] }
 0xf69   : > { %5689 = vst [vmem:[%s9710_s18] sm:$0xff] %v5665_v38  ;;  %v5668_v35 = vadd.f32 %v7656_v13, %v6816_v2 }
 0xf6a   : > { %5690 = vst [vmem:[%s9710_s18 + $0x8] sm:$0xff] %v5666_v24  ;;  %v5669_v14 = vadd.f32 %v7657_v8, %v6817_v1  ;;  %v7669_v24 = vld [vmem:[%s8189_s27 + $0x80] sm:$0xff] }
 0xf6b   : > { %5692 = vst [vmem:[%s9710_s18 + $0x18] sm:$0xff] %v5668_v35 }
 0xf6c   : > { %5693 = vst [vmem:[%s9710_s18 + $0x20] sm:$0xff] %v5669_v14  ;;  %v5506_v16 = vpop.f32.mrb[100].mxu0 }
 0xf6d   : > { %v6818_v55 = vadd.f32 %v5506_v16, %v9697_v45  ;;  %v5508_v57 = vpop.f32.mrb[101].mxu0  ;;  %v6780_v15 = vpop.f32.mrb[152].mxu1  ;;  %v7670_v16 = vld [vmem:[%s8189_s27 + $0x90] sm:$0xff] }
 0xf6e   : > { %v6819_v7 = vadd.f32 %v5508_v57, %v9700_v54  ;;  %v5659_v23 = vadd.f32 %v6780_v15, %v5594_v4  ;;  %v5510_v56 = vpop.f32.mrb[102].mxu0  ;;  %v5650_v48 = vpop.f32.mrb[153].mxu1  ;;  %v7671_v15 = vld [vmem:[%s8189_s27 + $0x98] sm:$0xff] }
 0xf6f   : > { %v5671_v61 = vadd.f32 %v7658_v6, %v6818_v55  ;;  %v6820_v31 = vadd.f32 %v5510_v56, %v9697_v45  ;;  %v5651_v17 = vadd.f32 %v5650_v48, %v5586_v12  ;;  %v5512_v47 = vpop.f32.mrb[103].mxu0  ;;  %v6781_v29 = vpop.f32.mrb[154].mxu1  ;;  %v7673_v48 = vld [vmem:[%s8189_s27 + $0xb0] sm:$0xff]  ;;  %v5578_v6 = vadd.f32 %v9643_v49, %v9717_v0 }
 0xf70   : > { %v5672_v39 = vadd.f32 %v7659_v32, %v6819_v7  ;;  %v5685_v22 = vadd.f32 %v7660_v10, %v5659_v23  ;;  %v6821_v43 = vadd.f32 %v5512_v47, %v9700_v54  ;;  %v5662_v41 = vadd.f32 %v6781_v29, %v5597_v40  ;;  %v5653_v37 = vpop.f32.mrb[155].mxu1  ;;  %v7672_v23 = vld [vmem:[%s8189_s27 + $0xa8] sm:$0xff]  ;;  %v7675_v10 = vld [vmem:[%s8189_s27 + $0x10] sm:$0xff] }
 0xf71   : > { %5695 = vst [vmem:[%s9710_s18 + $0x30] sm:$0xff] %v5671_v61  ;;  %v5674_v58 = vadd.f32 %v7661_v44, %v6820_v31  ;;  %v5679_v50 = vadd.f32 %v7662_v27, %v5651_v17  ;;  %v5654_v25 = vadd.f32 %v5653_v37, %v5589_v19  ;;  %v5570_v61 = vadd.f32 %v9629_v20, %v9717_v0  ;;  %v7674_v19 = vld [vmem:[%s8189_s27 + $0x40] sm:$0xff] }
 0xf72   : > { %5696 = vst [vmem:[%s9710_s18 + $0x38] sm:$0xff] %v5672_v39  ;;  %5709 = vst [vmem:[%s9710_s18 + $0xa0] sm:$0xff] %v5685_v22  ;;  %v5675_v33 = vadd.f32 %v7663_v53, %v6821_v43  ;;  %v5688_v60 = vadd.f32 %v7664_v34, %v5662_v41  ;;  %v5581_v17 = vadd.f32 %v9646_v52, %v9717_v0  ;;  %v7676_v43 = vld [vmem:[%s8189_s27 + $0x58] sm:$0xff] }
 0xf73   : > { %5698 = vst [vmem:[%s9710_s18 + $0x48] sm:$0xff] %v5674_v58  ;;  %5703 = vst [vmem:[%s9710_s18 + $0x70] sm:$0xff] %v5679_v50  ;;  %v5682_v28 = vadd.f32 %v7665_v46, %v5654_v25  ;;  %v5573_v49 = vadd.f32 %v9633_v26, %v9717_v0  ;;  %v7677_v26 = vld [vmem:[%s8189_s27 + $0x28] sm:$0xff] }
 0xf74   : > { %5699 = vst [vmem:[%s9710_s18 + $0x50] sm:$0xff] %v5675_v33  ;;  %5712 = vst [vmem:[%s9710_s18 + $0xb8] sm:$0xff] %v5688_v60  ;;  %v5516_v9 = vpop.f32.mrb[104].mxu0 }
 0xf75   : > { %5706 = vst [vmem:[%s9710_s18 + $0x88] sm:$0xff] %v5682_v28  ;;  %v6822_v59 = vadd.f32 %v5516_v9, %v9697_v45  ;;  %v5518_v21 = vpop.f32.mrb[105].mxu0 }
 0xf76   : > { %v6823_v18 = vadd.f32 %v5518_v21, %v9700_v54  ;;  %v5520_v62 = vpop.f32.mrb[106].mxu0 }
 0xf77   : > { %v5677_v11 = vadd.f32 %v7666_v63, %v6822_v59  ;;  %v6824_v30 = vadd.f32 %v5520_v62, %v9697_v45  ;;  %v5522_v36 = vpop.f32.mrb[107].mxu0 }
 0xf78   : > { %v5678_v38 = vadd.f32 %v7667_v42, %v6823_v18  ;;  %v6825_v2 = vadd.f32 %v5522_v36, %v9700_v54 }
 0xf79   : > { %5701 = vst [vmem:[%s9710_s18 + $0x60] sm:$0xff] %v5677_v11  ;;  %v5680_v3 = vadd.f32 %v7668_v51, %v6824_v30 }
 0xf7a   : > { %5702 = vst [vmem:[%s9710_s18 + $0x68] sm:$0xff] %v5678_v38  ;;  %v5681_v1 = vadd.f32 %v7669_v24, %v6825_v2 }
 0xf7b   : > { %5704 = vst [vmem:[%s9710_s18 + $0x78] sm:$0xff] %v5680_v3 }
 0xf7c   : > { %5705 = vst [vmem:[%s9710_s18 + $0x80] sm:$0xff] %v5681_v1  ;;  %v5526_v13 = vpop.f32.mrb[108].mxu0 }
 0xf7d   : > { %v6826_v35 = vadd.f32 %v5526_v13, %v9697_v45  ;;  %v5528_v8 = vpop.f32.mrb[109].mxu0 }
 0xf7e   : > { %v6827_v14 = vadd.f32 %v5528_v8, %v9700_v54  ;;  %v5530_v5 = vpop.f32.mrb[110].mxu0 }
 0xf7f   : > { %v5683_v4 = vadd.f32 %v7670_v16, %v6826_v35  ;;  %v6828_v55 = vadd.f32 %v5530_v5, %v9697_v45  ;;  %v5532_v57 = vpop.f32.mrb[111].mxu0 }
 0xf80   : > { %v5684_v12 = vadd.f32 %v7671_v15, %v6827_v14  ;;  %v6829_v7 = vadd.f32 %v5532_v57, %v9700_v54 }
 0xf81   : > { %5707 = vst [vmem:[%s9710_s18 + $0x90] sm:$0xff] %v5683_v4  ;;  %v5686_v56 = vadd.f32 %v7672_v23, %v6828_v55 }
 0xf82   : > { %5708 = vst [vmem:[%s9710_s18 + $0x98] sm:$0xff] %v5684_v12  ;;  %v5687_v40 = vadd.f32 %v7673_v48, %v6829_v7 }
 0xf83   : > { %5710 = vst [vmem:[%s9710_s18 + $0xa8] sm:$0xff] %v5686_v56 }
 0xf84   : > { %5711 = vst [vmem:[%s9710_s18 + $0xb0] sm:$0xff] %v5687_v40  ;;  %v6776_v45 = vpop.f32.mrb[112].mxu0 }
 0xf85   : > { %v5643_v54 = vadd.f32 %v6776_v45, %v5578_v6  ;;  %v5634_v31 = vpop.f32.mrb[113].mxu0 }
 0xf86   : > { %v5635_v47 = vadd.f32 %v5634_v31, %v5570_v61  ;;  %v6777_v29 = vpop.f32.mrb[114].mxu0 }
 0xf87   : > { %v5673_v32 = vadd.f32 %v7674_v19, %v5643_v54  ;;  %v5646_v20 = vadd.f32 %v6777_v29, %v5581_v17  ;;  %v5637_v39 = vpop.f32.mrb[115].mxu0 }
 0xf88   : > { %v5667_v22 = vadd.f32 %v7675_v10, %v5635_v47  ;;  %v5638_v52 = vadd.f32 %v5637_v39, %v5573_v49 }
 0xf89   : > { %5697 = vst [vmem:[%s9710_s18 + $0x40] sm:$0xff] %v5673_v32  ;;  %v5676_v41 = vadd.f32 %v7676_v43, %v5646_v20 }
 0xf8a   : > { %5691 = vst [vmem:[%s9710_s18 + $0x10] sm:$0xff] %v5667_v22  ;;  %v5670_v0 = vadd.f32 %v7677_v26, %v5638_v52 }
 0xf8b   : > { %5700 = vst [vmem:[%s9710_s18 + $0x58] sm:$0xff] %v5676_v41 }
 0xf8c   : > { %5694 = vst [vmem:[%s9710_s18 + $0x28] sm:$0xff] %v5670_v0 }
 0xf8d   : > { %7833 = shalt.err (!%p7830_p13)
}
 0xf8e   : > { %s7834_s27 = scalar_lea.hbm %s9790_s0, 3072  ;;  %s7838_s13 = scalar_lea.hbm %s9849_s9, 6144 }
 0xf8f   : > { %p7835_p9 = scmp.ne.s32.totalorder %s9790_s0, %s7834_s27  ;;  %p7839_p4 = scmp.lt.u32.totalorder %s9790_s0, %s9849_s9 }
 0xf90   : > { %p7840_p8 = scmp.lt.u32.totalorder %s7838_s13, %s7834_s27  ;;  %p7842_p3 = scmp.lt.u32.totalorder %s7834_s27, %s9790_s0 }
 0xf91   : > { %p7836_p0 = pnand %p7835_p9, %p8131_p10 }
 0xf92   : > { %p7841_p6 = por %p7840_p8, %p7839_p4 }
 0xf93   : > { %p7837_p11 = pneg %p7836_p0 }
 0xf94   : > { %p7843_p5 = por %p7842_p3, %p7841_p6 }
 0xf96   : > { %p7844_p7 = pnand %p7843_p5, %p7837_p11 }
 0xf98   : > { %7847 = shalt.err (!%p7844_p7)
}
 0xf99   : > { %s7908_s12 = smov 384   ;;  %s7909_s15 = smov 24  }
 0xf9a   : > { %6924 = dma.vmem_to_hbm [thread:$0]  (%p8131_p10), %s9794_s29, 3072, %s9790_s0, %s5714_s17, %s7908_s12, %s7908_s12, %s7909_s15  }
 0xf9b PF: > { %s9965_s14 = sld [smem:[#allocation18_spill]]  ;;  %s9966_s16 = sld [smem:[#allocation19_spill]] }
 0xf9c   : > { %p9968_p1 = scmp.ge.s32.totalorder %s7894_s11, 2 }
 0xfa1   : > { %s5742_s24 = sand.u32 1, %s9965_s14   ;;  %p9967_p12 = scmp.ne.s32.totalorder %s9966_s16, 0 }
 0xfa2   : > { %s5743_s20 = scalar_lea.sflag [#allocation6], %s5742_s24 }
 0xfa3   : > { %p6944_p2 = pnand %p9968_p1, %p9967_p12 }
 0xfa5   : > { %7877 = dma.done.wait (!%p6944_p2), %s5743_s20, 3072  }
 0xfa6   : > { %7879 = vsyncadd (!%p6944_p2), %s5743_s20, 4294964224  ;;  %p25_p13 = scmp.ge.s32.totalorder %s8121_s28, 4   ;;  %s9969_s29 = smov %s7886_s30 }
 0xfa7   : > { %s9970_s30 = smov %s7890_s10  ;;  %s9971_s10 = smov %s8137_s26 }
 0xfa8   : > { %s9972_s11 = smov %s8121_s28  ;;  %27 = sbr.rel (!%p25_p13) target bundleno = 7 (0x7), region = 113 }
 0xfaf   :  { %5748 = vsyncpa [#allocation5], 1 }
 0xfb0   :  { %5750 = vsyncpa [#allocation5 + $0x1], 1 }
 0xfb1   :  { %5751 = vsyncpa [#allocation8], 1 }
 0xfb2   :  { %5752 = vsyncpa [#allocation11], 1 }
 0xfb3   :  { %5753 = vsyncpa [#allocation6], 1 }
 0xfb4   :  { %5755 = vsyncpa [#allocation6 + $0x1], 1 }

</bundles_post_ra>
